<compile_context>
chip_gen: v7x
topology: tpu7x:2x2x1
jax: 0.10.0
libtpu: 0.0.40
codegen_flags: <defaults>
</compile_context>

<pallas_src>
import functools

import jax
import jax.numpy as jnp
from jax.experimental import pallas as pl
from jax.experimental.pallas import tpu as pltpu


# ----------------------------------------------------------------------------
# Kernel 1: hoisted input projection for both directions of one layer.
#   xw[d] = x @ W_ih[d]^T + (b_ih[d] + b_hh[d])     for all T*B rows at once
# ----------------------------------------------------------------------------
def _input_proj_kernel(x_ref, w_ref, b_ref, xw_ref):
    x = x_ref[...].astype(jnp.bfloat16)                       # (R, Din)
    xw_ref[0] = (jnp.dot(x, w_ref[0],                         # (R, 4H) f32 acc
                         preferred_element_type=jnp.float32)
                 + b_ref[0])


# ----------------------------------------------------------------------------
# Kernel 2: fused bidirectional recurrence for one layer.
# grid = (direction, time); gates = xw[t] + h @ W_hh^T, state in VMEM scratch.
# Output block (1, B, H) lands in the d-th channel half of (T, B, 2H).
# ----------------------------------------------------------------------------
def _bilstm_step_kernel(*refs, hidden, with_mask):
    if with_mask:
        xw_ref, w_hh_ref, mask_ref, out_ref, h_scr, c_scr = refs
    else:
        xw_ref, w_hh_ref, out_ref, h_scr, c_scr = refs
        mask_ref = None

    d = pl.program_id(0)
    t = pl.program_id(1)

    @pl.when(t == 0)
    def _():
        zero = jnp.zeros(h_scr.shape[1:], h_scr.dtype)
        h_scr[d] = zero
        c_scr[d] = zero

    H = hidden
    xw = xw_ref[0, 0]                       # (B, 4H) f32, projection + bias
    h = h_scr[d]                            # (B, H)  f32 state

    # Only the recurrent matmul remains inside the time loop (bf16 on MXU).
    gates = xw + jnp.dot(h.astype(jnp.bfloat16), w_hh_ref[0],
                         preferred_element_type=jnp.float32)   # (B, 4H) f32

    # PyTorch gate order [i, f, g, o]; nonlinearities kept in f32.
    i_g = jax.nn.sigmoid(gates[:, 0 * H:1 * H])
    f_g = jax.nn.sigmoid(gates[:, 1 * H:2 * H])
    g_g = jnp.tanh(gates[:, 2 * H:3 * H])
    o_g = jax.nn.sigmoid(gates[:, 3 * H:4 * H])

    c_new = f_g * c_scr[d] + i_g * g_g
    h_new = o_g * jnp.tanh(c_new)

    c_scr[d] = c_new
    h_scr[d] = h_new

    out_val = h_new
    if with_mask:  # static flag: only the last layer multiplies by the mask
        T = pl.num_programs(1)
        time_idx = (1 - d) * t + d * (T - 1 - t)   # absolute timestep
        out_val = out_val * mask_ref[time_idx]     # (B, 1) broadcast, free VPU work
    out_ref[0] = out_val


# ----------------------------------------------------------------------------
# One bidirectional LSTM layer on time-major input (T, B, Din) -> (T, B, 2H)
# ----------------------------------------------------------------------------
def bilstm_layer(x_tm, w_ih_t, w_hh_t, bias, mask_tm=None):
    T, B, Din = x_tm.shape
    H = w_hh_t.shape[1]
    H4 = w_hh_t.shape[2]
    R = T * B                                   # all rows, both layers small here

    # ---- stage 1: hoisted input projection (one matmul per direction) ------
    x2 = x_tm.reshape(R, Din)                   # free reshape (time-major rows)
    xw = pl.pallas_call(
        _input_proj_kernel,
        out_shape=jax.ShapeDtypeStruct((2, R, H4), jnp.float32),
        grid_spec=pltpu.PrefetchScalarGridSpec(
            num_scalar_prefetch=0,
            grid=(2,),                          # direction
            in_specs=[
                pl.BlockSpec((R, Din), lambda d: (0, 0)),        # activations
                pl.BlockSpec((1, Din, H4), lambda d: (d, 0, 0)),  # W_ih^T (bf16)
                pl.BlockSpec((1, 1, H4), lambda d: (d, 0, 0)),    # b_ih + b_hh
            ],
            out_specs=pl.BlockSpec((1, R, H4), lambda d: (d, 0, 0)),
        ),
        compiler_params=pltpu.CompilerParams(
            dimension_semantics=("parallel",)),
    )(x2, w_ih_t, bias)
    xw = xw.reshape(2, T, B, H4)                # free reshape

    # ---- stage 2: fused fwd/bwd recurrence ---------------------------------
    with_mask = mask_tm is not None
    kernel = functools.partial(_bilstm_step_kernel, hidden=H, with_mask=with_mask)

    def tidx(d, t):
        # forward (d=0): t ; backward (d=1): T-1-t  — reverse via index_map only
        return (1 - d) * t + d * (T - 1 - t)

    in_specs = [
        pl.BlockSpec((1, 1, B, H4), lambda d, t: (d, tidx(d, t), 0, 0)),  # xw step
        pl.BlockSpec((1, H, H4), lambda d, t: (d, 0, 0)),                 # W_hh^T
    ]
    inputs = [xw, w_hh_t]
    if with_mask:
        in_specs.append(pl.BlockSpec((T, B, 1), lambda d, t: (0, 0, 0)))  # mask (resident)
        inputs.append(mask_tm)

    return pl.pallas_call(
        kernel,
        out_shape=jax.ShapeDtypeStruct((T, B, 2 * H), jnp.float32),
        grid_spec=pltpu.PrefetchScalarGridSpec(
            num_scalar_prefetch=0,
            grid=(2, T),                         # (direction, time)
            in_specs=in_specs,
            # fwd/bwd write directly into the two channel halves: no concat.
            out_specs=pl.BlockSpec((1, B, H), lambda d, t: (tidx(d, t), 0, d)),
            scratch_shapes=[
                pltpu.VMEM((2, B, H), jnp.float32),   # h state per direction
                pltpu.VMEM((2, B, H), jnp.float32),   # c state per direction
            ],
        ),
        compiler_params=pltpu.CompilerParams(
            # direction independent (megacore split on v7x); time is sequential
            dimension_semantics=("parallel", "arbitrary")),
    )(*inputs)


# ----------------------------------------------------------------------------
# Parameters (PyTorch nn.LSTM layout) and kernel-layout preparation
# ----------------------------------------------------------------------------
def init_sent_encoder_params(key, sent_rep_size=256, sent_hidden_size=256,
                             num_layers=2):
    """Deterministic init matching nn.LSTM parameter shapes (uniform(-k, k))."""
    H = sent_hidden_size
    k = 1.0 / jnp.sqrt(jnp.asarray(H, jnp.float32))
    params = []
    for layer in range(num_layers):
        in_size = sent_rep_size if layer == 0 else 2 * H
        layer_params = []
        for _direction in range(2):  # forward, reverse
            key, k1, k2, k3, k4 = jax.random.split(key, 5)
            w_ih = jax.random.uniform(k1, (4 * H, in_size), jnp.float32, -k, k)
            w_hh = jax.random.uniform(k2, (4 * H, H), jnp.float32, -k, k)
            b_ih = jax.random.uniform(k3, (4 * H,), jnp.float32, -k, k)
            b_hh = jax.random.uniform(k4, (4 * H,), jnp.float32, -k, k)
            layer_params.append((w_ih, w_hh, b_ih, b_hh))
        params.append(tuple(layer_params))
    return params


def prepare_sent_encoder_params(params):
    """PyTorch layout -> kernel layout: stacked/transposed, weights in bf16,
    combined bias in f32 (done once, outside the per-step loop)."""
    prepared = []
    for (fwd, bwd) in params:
        w_ih_f, w_hh_f, b_ih_f, b_hh_f = fwd
        w_ih_b, w_hh_b, b_ih_b, b_hh_b = bwd
        w_ih_t = jnp.stack([w_ih_f.T, w_ih_b.T]).astype(jnp.bfloat16)  # (2, Din, 4H)
        w_hh_t = jnp.stack([w_hh_f.T, w_hh_b.T]).astype(jnp.bfloat16)  # (2, H, 4H)
        bias = jnp.stack([b_ih_f + b_hh_f,
                          b_ih_b + b_hh_b])[:, None, :].astype(jnp.float32)  # (2,1,4H)
        prepared.append((w_ih_t, w_hh_t, bias))
    return prepared


# ----------------------------------------------------------------------------
# SentEncoder forward (eval mode)
# ----------------------------------------------------------------------------
def sent_encoder_forward(prepared_params, sent_reps, sent_masks):
    """
    sent_reps:  (B, T, sent_rep_size)  float32
    sent_masks: (B, T)                 float32
    returns:    (B, T, 2*sent_hidden_size)
    """
    B, T, _ = sent_reps.shape
    B_pad = ((B + 7) // 8) * 8   # full-sublane rows for gate vregs / stores

    x_tm = jnp.transpose(sent_reps.astype(jnp.float32), (1, 0, 2))           # (T, B, D)
    mask_tm = jnp.transpose(sent_masks.astype(jnp.float32), (1, 0))[:, :, None]  # (T, B, 1)
    if B_pad != B:
        pad = ((0, 0), (0, B_pad - B), (0, 0))
        x_tm = jnp.pad(x_tm, pad)
        mask_tm = jnp.pad(mask_tm, pad)

    n_layers = len(prepared_params)
    h_tm = x_tm
    for li, (w_ih_t, w_hh_t, bias) in enumerate(prepared_params):
        m = mask_tm if li == n_layers - 1 else None   # mask fused into last layer
        h_tm = bilstm_layer(h_tm, w_ih_t, w_hh_t, bias, mask_tm=m)

    # TODO(synk): dropout is training-only in the reference module; eval path skips it.
    return jnp.transpose(h_tm, (1, 0, 2))[:B]          # (B, T, 2H) batch-first


if __name__ == "__main__":
    B, T = 2, 8
    SENT_REP_SIZE = 256
    SENT_HIDDEN = 256
    NUM_LAYERS = 2

    key = jax.random.PRNGKey(0)
    key, k_x, k_m, k_p = jax.random.split(key, 4)

    sent_reps = jax.random.normal(k_x, (B, T, SENT_REP_SIZE), jnp.float32)
    sent_masks = (jax.random.uniform(k_m, (B, T)) > 0.2).astype(jnp.float32)

    params = init_sent_encoder_params(
        k_p, sent_rep_size=SENT_REP_SIZE, sent_hidden_size=SENT_HIDDEN,
        num_layers=NUM_LAYERS)
    prepared = prepare_sent_encoder_params(params)

    fwd = jax.jit(sent_encoder_forward)
    out = fwd(prepared, sent_reps, sent_masks)
    out = jax.block_until_ready(out)

    assert out.shape == (B, T, 2 * SENT_HIDDEN), out.shape
    assert jnp.all(jnp.isfinite(out))
    print("KERNEL_OK")
</pallas_src>

<mosaic_0001>
module attributes {stable_mosaic.version = 11 : i64} {
  func.func @_input_proj_kernel(%arg0: i32, %arg1: memref<64x512xf32, #tpu.memory_space<vmem>>, %arg2: memref<1x512x1024xbf16, #tpu.memory_space<vmem>>, %arg3: memref<1x1x1024xf32, #tpu.memory_space<vmem>>, %arg4: memref<1x64x1024xf32, #tpu.memory_space<vmem>>) attributes {dimension_semantics = [#tpu.dimension_semantics<parallel>], iteration_bounds = array<i64: 2>, scalar_prefetch = 0 : i64, scratch_operands = 0 : i64, tpu.core_type = #tpu.core_type<tc>, window_params = [{pipeline_mode = #tpu.pipeline_mode<synchronous>, transform_indices = @transform_0, window_bounds = array<i64: 64, 512>}, {transform_indices = @transform_1, window_bounds = array<i64: 1, 512, 1024>}, {transform_indices = @transform_2, window_bounds = array<i64: 1, 1, 1024>}, {transform_indices = @transform_3, window_bounds = array<i64: 1, 64, 1024>}]} {
    %c0 = arith.constant 0 : index
    %c0_0 = arith.constant 0 : index
    %0 = vector.load %arg1[%c0, %c0_0] : memref<64x512xf32, #tpu.memory_space<vmem>>, vector<64x512xf32>
    %1 = arith.truncf %0 : vector<64x512xf32> to vector<64x512xbf16>
    %c0_1 = arith.constant 0 : index
    %c0_2 = arith.constant 0 : index
    %c0_3 = arith.constant 0 : index
    %2 = vector.load %arg2[%c0_1, %c0_2, %c0_3] : memref<1x512x1024xbf16, #tpu.memory_space<vmem>>, vector<1x512x1024xbf16>
    %3 = vector.shape_cast %2 : vector<1x512x1024xbf16> to vector<512x1024xbf16>
    %cst = arith.constant dense<0.000000e+00> : vector<64x1024xf32>
    %4 = tpu.matmul %1, %3, %cst {dimension_numbers = #tpu.dot_dimension_numbers<[1], [0], [0], [1], [0, 0, 1, 1], [], []>} : vector<64x512xbf16>, vector<512x1024xbf16>, vector<64x1024xf32> -> vector<64x1024xf32>
    %c0_4 = arith.constant 0 : index
    %c0_5 = arith.constant 0 : index
    %c0_6 = arith.constant 0 : index
    %5 = vector.load %arg3[%c0_4, %c0_5, %c0_6] : memref<1x1x1024xf32, #tpu.memory_space<vmem>>, vector<1x1x1024xf32>
    %6 = vector.shape_cast %5 : vector<1x1x1024xf32> to vector<1x1024xf32>
    %7 = vector.broadcast %6 : vector<1x1024xf32> to vector<64x1024xf32>
    %8 = arith.addf %4, %7 : vector<64x1024xf32>
    %c0_7 = arith.constant 0 : index
    %c0_8 = arith.constant 0 : index
    %c0_9 = arith.constant 0 : index
    %9 = vector.load %arg4[%c0_7, %c0_8, %c0_9] : memref<1x64x1024xf32, #tpu.memory_space<vmem>>, vector<1x64x1024xf32>
    %10 = vector.shape_cast %9 : vector<1x64x1024xf32> to vector<64x1024xf32>
    %11 = vector.shape_cast %8 : vector<64x1024xf32> to vector<1x64x1024xf32>
    tpu.vector_store %arg4[%c0_7, %c0_8, %c0_9], %11 {strides = array<i32>} : memref<1x64x1024xf32, #tpu.memory_space<vmem>>, vector<1x64x1024xf32>,
    return
  }
  func.func @transform_0(%arg0: i32) -> (i32, i32) {
    %c0_i32 = arith.constant 0 : i32
    %c0_i32_0 = arith.constant 0 : i32
    %c0_i32_1 = arith.constant 0 : i32
    return %c0_i32, %c0_i32_0 : i32, i32
  }
  func.func @transform_1(%arg0: i32) -> (i32, i32, i32) {
    %c0_i32 = arith.constant 0 : i32
    %c0_i32_0 = arith.constant 0 : i32
    %c0_i32_1 = arith.constant 0 : i32
    return %arg0, %c0_i32, %c0_i32_0 : i32, i32, i32
  }
  func.func @transform_2(%arg0: i32) -> (i32, i32, i32) {
    %c0_i32 = arith.constant 0 : i32
    %c0_i32_0 = arith.constant 0 : i32
    %c0_i32_1 = arith.constant 0 : i32
    return %arg0, %c0_i32, %c0_i32_0 : i32, i32, i32
  }
  func.func @transform_3(%arg0: i32) -> (i32, i32, i32) {
    %c0_i32 = arith.constant 0 : i32
    %c0_i32_0 = arith.constant 0 : i32
    %c0_i32_1 = arith.constant 0 : i32
    return %arg0, %c0_i32, %c0_i32_0 : i32, i32, i32
  }
}

module attributes {stable_mosaic.version = 11 : i64} {
  func.func @_bilstm_step_kernel(%arg0: i32, %arg1: i32, %arg2: memref<1x1x8x1024xf32, #tpu.memory_space<vmem>>, %arg3: memref<1x256x1024xbf16, #tpu.memory_space<vmem>>, %arg4: memref<1x8x256xf32, #tpu.memory_space<vmem>>, %arg5: memref<2x8x256xf32, #tpu.memory_space<vmem>>, %arg6: memref<2x8x256xf32, #tpu.memory_space<vmem>>) attributes {dimension_semantics = [#tpu.dimension_semantics<parallel>, #tpu.dimension_semantics<arbitrary>], iteration_bounds = array<i64: 2, 8>, scalar_prefetch = 0 : i64, scratch_operands = 2 : i64, tpu.core_type = #tpu.core_type<tc>, window_params = [{transform_indices = @transform_0, window_bounds = array<i64: 1, 1, 8, 1024>}, {transform_indices = @transform_1, window_bounds = array<i64: 1, 256, 1024>}, {transform_indices = @transform_2, window_bounds = array<i64: 1, 8, 256>}]} {
    %c0_i32 = arith.constant 0 : i32
    %0 = arith.cmpi eq, %arg1, %c0_i32 : i32
    %1 = arith.extui %0 : i1 to i32
    %c0_i32_0 = arith.constant 0 : i32
    %2 = arith.cmpi ne, %1, %c0_i32_0 : i32
    scf.if %2 {
      %cst_21 = arith.constant 0.000000e+00 : f32
      %52 = vector.broadcast %cst_21 : f32 to vector<8x256xf32>
      %53 = arith.index_cast %arg0 : i32 to index
      %c0_22 = arith.constant 0 : index
      %c0_23 = arith.constant 0 : index
      %54 = vector.load %arg5[%53, %c0_22, %c0_23] : memref<2x8x256xf32, #tpu.memory_space<vmem>>, vector<1x8x256xf32>
      %55 = vector.shape_cast %54 : vector<1x8x256xf32> to vector<8x256xf32>
      %56 = vector.shape_cast %52 : vector<8x256xf32> to vector<1x8x256xf32>
      tpu.vector_store %arg5[%53, %c0_22, %c0_23], %56 {strides = array<i32>} : memref<2x8x256xf32, #tpu.memory_space<vmem>>, vector<1x8x256xf32>,
      %57 = arith.index_cast %arg0 : i32 to index
      %c0_24 = arith.constant 0 : index
      %c0_25 = arith.constant 0 : index
      %58 = vector.load %arg6[%57, %c0_24, %c0_25] : memref<2x8x256xf32, #tpu.memory_space<vmem>>, vector<1x8x256xf32>
      %59 = vector.shape_cast %58 : vector<1x8x256xf32> to vector<8x256xf32>
      %60 = vector.shape_cast %52 : vector<8x256xf32> to vector<1x8x256xf32>
      tpu.vector_store %arg6[%57, %c0_24, %c0_25], %60 {strides = array<i32>} : memref<2x8x256xf32, #tpu.memory_space<vmem>>, vector<1x8x256xf32>,
    } else {
    }
    %c0 = arith.constant 0 : index
    %c0_1 = arith.constant 0 : index
    %c0_2 = arith.constant 0 : index
    %c0_3 = arith.constant 0 : index
    %3 = vector.load %arg2[%c0, %c0_1, %c0_2, %c0_3] : memref<1x1x8x1024xf32, #tpu.memory_space<vmem>>, vector<1x1x8x1024xf32>
    %4 = vector.shape_cast %3 : vector<1x1x8x1024xf32> to vector<8x1024xf32>
    %5 = arith.index_cast %arg0 : i32 to index
    %c0_4 = arith.constant 0 : index
    %c0_5 = arith.constant 0 : index
    %6 = vector.load %arg5[%5, %c0_4, %c0_5] : memref<2x8x256xf32, #tpu.memory_space<vmem>>, vector<1x8x256xf32>
    %7 = vector.shape_cast %6 : vector<1x8x256xf32> to vector<8x256xf32>
    %8 = arith.truncf %7 : vector<8x256xf32> to vector<8x256xbf16>
    %c0_6 = arith.constant 0 : index
    %c0_7 = arith.constant 0 : index
    %c0_8 = arith.constant 0 : index
    %9 = vector.load %arg3[%c0_6, %c0_7, %c0_8] : memref<1x256x1024xbf16, #tpu.memory_space<vmem>>, vector<1x256x1024xbf16>
    %10 = vector.shape_cast %9 : vector<1x256x1024xbf16> to vector<256x1024xbf16>
    %cst = arith.constant dense<0.000000e+00> : vector<8x1024xf32>
    %11 = tpu.matmul %8, %10, %cst {dimension_numbers = #tpu.dot_dimension_numbers<[1], [0], [0], [1], [0, 0, 1, 1], [], []>} : vector<8x256xbf16>, vector<256x1024xbf16>, vector<8x1024xf32> -> vector<8x1024xf32>
    %12 = arith.addf %4, %11 : vector<8x1024xf32>
    %13 = vector.extract_strided_slice %12 {offsets = [0, 0], sizes = [8, 256], strides = [1, 1]} : vector<8x1024xf32> to vector<8x256xf32>
    %14 = arith.negf %13 : vector<8x256xf32>
    %15 = math.exp %14 : vector<8x256xf32>
    %cst_9 = arith.constant 1.000000e+00 : f32
    %16 = vector.broadcast %cst_9 : f32 to vector<8x256xf32>
    %17 = arith.addf %16, %15 : vector<8x256xf32>
    %18 = arith.divf %16, %17 : vector<8x256xf32>
    %19 = vector.extract_strided_slice %12 {offsets = [0, 256], sizes = [8, 256], strides = [1, 1]} : vector<8x1024xf32> to vector<8x256xf32>
    %20 = arith.negf %19 : vector<8x256xf32>
    %21 = math.exp %20 : vector<8x256xf32>
    %cst_10 = arith.constant 1.000000e+00 : f32
    %22 = vector.broadcast %cst_10 : f32 to vector<8x256xf32>
    %23 = arith.addf %22, %21 : vector<8x256xf32>
    %24 = arith.divf %22, %23 : vector<8x256xf32>
    %25 = vector.extract_strided_slice %12 {offsets = [0, 512], sizes = [8, 256], strides = [1, 1]} : vector<8x1024xf32> to vector<8x256xf32>
    %26 = math.tanh %25 : vector<8x256xf32>
    %27 = vector.extract_strided_slice %12 {offsets = [0, 768], sizes = [8, 256], strides = [1, 1]} : vector<8x1024xf32> to vector<8x256xf32>
    %28 = arith.negf %27 : vector<8x256xf32>
    %29 = math.exp %28 : vector<8x256xf32>
    %cst_11 = arith.constant 1.000000e+00 : f32
    %30 = vector.broadcast %cst_11 : f32 to vector<8x256xf32>
    %31 = arith.addf %30, %29 : vector<8x256xf32>
    %32 = arith.divf %30, %31 : vector<8x256xf32>
    %33 = arith.index_cast %arg0 : i32 to index
    %c0_12 = arith.constant 0 : index
    %c0_13 = arith.constant 0 : index
    %34 = vector.load %arg6[%33, %c0_12, %c0_13] : memref<2x8x256xf32, #tpu.memory_space<vmem>>, vector<1x8x256xf32>
    %35 = vector.shape_cast %34 : vector<1x8x256xf32> to vector<8x256xf32>
    %36 = arith.mulf %24, %35 : vector<8x256xf32>
    %37 = arith.mulf %18, %26 : vector<8x256xf32>
    %38 = arith.addf %36, %37 : vector<8x256xf32>
    %39 = math.tanh %38 : vector<8x256xf32>
    %40 = arith.mulf %32, %39 : vector<8x256xf32>
    %41 = arith.index_cast %arg0 : i32 to index
    %c0_14 = arith.constant 0 : index
    %c0_15 = arith.constant 0 : index
    %42 = vector.load %arg6[%41, %c0_14, %c0_15] : memref<2x8x256xf32, #tpu.memory_space<vmem>>, vector<1x8x256xf32>
    %43 = vector.shape_cast %42 : vector<1x8x256xf32> to vector<8x256xf32>
    %44 = vector.shape_cast %38 : vector<8x256xf32> to vector<1x8x256xf32>
    tpu.vector_store %arg6[%41, %c0_14, %c0_15], %44 {strides = array<i32>} : memref<2x8x256xf32, #tpu.memory_space<vmem>>, vector<1x8x256xf32>,
    %45 = arith.index_cast %arg0 : i32 to index
    %c0_16 = arith.constant 0 : index
    %c0_17 = arith.constant 0 : index
    %46 = vector.load %arg5[%45, %c0_16, %c0_17] : memref<2x8x256xf32, #tpu.memory_space<vmem>>, vector<1x8x256xf32>
    %47 = vector.shape_cast %46 : vector<1x8x256xf32> to vector<8x256xf32>
    %48 = vector.shape_cast %40 : vector<8x256xf32> to vector<1x8x256xf32>
    tpu.vector_store %arg5[%45, %c0_16, %c0_17], %48 {strides = array<i32>} : memref<2x8x256xf32, #tpu.memory_space<vmem>>, vector<1x8x256xf32>,
    %c0_18 = arith.constant 0 : index
    %c0_19 = arith.constant 0 : index
    %c0_20 = arith.constant 0 : index
    %49 = vector.load %arg4[%c0_18, %c0_19, %c0_20] : memref<1x8x256xf32, #tpu.memory_space<vmem>>, vector<1x8x256xf32>
    %50 = vector.shape_cast %49 : vector<1x8x256xf32> to vector<8x256xf32>
    %51 = vector.shape_cast %40 : vector<8x256xf32> to vector<1x8x256xf32>
    tpu.vector_store %arg4[%c0_18, %c0_19, %c0_20], %51 {strides = array<i32>} : memref<1x8x256xf32, #tpu.memory_space<vmem>>, vector<1x8x256xf32>,
    return
  }
  func.func @transform_0(%arg0: i32, %arg1: i32) -> (i32, i32, i32, i32) {
    %c1_i32 = arith.constant 1 : i32
    %0 = arith.subi %c1_i32, %arg0 : i32
    %1 = arith.muli %0, %arg1 : i32
    %c7_i32 = arith.constant 7 : i32
    %2 = arith.subi %c7_i32, %arg1 : i32
    %3 = arith.muli %arg0, %2 : i32
    %4 = arith.addi %1, %3 : i32
    %c0_i32 = arith.constant 0 : i32
    %c0_i32_0 = arith.constant 0 : i32
    %c0_i32_1 = arith.constant 0 : i32
    return %arg0, %4, %c0_i32, %c0_i32_0 : i32, i32, i32, i32
  }
  func.func @transform_1(%arg0: i32, %arg1: i32) -> (i32, i32, i32) {
    %c0_i32 = arith.constant 0 : i32
    %c0_i32_0 = arith.constant 0 : i32
    %c0_i32_1 = arith.constant 0 : i32
    return %arg0, %c0_i32, %c0_i32_0 : i32, i32, i32
  }
  func.func @transform_2(%arg0: i32, %arg1: i32) -> (i32, i32, i32) {
    %c1_i32 = arith.constant 1 : i32
    %0 = arith.subi %c1_i32, %arg0 : i32
    %1 = arith.muli %0, %arg1 : i32
    %c7_i32 = arith.constant 7 : i32
    %2 = arith.subi %c7_i32, %arg1 : i32
    %3 = arith.muli %arg0, %2 : i32
    %4 = arith.addi %1, %3 : i32
    %c0_i32 = arith.constant 0 : i32
    %c0_i32_0 = arith.constant 0 : i32
    return %4, %c0_i32, %arg0 : i32, i32, i32
  }
}

module attributes {stable_mosaic.version = 11 : i64} {
  func.func @_input_proj_kernel(%arg0: i32, %arg1: memref<64x256xf32, #tpu.memory_space<vmem>>, %arg2: memref<1x256x1024xbf16, #tpu.memory_space<vmem>>, %arg3: memref<1x1x1024xf32, #tpu.memory_space<vmem>>, %arg4: memref<1x64x1024xf32, #tpu.memory_space<vmem>>) attributes {dimension_semantics = [#tpu.dimension_semantics<parallel>], iteration_bounds = array<i64: 2>, scalar_prefetch = 0 : i64, scratch_operands = 0 : i64, tpu.core_type = #tpu.core_type<tc>, window_params = [{pipeline_mode = #tpu.pipeline_mode<synchronous>, transform_indices = @transform_0, window_bounds = array<i64: 64, 256>}, {transform_indices = @transform_1, window_bounds = array<i64: 1, 256, 1024>}, {transform_indices = @transform_2, window_bounds = array<i64: 1, 1, 1024>}, {transform_indices = @transform_3, window_bounds = array<i64: 1, 64, 1024>}]} {
    %c0 = arith.constant 0 : index
    %c0_0 = arith.constant 0 : index
    %0 = vector.load %arg1[%c0, %c0_0] : memref<64x256xf32, #tpu.memory_space<vmem>>, vector<64x256xf32>
    %1 = arith.truncf %0 : vector<64x256xf32> to vector<64x256xbf16>
    %c0_1 = arith.constant 0 : index
    %c0_2 = arith.constant 0 : index
    %c0_3 = arith.constant 0 : index
    %2 = vector.load %arg2[%c0_1, %c0_2, %c0_3] : memref<1x256x1024xbf16, #tpu.memory_space<vmem>>, vector<1x256x1024xbf16>
    %3 = vector.shape_cast %2 : vector<1x256x1024xbf16> to vector<256x1024xbf16>
    %cst = arith.constant dense<0.000000e+00> : vector<64x1024xf32>
    %4 = tpu.matmul %1, %3, %cst {dimension_numbers = #tpu.dot_dimension_numbers<[1], [0], [0], [1], [0, 0, 1, 1], [], []>} : vector<64x256xbf16>, vector<256x1024xbf16>, vector<64x1024xf32> -> vector<64x1024xf32>
    %c0_4 = arith.constant 0 : index
    %c0_5 = arith.constant 0 : index
    %c0_6 = arith.constant 0 : index
    %5 = vector.load %arg3[%c0_4, %c0_5, %c0_6] : memref<1x1x1024xf32, #tpu.memory_space<vmem>>, vector<1x1x1024xf32>
    %6 = vector.shape_cast %5 : vector<1x1x1024xf32> to vector<1x1024xf32>
    %7 = vector.broadcast %6 : vector<1x1024xf32> to vector<64x1024xf32>
    %8 = arith.addf %4, %7 : vector<64x1024xf32>
    %c0_7 = arith.constant 0 : index
    %c0_8 = arith.constant 0 : index
    %c0_9 = arith.constant 0 : index
    %9 = vector.load %arg4[%c0_7, %c0_8, %c0_9] : memref<1x64x1024xf32, #tpu.memory_space<vmem>>, vector<1x64x1024xf32>
    %10 = vector.shape_cast %9 : vector<1x64x1024xf32> to vector<64x1024xf32>
    %11 = vector.shape_cast %8 : vector<64x1024xf32> to vector<1x64x1024xf32>
    tpu.vector_store %arg4[%c0_7, %c0_8, %c0_9], %11 {strides = array<i32>} : memref<1x64x1024xf32, #tpu.memory_space<vmem>>, vector<1x64x1024xf32>,
    return
  }
  func.func @transform_0(%arg0: i32) -> (i32, i32) {
    %c0_i32 = arith.constant 0 : i32
    %c0_i32_0 = arith.constant 0 : i32
    %c0_i32_1 = arith.constant 0 : i32
    return %c0_i32, %c0_i32_0 : i32, i32
  }
  func.func @transform_1(%arg0: i32) -> (i32, i32, i32) {
    %c0_i32 = arith.constant 0 : i32
    %c0_i32_0 = arith.constant 0 : i32
    %c0_i32_1 = arith.constant 0 : i32
    return %arg0, %c0_i32, %c0_i32_0 : i32, i32, i32
  }
  func.func @transform_2(%arg0: i32) -> (i32, i32, i32) {
    %c0_i32 = arith.constant 0 : i32
    %c0_i32_0 = arith.constant 0 : i32
    %c0_i32_1 = arith.constant 0 : i32
    return %arg0, %c0_i32, %c0_i32_0 : i32, i32, i32
  }
  func.func @transform_3(%arg0: i32) -> (i32, i32, i32) {
    %c0_i32 = arith.constant 0 : i32
    %c0_i32_0 = arith.constant 0 : i32
    %c0_i32_1 = arith.constant 0 : i32
    return %arg0, %c0_i32, %c0_i32_0 : i32, i32, i32
  }
}

module attributes {stable_mosaic.version = 11 : i64} {
  func.func @_bilstm_step_kernel(%arg0: i32, %arg1: i32, %arg2: memref<1x1x8x1024xf32, #tpu.memory_space<vmem>>, %arg3: memref<1x256x1024xbf16, #tpu.memory_space<vmem>>, %arg4: memref<8x8x1xf32, #tpu.memory_space<vmem>>, %arg5: memref<1x8x256xf32, #tpu.memory_space<vmem>>, %arg6: memref<2x8x256xf32, #tpu.memory_space<vmem>>, %arg7: memref<2x8x256xf32, #tpu.memory_space<vmem>>) attributes {dimension_semantics = [#tpu.dimension_semantics<parallel>, #tpu.dimension_semantics<arbitrary>], iteration_bounds = array<i64: 2, 8>, scalar_prefetch = 0 : i64, scratch_operands = 2 : i64, tpu.core_type = #tpu.core_type<tc>, window_params = [{transform_indices = @transform_0, window_bounds = array<i64: 1, 1, 8, 1024>}, {transform_indices = @transform_1, window_bounds = array<i64: 1, 256, 1024>}, {pipeline_mode = #tpu.pipeline_mode<synchronous>, transform_indices = @transform_2, window_bounds = array<i64: 8, 8, 1>}, {transform_indices = @transform_3, window_bounds = array<i64: 1, 8, 256>}]} {
    %c0_i32 = arith.constant 0 : i32
    %0 = arith.cmpi eq, %arg1, %c0_i32 : i32
    %1 = arith.extui %0 : i1 to i32
    %c0_i32_0 = arith.constant 0 : i32
    %2 = arith.cmpi ne, %1, %c0_i32_0 : i32
    scf.if %2 {
      %cst_23 = arith.constant 0.000000e+00 : f32
      %62 = vector.broadcast %cst_23 : f32 to vector<8x256xf32>
      %63 = arith.index_cast %arg0 : i32 to index
      %c0_24 = arith.constant 0 : index
      %c0_25 = arith.constant 0 : index
      %64 = vector.load %arg6[%63, %c0_24, %c0_25] : memref<2x8x256xf32, #tpu.memory_space<vmem>>, vector<1x8x256xf32>
      %65 = vector.shape_cast %64 : vector<1x8x256xf32> to vector<8x256xf32>
      %66 = vector.shape_cast %62 : vector<8x256xf32> to vector<1x8x256xf32>
      tpu.vector_store %arg6[%63, %c0_24, %c0_25], %66 {strides = array<i32>} : memref<2x8x256xf32, #tpu.memory_space<vmem>>, vector<1x8x256xf32>,
      %67 = arith.index_cast %arg0 : i32 to index
      %c0_26 = arith.constant 0 : index
      %c0_27 = arith.constant 0 : index
      %68 = vector.load %arg7[%67, %c0_26, %c0_27] : memref<2x8x256xf32, #tpu.memory_space<vmem>>, vector<1x8x256xf32>
      %69 = vector.shape_cast %68 : vector<1x8x256xf32> to vector<8x256xf32>
      %70 = vector.shape_cast %62 : vector<8x256xf32> to vector<1x8x256xf32>
      tpu.vector_store %arg7[%67, %c0_26, %c0_27], %70 {strides = array<i32>} : memref<2x8x256xf32, #tpu.memory_space<vmem>>, vector<1x8x256xf32>,
    } else {
    }
    %c0 = arith.constant 0 : index
    %c0_1 = arith.constant 0 : index
    %c0_2 = arith.constant 0 : index
    %c0_3 = arith.constant 0 : index
    %3 = vector.load %arg2[%c0, %c0_1, %c0_2, %c0_3] : memref<1x1x8x1024xf32, #tpu.memory_space<vmem>>, vector<1x1x8x1024xf32>
    %4 = vector.shape_cast %3 : vector<1x1x8x1024xf32> to vector<8x1024xf32>
    %5 = arith.index_cast %arg0 : i32 to index
    %c0_4 = arith.constant 0 : index
    %c0_5 = arith.constant 0 : index
    %6 = vector.load %arg6[%5, %c0_4, %c0_5] : memref<2x8x256xf32, #tpu.memory_space<vmem>>, vector<1x8x256xf32>
    %7 = vector.shape_cast %6 : vector<1x8x256xf32> to vector<8x256xf32>
    %8 = arith.truncf %7 : vector<8x256xf32> to vector<8x256xbf16>
    %c0_6 = arith.constant 0 : index
    %c0_7 = arith.constant 0 : index
    %c0_8 = arith.constant 0 : index
    %9 = vector.load %arg3[%c0_6, %c0_7, %c0_8] : memref<1x256x1024xbf16, #tpu.memory_space<vmem>>, vector<1x256x1024xbf16>
    %10 = vector.shape_cast %9 : vector<1x256x1024xbf16> to vector<256x1024xbf16>
    %cst = arith.constant dense<0.000000e+00> : vector<8x1024xf32>
    %11 = tpu.matmul %8, %10, %cst {dimension_numbers = #tpu.dot_dimension_numbers<[1], [0], [0], [1], [0, 0, 1, 1], [], []>} : vector<8x256xbf16>, vector<256x1024xbf16>, vector<8x1024xf32> -> vector<8x1024xf32>
    %12 = arith.addf %4, %11 : vector<8x1024xf32>
    %13 = vector.extract_strided_slice %12 {offsets = [0, 0], sizes = [8, 256], strides = [1, 1]} : vector<8x1024xf32> to vector<8x256xf32>
    %14 = arith.negf %13 : vector<8x256xf32>
    %15 = math.exp %14 : vector<8x256xf32>
    %cst_9 = arith.constant 1.000000e+00 : f32
    %16 = vector.broadcast %cst_9 : f32 to vector<8x256xf32>
    %17 = arith.addf %16, %15 : vector<8x256xf32>
    %18 = arith.divf %16, %17 : vector<8x256xf32>
    %19 = vector.extract_strided_slice %12 {offsets = [0, 256], sizes = [8, 256], strides = [1, 1]} : vector<8x1024xf32> to vector<8x256xf32>
    %20 = arith.negf %19 : vector<8x256xf32>
    %21 = math.exp %20 : vector<8x256xf32>
    %cst_10 = arith.constant 1.000000e+00 : f32
    %22 = vector.broadcast %cst_10 : f32 to vector<8x256xf32>
    %23 = arith.addf %22, %21 : vector<8x256xf32>
    %24 = arith.divf %22, %23 : vector<8x256xf32>
    %25 = vector.extract_strided_slice %12 {offsets = [0, 512], sizes = [8, 256], strides = [1, 1]} : vector<8x1024xf32> to vector<8x256xf32>
    %26 = math.tanh %25 : vector<8x256xf32>
    %27 = vector.extract_strided_slice %12 {offsets = [0, 768], sizes = [8, 256], strides = [1, 1]} : vector<8x1024xf32> to vector<8x256xf32>
    %28 = arith.negf %27 : vector<8x256xf32>
    %29 = math.exp %28 : vector<8x256xf32>
    %cst_11 = arith.constant 1.000000e+00 : f32
    %30 = vector.broadcast %cst_11 : f32 to vector<8x256xf32>
    %31 = arith.addf %30, %29 : vector<8x256xf32>
    %32 = arith.divf %30, %31 : vector<8x256xf32>
    %33 = arith.index_cast %arg0 : i32 to index
    %c0_12 = arith.constant 0 : index
    %c0_13 = arith.constant 0 : index
    %34 = vector.load %arg7[%33, %c0_12, %c0_13] : memref<2x8x256xf32, #tpu.memory_space<vmem>>, vector<1x8x256xf32>
    %35 = vector.shape_cast %34 : vector<1x8x256xf32> to vector<8x256xf32>
    %36 = arith.mulf %24, %35 : vector<8x256xf32>
    %37 = arith.mulf %18, %26 : vector<8x256xf32>
    %38 = arith.addf %36, %37 : vector<8x256xf32>
    %39 = math.tanh %38 : vector<8x256xf32>
    %40 = arith.mulf %32, %39 : vector<8x256xf32>
    %41 = arith.index_cast %arg0 : i32 to index
    %c0_14 = arith.constant 0 : index
    %c0_15 = arith.constant 0 : index
    %42 = vector.load %arg7[%41, %c0_14, %c0_15] : memref<2x8x256xf32, #tpu.memory_space<vmem>>, vector<1x8x256xf32>
    %43 = vector.shape_cast %42 : vector<1x8x256xf32> to vector<8x256xf32>
    %44 = vector.shape_cast %38 : vector<8x256xf32> to vector<1x8x256xf32>
    tpu.vector_store %arg7[%41, %c0_14, %c0_15], %44 {strides = array<i32>} : memref<2x8x256xf32, #tpu.memory_space<vmem>>, vector<1x8x256xf32>,
    %45 = arith.index_cast %arg0 : i32 to index
    %c0_16 = arith.constant 0 : index
    %c0_17 = arith.constant 0 : index
    %46 = vector.load %arg6[%45, %c0_16, %c0_17] : memref<2x8x256xf32, #tpu.memory_space<vmem>>, vector<1x8x256xf32>
    %47 = vector.shape_cast %46 : vector<1x8x256xf32> to vector<8x256xf32>
    %48 = vector.shape_cast %40 : vector<8x256xf32> to vector<1x8x256xf32>
    tpu.vector_store %arg6[%45, %c0_16, %c0_17], %48 {strides = array<i32>} : memref<2x8x256xf32, #tpu.memory_space<vmem>>, vector<1x8x256xf32>,
    %c1_i32 = arith.constant 1 : i32
    %49 = arith.subi %c1_i32, %arg0 : i32
    %50 = arith.muli %49, %arg1 : i32
    %c7_i32 = arith.constant 7 : i32
    %51 = arith.subi %c7_i32, %arg1 : i32
    %52 = arith.muli %arg0, %51 : i32
    %53 = arith.addi %50, %52 : i32
    %54 = arith.index_cast %53 : i32 to index
    %c0_18 = arith.constant 0 : index
    %c0_19 = arith.constant 0 : index
    %55 = vector.load %arg4[%54, %c0_18, %c0_19] : memref<8x8x1xf32, #tpu.memory_space<vmem>>, vector<1x8x1xf32>
    %56 = vector.shape_cast %55 : vector<1x8x1xf32> to vector<8x1xf32>
    %57 = vector.broadcast %56 : vector<8x1xf32> to vector<8x256xf32>
    %58 = arith.mulf %40, %57 : vector<8x256xf32>
    %c0_20 = arith.constant 0 : index
    %c0_21 = arith.constant 0 : index
    %c0_22 = arith.constant 0 : index
    %59 = vector.load %arg5[%c0_20, %c0_21, %c0_22] : memref<1x8x256xf32, #tpu.memory_space<vmem>>, vector<1x8x256xf32>
    %60 = vector.shape_cast %59 : vector<1x8x256xf32> to vector<8x256xf32>
    %61 = vector.shape_cast %58 : vector<8x256xf32> to vector<1x8x256xf32>
    tpu.vector_store %arg5[%c0_20, %c0_21, %c0_22], %61 {strides = array<i32>} : memref<1x8x256xf32, #tpu.memory_space<vmem>>, vector<1x8x256xf32>,
    return
  }
  func.func @transform_0(%arg0: i32, %arg1: i32) -> (i32, i32, i32, i32) {
    %c1_i32 = arith.constant 1 : i32
    %0 = arith.subi %c1_i32, %arg0 : i32
    %1 = arith.muli %0, %arg1 : i32
    %c7_i32 = arith.constant 7 : i32
    %2 = arith.subi %c7_i32, %arg1 : i32
    %3 = arith.muli %arg0, %2 : i32
    %4 = arith.addi %1, %3 : i32
    %c0_i32 = arith.constant 0 : i32
    %c0_i32_0 = arith.constant 0 : i32
    %c0_i32_1 = arith.constant 0 : i32
    return %arg0, %4, %c0_i32, %c0_i32_0 : i32, i32, i32, i32
  }
  func.func @transform_1(%arg0: i32, %arg1: i32) -> (i32, i32, i32) {
    %c0_i32 = arith.constant 0 : i32
    %c0_i32_0 = arith.constant 0 : i32
    %c0_i32_1 = arith.constant 0 : i32
    return %arg0, %c0_i32, %c0_i32_0 : i32, i32, i32
  }
  func.func @transform_2(%arg0: i32, %arg1: i32) -> (i32, i32, i32) {
    %c0_i32 = arith.constant 0 : i32
    %c0_i32_0 = arith.constant 0 : i32
    %c0_i32_1 = arith.constant 0 : i32
    %c0_i32_2 = arith.constant 0 : i32
    return %c0_i32, %c0_i32_0, %c0_i32_1 : i32, i32, i32
  }
  func.func @transform_3(%arg0: i32, %arg1: i32) -> (i32, i32, i32) {
    %c1_i32 = arith.constant 1 : i32
    %0 = arith.subi %c1_i32, %arg0 : i32
    %1 = arith.muli %0, %arg1 : i32
    %c7_i32 = arith.constant 7 : i32
    %2 = arith.subi %c7_i32, %arg1 : i32
    %3 = arith.muli %arg0, %2 : i32
    %4 = arith.addi %1, %3 : i32
    %c0_i32 = arith.constant 0 : i32
    %c0_i32_0 = arith.constant 0 : i32
    return %4, %c0_i32, %arg0 : i32, i32, i32
  }
}

</mosaic_0001>

<bundles_post_ra>
// kernel: sent_encoder_forward.5
= control target key start
LH: loop header
LB: loop body
LE: loop exit
PB: predicated region body
PF: predicated region fallthrough
CT: control target
= control target key end

     0   :  { %7 = vsyncpa [#allocation5], 0  ;;  %s2159_s0 = inlined_call_operand.vmem [shape: f32[2,8,8,1024], index: 0, kind: input, shape index: {}]   ;;  %s2160_s1 = inlined_call_operand.hbm [shape: bf16[2,256,1024], index: 1, kind: input, shape index: {}]   ;;  %s2161_s2 = inlined_call_operand.vmem [shape: f32[8,8,512], index: 2, kind: output, shape index: {}]  }
   0x1   :  { %9 = vsyncpa [#allocation5 + $0x1], 0  ;;  %s1832_s9 = smov 0   ;;  %s1834_s10 = smov 0  }
   0x2   :  { %s1836_s11 = smov 0   ;;  %s1838_s12 = smov 0  }
   0x3   :  { %s1840_s13 = smov 0   ;;  %s1842_s14 = smov 0  }
   0x4   :  { %s1844_s15 = smov 0   ;;  %s1846_s16 = smov 0  }
   0x5 LB: > { %s1446_s17 = sadd.s32 4294967295, %s1811_s16   ;;  %s24_s18 = sadd.s32 1, %s1803_s14  ;;  %s1811_s16 = sphi %s1846_s16, %s15_s16   ;;  %s1807_s15 = sphi %s1844_s15, %s2171_s15   ;;  %s1803_s14 = sphi %s1842_s14, %s2170_s14   ;;  %s1799_s13 = sphi %s1840_s13, %s2169_s13   ;;  %s1795_s12 = sphi %s1838_s12, %s2168_s12   ;;  %s1791_s11 = sphi %s1836_s11, %s2167_s11   ;;  %s1787_s10 = sphi %s1834_s10, %s2166_s10   ;;  %s1783_s9 = sphi %s1832_s9, %s2165_s9  }
   0x6   : > { %p25_p0 = scmp.ge.s32.totalorder %s24_s18, 8  ;;  %s27_s19 = sadd.s32 1, %s1807_s15 }
   0x7   : > { %s72_s20 = sadd.s32 1, %s1791_s11  ;;  %p79_p1 = scmp.ne.s32.totalorder %s1791_s11, %s1787_s10 }
   0x8   : > { %s2173_s18 = smov (%p25_p0, %s24_s18), 0  ;;  %s2175_s19 = smov (!%p25_p0, %s27_s19), %s1807_s15 }
   0x9   : > { %p80_p2 = scmp.eq.s32.totalorder %s1811_s16, 0  ;;  %p85_p3 = scmp.ne.s32.totalorder %s1787_s10, %s1783_s9 }
   0xa   : > { %p29_p4 = scmp.ge.s32.totalorder %s2175_s19, 2  ;;  %p86_p5 = scmp.eq.s32.totalorder %s1446_s17, 0 }
   0xb   : > { %p1881_p6 = por %p80_p2, %p79_p1  ;;  %p1615_p8 = scmp.lt.s32.totalorder %s1811_s16, 16 }
   0xc   : > { %s2177_s19 = smov (%p29_p4, %s2175_s19), 0  ;;  %p1887_p7 = por %p86_p5, %p85_p3 }
   0xd   : > { %s69_s23 = ssub.s32 %s1807_s15, %s2177_s19  ;;  %s169_s24 = sand.u32 1, %s1791_s11  }
   0xe   : > { %p70_p9 = scmp.eq.s32.totalorder %s69_s23, 0  ;;  %s1450_s25 = sshll.u32 %s169_s24, 10 }
   0xf   : > { %s1604_s26 = sshll.u32 %s1807_s15, 14  ;;  %s173_s3 = scalar_lea.vmem [#allocation4], %s1450_s25 }
  0x10   : > { %s1897_s27 = scalar_select %p70_p9, %s1791_s11, %s72_s20  }
  0x11   : > { %s1902_s30 = scalar_lea.hbm %s2160_s1, %s1604_s26  ;;  %s180_s4 = sshll.u32 %s173_s3, 4  ;;  %s1910_s4 = int_to_ptr.vmem [resolvable:$true] %s180_s4 }
  0x12   : > { %p1906_p10 = pnand %p1615_p8, %p1881_p6  ;;  %s1912_s6 = scalar_lea.sflag [#allocation5], %s169_s24 }
  0x13   : > { %s1715_s7 = scalar_lea.hbm %s1902_s30, 16384  ;;  %s1720_s17 = scalar_lea.hbm %s2160_s1, 32768 }
  0x14   : > { %p1716_p11 = scmp.ne.s32.totalorder %s1902_s30, %s1715_s7  ;;  %p1717_p12 = pneg %p1906_p10 }
  0x15   : > { %p1721_p1 = scmp.lt.u32.totalorder %s1902_s30, %s2160_s1  ;;  %p1722_p2 = scmp.lt.u32.totalorder %s1720_s17, %s1715_s7 }
  0x16   : > { %p1718_p13 = pnand %p1717_p12, %p1716_p11  ;;  %p1724_p4 = scmp.lt.u32.totalorder %s1715_s7, %s1902_s30 }
  0x17   : > { %p1723_p3 = por %p1722_p2, %p1721_p1 }
  0x18   : > { %p1719_p0 = pneg %p1718_p13 }
  0x19   : > { %p1725_p5 = por %p1724_p4, %p1723_p3 }
  0x1b   : > { %p1726_p6 = pnand %p1725_p5, %p1719_p0 }
  0x1d   : > { %1729 = shalt.err (!%p1726_p6)
}
  0x1e   : > { %s1730_s23 = scalar_lea.vmem %s1910_s4, 16384  ;;  %s1813_s24 = smov [#allocation4]  }
  0x1f   : > { %p1731_p8 = scmp.ne.s32.totalorder %s1910_s4, %s1730_s23  ;;  %s1735_s25 = sshll.u32 %s1813_s24, 4  ;;  %s1736_s25 = int_to_ptr.vmem [resolvable:$false] %s1735_s25 }
  0x20   : > { %s1737_s26 = scalar_lea.vmem %s1736_s25, 32768  ;;  %p1738_p13 = scmp.lt.s32.totalorder %s1910_s4, %s1736_s25 }
  0x21   : > { %p1733_p9 = pnand %p1731_p8, %p1717_p12  ;;  %p1739_p1 = scmp.lt.s32.totalorder %s1737_s26, %s1730_s23 }
  0x23   : > { %p1734_p11 = pneg %p1733_p9  ;;  %p1740_p2 = por %p1739_p1, %p1738_p13 }
  0x25   : > { %p1741_p3 = pnand %p1740_p2, %p1734_p11 }
  0x27   : > { %1744 = shalt.err (!%p1741_p3)
}
  0x28   : > { %s1814_s28 = smov 512   ;;  %s1815_s29 = smov 32  }
  0x29   : > { %1614 = dma.hbm_to_vmem [thread:$0]  (!%p1906_p10), %s1902_s30, 16384, %s1910_s4, %s1912_s6, %s1814_s28, %s1814_s28, %s1815_s29  }
  0x2a   : > { %p1453_p12 = scmp.ge.s32.totalorder %s1811_s16, 1  ;;  %p188_p0 = scmp.lt.s32.totalorder %s1811_s16, 17 }
  0x2c   : > { %p189_p4 = pnand %p1453_p12, %p188_p0 }
  0x2d   : > { %s194_s3 = sand.u32 (!%p189_p4), 1, %s1787_s10  }
  0x2e   : > { %192 = sbr.rel (%p189_p4) target bundleno = 451 (0x1c3), region = 28  ;;  %s1454_s7 = sshll.u32 (!%p189_p4), %s194_s3, 10 }
  0x2f   : > { %s195_s8 = scalar_lea.sflag (!%p189_p4), [#allocation5], %s194_s3  ;;  %s1943_s9 = scalar_lea.vmem (!%p189_p4), [#allocation4], %s1454_s7 }
  0x35   : > { %1778 = dma.done.wait (%p1887_p7), %s195_s8, 16384  }
  0x36   : > { %1780 = vsyncadd (%p1887_p7), %s195_s8, 4294950912  ;;  %s242_s30 = ssub.s32 1, %s1799_s13  ;;  %s244_s4 = ssub.s32 7, %s1795_s12 }
  0x37   : > { %s243_s5 = smul.u32 %s1795_s12, %s242_s30  ;;  %p247_p10 = scmp.lt.s32.totalorder %s1799_s13, 1 }
  0x38   : > { %s245_s6 = smul.u32 %s1799_s13, %s244_s4  ;;  %s1458_s17 = sshll.u32 %s1799_s13, 1 }
  0x39   : > { %s248_s20 = scalar_select %p247_p10, %s1799_s13, 1 }
  0x3a   : > { %s246_s21 = sadd.s32 %s245_s6, %s243_s5  ;;  %p269_p5 = scmp.lt.s32.totalorder %s1458_s17, 3 }
  0x3b   : > { %p249_p6 = scmp.lt.s32.totalorder %s246_s21, 7  ;;  %s1456_s23 = sshll.u32 %s248_s20, 6 }
  0x3c   : > { %s2179_s17 = smov (!%p269_p5, %s1458_s17), 3  ;;  %p1461_p7 = scmp.ne.s32.totalorder %s1795_s12, 0 }
  0x3d   : > { %s2181_s21 = smov (!%p249_p6, %s246_s21), 7  ;;  %s1605_s6 = sshll.u32 (!%p1461_p7), %s1799_s13, 4  ;;  %v1816_v0 = vmov (!%p1461_p7), 0.0  }
  0x3e   : > { %s1455_s22 = sshll.u32 %s2181_s21, 3  ;;  %s1459_s24 = sshll.u32 %s2181_s21, 2 }
  0x3f   : > { %s253_s25 = sadd.s32 %s1456_s23, %s1455_s22  ;;  %s272_s26 = sadd.s32 %s1459_s24, %s2179_s17 }
  0x40   : > { %s1457_s28 = sshll.u32 %s253_s25, 3  ;;  %s1460_s29 = sshll.u32 %s272_s26, 3 }
  0x41   : > { %s1959_s8 = scalar_lea.vmem %s2159_s0, %s1457_s28  ;;  %s1964_s5 = scalar_lea.vmem %s2161_s2, %s1460_s29 }
  0x42   : > { %284 = sbr.rel (%p1461_p7) target bundleno = 73 (0x49), region = 36  ;;  %s287_s20 = scalar_lea.vmem (!%p1461_p7), [#allocation2], %s1605_s6 }
  0x43   : > { %288 = vst [vmem:[%s287_s20] sm:$0xff] (!%p1461_p7), %v1816_v0  ;;  %289 = vst [vmem:[%s287_s20 + $0x8] sm:$0xff] (!%p1461_p7), %v1816_v0  ;;  %s291_s17 = scalar_lea.vmem (!%p1461_p7), [#allocation3], %s1605_s6 }
  0x44   : > { %292 = vst [vmem:[%s291_s17] sm:$0xff] (!%p1461_p7), %v1816_v0  ;;  %293 = vst [vmem:[%s291_s17 + $0x8] sm:$0xff] (!%p1461_p7), %v1816_v0 }
  0x49 PF: > { %v309_v1 = vld [vmem:[%s1943_s9] sm:$0xff]  ;;  %v310_v3 = vld [vmem:[%s1943_s9 + $0x8] sm:$0xff]  ;;  %s1607_s12 = sshll.u32 %s1799_s13, 4 }
  0x4a   : > { %v313_v2 = vld [vmem:[%s1943_s9 + $0x20] sm:$0xff]  ;;  %v314_v5 = vld [vmem:[%s1943_s9 + $0x28] sm:$0xff]  ;;  %s1999_s21 = scalar_lea.vmem [#allocation2], %s1607_s12 }
  0x4b   : > { %v1468_v4 = vcombine.high %v309_v1, %v313_v2  ;;  %v1467_v6 = vcombine.low %v309_v1, %v313_v2  ;;  %v317_v7 = vld [vmem:[%s1943_s9 + $0x40] sm:$0xff]  ;;  %v1470_v9 = vcombine.high %v310_v3, %v314_v5  ;;  %v1469_v10 = vcombine.low %v310_v3, %v314_v5  ;;  %v318_v12 = vld [vmem:[%s1943_s9 + $0x48] sm:$0xff] }
  0x4c   : > { %v321_v8 = vld [vmem:[%s1943_s9 + $0x60] sm:$0xff]  ;;  %v322_v13 = vld [vmem:[%s1943_s9 + $0x68] sm:$0xff] }
  0x4d   : > { %v1476_v11 = vcombine.high %v317_v7, %v321_v8  ;;  %v325_v14 = vld [vmem:[%s1943_s9 + $0x80] sm:$0xff]  ;;  %1077 = vmatprep.subr.bf16.mxu0 %v1468_v4  ;;  %v1478_v15 = vcombine.high %v318_v12, %v322_v13  ;;  %v326_v17 = vld [vmem:[%s1943_s9 + $0x88] sm:$0xff]  ;;  %1118 = vmatprep.subr.bf16.mxu1 %v1470_v9  ;;  %v1475_v19 = vcombine.low %v317_v7, %v321_v8 }
  0x4e   : > { %v329_v16 = vld [vmem:[%s1943_s9 + $0xa0] sm:$0xff]  ;;  %v330_v18 = vld [vmem:[%s1943_s9 + $0xa8] sm:$0xff]  ;;  %1078 = vmatpush1.bf16.msra.mxu0 %v1467_v6  ;;  %1119 = vmatpush1.bf16.msra.mxu1 %v1469_v10  ;;  %v1477_v20 = vcombine.low %v318_v12, %v322_v13 }
  0x4f   : > { %1079 = vmatprep.subr.bf16.mxu0 %v1476_v11  ;;  %v1484_v21 = vcombine.high %v325_v14, %v329_v16  ;;  %1120 = vmatprep.subr.bf16.mxu1 %v1478_v15  ;;  %v1486_v22 = vcombine.high %v326_v17, %v330_v18  ;;  %v333_v23 = vld [vmem:[%s1943_s9 + $0xc0] sm:$0xff]  ;;  %v334_v25 = vld [vmem:[%s1943_s9 + $0xc8] sm:$0xff]  ;;  %v1483_v27 = vcombine.low %v325_v14, %v329_v16 }
  0x50   : > { %v337_v24 = vld [vmem:[%s1943_s9 + $0xe0] sm:$0xff]  ;;  %v338_v26 = vld [vmem:[%s1943_s9 + $0xe8] sm:$0xff]  ;;  %v1485_v28 = vcombine.low %v326_v17, %v330_v18 }
  0x51   : > { %v1492_v29 = vcombine.high %v333_v23, %v337_v24  ;;  %v1494_v30 = vcombine.high %v334_v25, %v338_v26  ;;  %v341_v31 = vld [vmem:[%s1943_s9 + $0x100] sm:$0xff]  ;;  %v342_v33 = vld [vmem:[%s1943_s9 + $0x108] sm:$0xff]  ;;  %v1491_v35 = vcombine.low %v333_v23, %v337_v24  ;;  %v1493_v36 = vcombine.low %v334_v25, %v338_v26 }
  0x52   : > { %1080 = vmatpush1.bf16.msra.mxu0 %v1475_v19  ;;  %1121 = vmatpush1.bf16.msra.mxu1 %v1477_v20  ;;  %v345_v32 = vld [vmem:[%s1943_s9 + $0x120] sm:$0xff]  ;;  %v346_v34 = vld [vmem:[%s1943_s9 + $0x128] sm:$0xff] }
  0x53   : > { %1081 = vmatprep.subr.bf16.mxu0 %v1484_v21  ;;  %1122 = vmatprep.subr.bf16.mxu1 %v1486_v22  ;;  %v1500_v37 = vcombine.high %v341_v31, %v345_v32  ;;  %v1502_v38 = vcombine.high %v342_v33, %v346_v34  ;;  %v349_v39 = vld [vmem:[%s1943_s9 + $0x140] sm:$0xff]  ;;  %v350_v41 = vld [vmem:[%s1943_s9 + $0x148] sm:$0xff]  ;;  %v1499_v43 = vcombine.low %v341_v31, %v345_v32 }
  0x54   : > { %v353_v40 = vld [vmem:[%s1943_s9 + $0x160] sm:$0xff]  ;;  %v354_v42 = vld [vmem:[%s1943_s9 + $0x168] sm:$0xff]  ;;  %v1501_v44 = vcombine.low %v342_v33, %v346_v34 }
  0x55   : > { %v1508_v45 = vcombine.high %v349_v39, %v353_v40  ;;  %v1510_v46 = vcombine.high %v350_v41, %v354_v42  ;;  %v357_v47 = vld [vmem:[%s1943_s9 + $0x180] sm:$0xff]  ;;  %v358_v49 = vld [vmem:[%s1943_s9 + $0x188] sm:$0xff]  ;;  %v1507_v51 = vcombine.low %v349_v39, %v353_v40  ;;  %v1509_v52 = vcombine.low %v350_v41, %v354_v42 }
  0x56   : > { %1082 = vmatpush1.bf16.msra.mxu0 %v1483_v27  ;;  %1123 = vmatpush1.bf16.msra.mxu1 %v1485_v28  ;;  %v361_v48 = vld [vmem:[%s1943_s9 + $0x1a0] sm:$0xff]  ;;  %v362_v50 = vld [vmem:[%s1943_s9 + $0x1a8] sm:$0xff] }
  0x57   : > { %1083 = vmatprep.subr.bf16.mxu0 %v1492_v29  ;;  %1124 = vmatprep.subr.bf16.mxu1 %v1494_v30  ;;  %v1516_v53 = vcombine.high %v357_v47, %v361_v48  ;;  %v306_v54 = vld [vmem:[%s1999_s21 + $0x8] sm:$0xff]  ;;  %v1518_v55 = vcombine.high %v358_v49, %v362_v50  ;;  %v365_v56 = vld [vmem:[%s1943_s9 + $0x1c0] sm:$0xff]  ;;  %v1515_v61 = vcombine.low %v357_v47, %v361_v48 }
  0x58   : > { %v369_v57 = vld [vmem:[%s1943_s9 + $0x1e0] sm:$0xff]  ;;  %v2004_v58 = vpack.c.bf16 %v306_v54, %v306_v54  ;;  %v366_v59 = vld [vmem:[%s1943_s9 + $0x1c8] sm:$0xff]  ;;  %v1517_v62 = vcombine.low %v358_v49, %v362_v50 }
  0x59   : > { %v370_v60 = vld [vmem:[%s1943_s9 + $0x1e8] sm:$0xff]  ;;  %v1524_v63 = vcombine.high %v365_v56, %v369_v57  ;;  %v373_v1 = vld [vmem:[%s1943_s9 + $0x200] sm:$0xff]  ;;  %v1523_v5 = vcombine.low %v365_v56, %v369_v57 }
  0x5a   : > { %1084 = vmatpush1.bf16.msra.mxu0 %v1491_v35  ;;  %1125 = vmatpush1.bf16.msra.mxu1 %v1493_v36  ;;  %v1526_v0 = vcombine.high %v366_v59, %v370_v60  ;;  %v377_v2 = vld [vmem:[%s1943_s9 + $0x220] sm:$0xff]  ;;  %v374_v3 = vld [vmem:[%s1943_s9 + $0x208] sm:$0xff]  ;;  %v1525_v6 = vcombine.low %v366_v59, %v370_v60 }
  0x5b   : > { %1085 = vmatprep.subr.bf16.mxu0 %v1500_v37  ;;  %1126 = vmatprep.subr.bf16.mxu1 %v1502_v38  ;;  %v378_v4 = vld [vmem:[%s1943_s9 + $0x228] sm:$0xff]  ;;  %v1532_v7 = vcombine.high %v373_v1, %v377_v2  ;;  %v381_v9 = vld [vmem:[%s1943_s9 + $0x240] sm:$0xff]  ;;  %v1531_v13 = vcombine.low %v373_v1, %v377_v2  ;;  %v311_v2 = vld [vmem:[%s1943_s9 + $0x10] sm:$0xff] }
  0x5c   : > { %1109 = vmatprep.mubr.bf16.mxu0 %v2004_v58  ;;  %1150 = vmatprep.mubr.bf16.mxu1 %v2004_v58  ;;  %v1534_v8 = vcombine.high %v374_v3, %v378_v4  ;;  %v385_v10 = vld [vmem:[%s1943_s9 + $0x260] sm:$0xff]  ;;  %v382_v11 = vld [vmem:[%s1943_s9 + $0x248] sm:$0xff]  ;;  %v1533_v14 = vcombine.low %v374_v3, %v378_v4  ;;  %v315_v3 = vld [vmem:[%s1943_s9 + $0x30] sm:$0xff] }
  0x5d   : > { %v386_v12 = vld [vmem:[%s1943_s9 + $0x268] sm:$0xff]  ;;  %v1540_v15 = vcombine.high %v381_v9, %v385_v10  ;;  %v389_v17 = vld [vmem:[%s1943_s9 + $0x280] sm:$0xff]  ;;  %v1539_v21 = vcombine.low %v381_v9, %v385_v10  ;;  %v312_v4 = vld [vmem:[%s1943_s9 + $0x18] sm:$0xff]  ;;  %v1472_v9 = vcombine.high %v311_v2, %v315_v3 }
  0x5e   : > { %1086 = vmatpush1.bf16.msra.mxu0 %v1499_v43  ;;  %1127 = vmatpush1.bf16.msra.mxu1 %v1501_v44  ;;  %v1542_v16 = vcombine.high %v382_v11, %v386_v12  ;;  %v393_v18 = vld [vmem:[%s1943_s9 + $0x2a0] sm:$0xff]  ;;  %v390_v19 = vld [vmem:[%s1943_s9 + $0x288] sm:$0xff]  ;;  %v1541_v22 = vcombine.low %v382_v11, %v386_v12  ;;  %v319_v11 = vld [vmem:[%s1943_s9 + $0x50] sm:$0xff] }
  0x5f   : > { %1087 = vmatprep.subr.bf16.mxu0 %v1508_v45  ;;  %1128 = vmatprep.subr.bf16.mxu1 %v1510_v46  ;;  %v394_v20 = vld [vmem:[%s1943_s9 + $0x2a8] sm:$0xff]  ;;  %v1548_v23 = vcombine.high %v389_v17, %v393_v18  ;;  %v397_v25 = vld [vmem:[%s1943_s9 + $0x2c0] sm:$0xff]  ;;  %v1547_v29 = vcombine.low %v389_v17, %v393_v18  ;;  %v323_v12 = vld [vmem:[%s1943_s9 + $0x70] sm:$0xff] }
  0x60   : > { %v1550_v24 = vcombine.high %v390_v19, %v394_v20  ;;  %v401_v26 = vld [vmem:[%s1943_s9 + $0x2e0] sm:$0xff]  ;;  %v398_v27 = vld [vmem:[%s1943_s9 + $0x2c8] sm:$0xff]  ;;  %v1549_v30 = vcombine.low %v390_v19, %v394_v20  ;;  %v1480_v18 = vcombine.high %v319_v11, %v323_v12  ;;  %v327_v20 = vld [vmem:[%s1943_s9 + $0x90] sm:$0xff] }
  0x61   : > { %v402_v28 = vld [vmem:[%s1943_s9 + $0x2e8] sm:$0xff]  ;;  %v1556_v31 = vcombine.high %v397_v25, %v401_v26  ;;  %v405_v33 = vld [vmem:[%s1943_s9 + $0x300] sm:$0xff]  ;;  %v1555_v37 = vcombine.low %v397_v25, %v401_v26 }
  0x62   : > { %1088 = vmatpush1.bf16.msra.mxu0 %v1507_v51  ;;  %1129 = vmatpush1.bf16.msra.mxu1 %v1509_v52  ;;  %v1558_v32 = vcombine.high %v398_v27, %v402_v28  ;;  %v409_v34 = vld [vmem:[%s1943_s9 + $0x320] sm:$0xff]  ;;  %v406_v35 = vld [vmem:[%s1943_s9 + $0x308] sm:$0xff]  ;;  %v1557_v38 = vcombine.low %v398_v27, %v402_v28  ;;  %v335_v28 = vld [vmem:[%s1943_s9 + $0xd0] sm:$0xff] }
  0x63   : > { %1089 = vmatprep.subr.bf16.mxu0 %v1516_v53  ;;  %1130 = vmatprep.subr.bf16.mxu1 %v1518_v55  ;;  %v410_v36 = vld [vmem:[%s1943_s9 + $0x328] sm:$0xff]  ;;  %v1564_v39 = vcombine.high %v405_v33, %v409_v34  ;;  %v413_v41 = vld [vmem:[%s1943_s9 + $0x340] sm:$0xff]  ;;  %v1563_v45 = vcombine.low %v405_v33, %v409_v34 }
  0x64   : > { %v1566_v40 = vcombine.high %v406_v35, %v410_v36  ;;  %v417_v42 = vld [vmem:[%s1943_s9 + $0x360] sm:$0xff]  ;;  %v414_v43 = vld [vmem:[%s1943_s9 + $0x348] sm:$0xff]  ;;  %v1565_v46 = vcombine.low %v406_v35, %v410_v36  ;;  %v343_v36 = vld [vmem:[%s1943_s9 + $0x110] sm:$0xff] }
  0x65   : > { %v418_v44 = vld [vmem:[%s1943_s9 + $0x368] sm:$0xff]  ;;  %v1572_v47 = vcombine.high %v413_v41, %v417_v42  ;;  %v421_v49 = vld [vmem:[%s1943_s9 + $0x380] sm:$0xff]  ;;  %v1571_v53 = vcombine.low %v413_v41, %v417_v42 }
  0x66   : > { %1090 = vmatpush1.bf16.msra.mxu0 %v1515_v61  ;;  %1131 = vmatpush1.bf16.msra.mxu1 %v1517_v62  ;;  %v1574_v48 = vcombine.high %v414_v43, %v418_v44  ;;  %v425_v50 = vld [vmem:[%s1943_s9 + $0x3a0] sm:$0xff]  ;;  %v422_v51 = vld [vmem:[%s1943_s9 + $0x388] sm:$0xff]  ;;  %v1573_v54 = vcombine.low %v414_v43, %v418_v44  ;;  %v351_v43 = vld [vmem:[%s1943_s9 + $0x150] sm:$0xff] }
  0x67   : > { %1091 = vmatprep.subr.bf16.mxu0 %v1524_v63  ;;  %1132 = vmatprep.subr.bf16.mxu1 %v1526_v0  ;;  %v426_v52 = vld [vmem:[%s1943_s9 + $0x3a8] sm:$0xff]  ;;  %v1580_v55 = vcombine.high %v421_v49, %v425_v50  ;;  %v429_v57 = vld [vmem:[%s1943_s9 + $0x3c0] sm:$0xff]  ;;  %v1579_v62 = vcombine.low %v421_v49, %v425_v50  ;;  %v355_v44 = vld [vmem:[%s1943_s9 + $0x170] sm:$0xff] }
  0x68   : > { %v1582_v56 = vcombine.high %v422_v51, %v426_v52  ;;  %v433_v59 = vld [vmem:[%s1943_s9 + $0x3e0] sm:$0xff]  ;;  %v430_v60 = vld [vmem:[%s1943_s9 + $0x3c8] sm:$0xff]  ;;  %v1581_v63 = vcombine.low %v422_v51, %v426_v52  ;;  %v1512_v49 = vcombine.high %v351_v43, %v355_v44  ;;  %v359_v51 = vld [vmem:[%s1943_s9 + $0x190] sm:$0xff] }
  0x69   : > { %v434_v61 = vld [vmem:[%s1943_s9 + $0x3e8] sm:$0xff]  ;;  %v1588_v0 = vcombine.high %v429_v57, %v433_v59  ;;  %v363_v52 = vld [vmem:[%s1943_s9 + $0x1b0] sm:$0xff] }
  0x6a   : > { %1092 = vmatpush1.bf16.msra.mxu0 %v1523_v5  ;;  %1133 = vmatpush1.bf16.msra.mxu1 %v1525_v6  ;;  %v1590_v1 = vcombine.high %v430_v60, %v434_v61  ;;  %v316_v5 = vld [vmem:[%s1943_s9 + $0x38] sm:$0xff]  ;;  %v1587_v6 = vcombine.low %v429_v57, %v433_v59  ;;  %v1520_v57 = vcombine.high %v359_v51, %v363_v52 }
  0x6b   : > { %1093 = vmatprep.subr.bf16.mxu0 %v1532_v7  ;;  %1134 = vmatprep.subr.bf16.mxu1 %v1534_v8  ;;  %v305_v7 = vld [vmem:[%s1999_s21] sm:$0xff]  ;;  %v1589_v8 = vcombine.low %v430_v60, %v434_v61  ;;  %v1474_v10 = vcombine.high %v312_v4, %v316_v5  ;;  %v1473_v17 = vcombine.low %v312_v4, %v316_v5  ;;  %v367_v60 = vld [vmem:[%s1943_s9 + $0x1d0] sm:$0xff] }
  0x6c   : > { %v371_v61 = vld [vmem:[%s1943_s9 + $0x1f0] sm:$0xff] }
  0x6d   : > { %v375_v4 = vld [vmem:[%s1943_s9 + $0x210] sm:$0xff] }
  0x6e   : > { %1094 = vmatpush1.bf16.msra.mxu0 %v1531_v13  ;;  %1135 = vmatpush1.bf16.msra.mxu1 %v1533_v14  ;;  %v2049_v13 = vpack.c.bf16 %v305_v7, %v305_v7  ;;  %v320_v14 = vld [vmem:[%s1943_s9 + $0x58] sm:$0xff]  ;;  %v379_v5 = vld [vmem:[%s1943_s9 + $0x230] sm:$0xff] }
  0x6f   : > { %1095 = vmatprep.subr.bf16.mxu0 %v1540_v15  ;;  %1136 = vmatprep.subr.bf16.mxu1 %v1542_v16  ;;  %v324_v15 = vld [vmem:[%s1943_s9 + $0x78] sm:$0xff]  ;;  %v1471_v16 = vcombine.low %v311_v2, %v315_v3  ;;  %v1528_v2 = vcombine.high %v367_v60, %v371_v61 }
  0x70   : > { %v1482_v19 = vcombine.high %v320_v14, %v324_v15  ;;  %v1481_v25 = vcombine.low %v320_v14, %v324_v15  ;;  %v380_v7 = vld [vmem:[%s1943_s9 + $0x238] sm:$0xff]  ;;  %v387_v14 = vld [vmem:[%s1943_s9 + $0x270] sm:$0xff] }
  0x71   : > { %v384_v15 = vld [vmem:[%s1943_s9 + $0x258] sm:$0xff] }
  0x72   : > { %1096 = vmatpush1.bf16.msra.mxu0 %v1539_v21  ;;  %1137 = vmatpush1.bf16.msra.mxu1 %v1541_v22  ;;  %v331_v21 = vld [vmem:[%s1943_s9 + $0xb0] sm:$0xff]  ;;  %v328_v22 = vld [vmem:[%s1943_s9 + $0x98] sm:$0xff] }
  0x73   : > { %1097 = vmatprep.subr.bf16.mxu0 %v1548_v23  ;;  %1138 = vmatprep.subr.bf16.mxu1 %v1550_v24  ;;  %v332_v23 = vld [vmem:[%s1943_s9 + $0xb8] sm:$0xff]  ;;  %v1479_v24 = vcombine.low %v319_v11, %v323_v12  ;;  %v1488_v26 = vcombine.high %v327_v20, %v331_v21  ;;  %v383_v12 = vld [vmem:[%s1943_s9 + $0x250] sm:$0xff] }
  0x74   : > { %v1490_v27 = vcombine.high %v328_v22, %v332_v23  ;;  %v1489_v33 = vcombine.low %v328_v22, %v332_v23  ;;  %v395_v22 = vld [vmem:[%s1943_s9 + $0x2b0] sm:$0xff]  ;;  %v392_v23 = vld [vmem:[%s1943_s9 + $0x298] sm:$0xff] }
  0x76   : > { %1098 = vmatpush1.bf16.msra.mxu0 %v1547_v29  ;;  %1139 = vmatpush1.bf16.msra.mxu1 %v1549_v30  ;;  %v339_v29 = vld [vmem:[%s1943_s9 + $0xf0] sm:$0xff]  ;;  %v336_v30 = vld [vmem:[%s1943_s9 + $0xd8] sm:$0xff] }
  0x77   : > { %1099 = vmatprep.subr.bf16.mxu0 %v1556_v31  ;;  %1140 = vmatprep.subr.bf16.mxu1 %v1558_v32  ;;  %v340_v31 = vld [vmem:[%s1943_s9 + $0xf8] sm:$0xff]  ;;  %v1487_v32 = vcombine.low %v327_v20, %v331_v21  ;;  %v1496_v34 = vcombine.high %v335_v28, %v339_v29  ;;  %v391_v21 = vld [vmem:[%s1943_s9 + $0x290] sm:$0xff] }
  0x78   : > { %v1498_v35 = vcombine.high %v336_v30, %v340_v31 }
  0x7a   : > { %1100 = vmatpush1.bf16.msra.mxu0 %v1555_v37  ;;  %1141 = vmatpush1.bf16.msra.mxu1 %v1557_v38  ;;  %v347_v37 = vld [vmem:[%s1943_s9 + $0x130] sm:$0xff]  ;;  %v344_v38 = vld [vmem:[%s1943_s9 + $0x118] sm:$0xff] }
  0x7b   : > { %1101 = vmatprep.subr.bf16.mxu0 %v1564_v39  ;;  %1142 = vmatprep.subr.bf16.mxu1 %v1566_v40  ;;  %v348_v39 = vld [vmem:[%s1943_s9 + $0x138] sm:$0xff]  ;;  %v1495_v40 = vcombine.low %v335_v28, %v339_v29  ;;  %v1504_v41 = vcombine.high %v343_v36, %v347_v37  ;;  %v399_v29 = vld [vmem:[%s1943_s9 + $0x2d0] sm:$0xff] }
  0x7c   : > { %v1506_v42 = vcombine.high %v344_v38, %v348_v39 }
  0x7e   : > { %1102 = vmatpush1.bf16.msra.mxu0 %v1563_v45  ;;  %1143 = vmatpush1.bf16.msra.mxu1 %v1565_v46  ;;  %v352_v45 = vld [vmem:[%s1943_s9 + $0x158] sm:$0xff] }
  0x7f   : > { %1103 = vmatprep.subr.bf16.mxu0 %v1572_v47  ;;  %1144 = vmatprep.subr.bf16.mxu1 %v1574_v48  ;;  %v356_v46 = vld [vmem:[%s1943_s9 + $0x178] sm:$0xff]  ;;  %v1503_v47 = vcombine.low %v343_v36, %v347_v37  ;;  %v1505_v48 = vcombine.low %v344_v38, %v348_v39  ;;  %v407_v37 = vld [vmem:[%s1943_s9 + $0x310] sm:$0xff] }
  0x80   : > { %v1514_v50 = vcombine.high %v352_v45, %v356_v46  ;;  %v411_v38 = vld [vmem:[%s1943_s9 + $0x330] sm:$0xff]  ;;  %v408_v39 = vld [vmem:[%s1943_s9 + $0x318] sm:$0xff] }
  0x82   : > { %1104 = vmatpush1.bf16.msra.mxu0 %v1571_v53  ;;  %1145 = vmatpush1.bf16.msra.mxu1 %v1573_v54  ;;  %v360_v53 = vld [vmem:[%s1943_s9 + $0x198] sm:$0xff] }
  0x83   : > { %1105 = vmatprep.subr.bf16.mxu0 %v1580_v55  ;;  %1146 = vmatprep.subr.bf16.mxu1 %v1582_v56  ;;  %v364_v54 = vld [vmem:[%s1943_s9 + $0x1b8] sm:$0xff]  ;;  %v1511_v55 = vcombine.low %v351_v43, %v355_v44  ;;  %v1513_v56 = vcombine.low %v352_v45, %v356_v46  ;;  %v415_v44 = vld [vmem:[%s1943_s9 + $0x350] sm:$0xff] }
  0x84   : > { %v1522_v59 = vcombine.high %v360_v53, %v364_v54  ;;  %v419_v45 = vld [vmem:[%s1943_s9 + $0x370] sm:$0xff]  ;;  %v416_v46 = vld [vmem:[%s1943_s9 + $0x358] sm:$0xff] }
  0x86   : > { %1106 = vmatpush1.bf16.msra.mxu0 %v1579_v62  ;;  %1147 = vmatpush1.bf16.msra.mxu1 %v1581_v63  ;;  %v368_v62 = vld [vmem:[%s1943_s9 + $0x1d8] sm:$0xff] }
  0x87   : > { %1107 = vmatprep.subr.bf16.mxu0 %v1588_v0  ;;  %1148 = vmatprep.subr.bf16.mxu1 %v1590_v1  ;;  %v372_v63 = vld [vmem:[%s1943_s9 + $0x1f8] sm:$0xff]  ;;  %v1519_v0 = vcombine.low %v359_v51, %v363_v52  ;;  %v1521_v1 = vcombine.low %v360_v53, %v364_v54  ;;  %v423_v52 = vld [vmem:[%s1943_s9 + $0x390] sm:$0xff] }
  0x88   : > { %v1530_v3 = vcombine.high %v368_v62, %v372_v63  ;;  %v427_v53 = vld [vmem:[%s1943_s9 + $0x3b0] sm:$0xff]  ;;  %v424_v54 = vld [vmem:[%s1943_s9 + $0x398] sm:$0xff] }
  0x8a   : > { %1108 = vmatpush1.bf16.msra.mxu0 %v1587_v6  ;;  %1149 = vmatpush1.bf16.msra.mxu1 %v1589_v8  ;;  %v376_v6 = vld [vmem:[%s1943_s9 + $0x218] sm:$0xff]  ;;  %v1527_v8 = vcombine.low %v367_v60, %v371_v61  ;;  %v431_v61 = vld [vmem:[%s1943_s9 + $0x3d0] sm:$0xff] }
  0x8b   : > { %1159 = vmatprep.subr.bf16.mxu0 %v1472_v9  ;;  %1200 = vmatprep.subr.bf16.mxu1 %v1474_v10  ;;  %v1529_v9 = vcombine.low %v368_v62, %v372_v63  ;;  %v1536_v10 = vcombine.high %v375_v4, %v379_v5  ;;  %v1538_v11 = vcombine.high %v376_v6, %v380_v7  ;;  %v435_v62 = vld [vmem:[%s1943_s9 + $0x3f0] sm:$0xff]  ;;  %v432_v63 = vld [vmem:[%s1943_s9 + $0x3d8] sm:$0xff] }
  0x8d   : > { %1110 = vmatmul.mubr.bf16.vlgmr.msra.gmra.mrb[0].mxu0 %v2049_v13  ;;  %1151 = vmatmul.mubr.bf16.vlgmr.msra.gmra.mrb[0].mxu1 %v2049_v13 }
  0x8e   : > { %1160 = vmatpush1.bf16.msra.mxu0 %v1471_v16  ;;  %1201 = vmatpush1.bf16.msra.mxu1 %v1473_v17  ;;  %v388_v16 = vld [vmem:[%s1943_s9 + $0x278] sm:$0xff]  ;;  %v1535_v17 = vcombine.low %v375_v4, %v379_v5  ;;  %v1591_v5 = vcombine.low %v431_v61, %v435_v62 }
  0x8f   : > { %1161 = vmatprep.subr.bf16.mxu0 %v1480_v18  ;;  %1202 = vmatprep.subr.bf16.mxu1 %v1482_v19  ;;  %v1537_v18 = vcombine.low %v376_v6, %v380_v7  ;;  %v1544_v19 = vcombine.high %v383_v12, %v387_v14  ;;  %v1546_v20 = vcombine.high %v384_v15, %v388_v16  ;;  %v296_v7 = vld [vmem:[%s1959_s8 + $0x10] sm:$0xff] }
  0x90   : > { %1191 = vmatprep.mubr.bf16.mxu0 %v2004_v58  ;;  %1232 = vmatprep.mubr.bf16.mxu1 %v2004_v58  ;;  %v1497_v58 = vcombine.low %v336_v30, %v340_v31  ;;  %v403_v30 = vld [vmem:[%s1943_s9 + $0x2f0] sm:$0xff]  ;;  %v400_v31 = vld [vmem:[%s1943_s9 + $0x2d8] sm:$0xff] }
  0x92   : > { %1162 = vmatpush1.bf16.msra.mxu0 %v1479_v24  ;;  %1203 = vmatpush1.bf16.msra.mxu1 %v1481_v25  ;;  %v396_v24 = vld [vmem:[%s1943_s9 + $0x2b8] sm:$0xff]  ;;  %v1543_v25 = vcombine.low %v383_v12, %v387_v14 }
  0x93   : > { %1163 = vmatprep.subr.bf16.mxu0 %v1488_v26  ;;  %1204 = vmatprep.subr.bf16.mxu1 %v1490_v27  ;;  %v1545_v26 = vcombine.low %v384_v15, %v388_v16  ;;  %v1552_v27 = vcombine.high %v391_v21, %v395_v22  ;;  %v1554_v28 = vcombine.high %v392_v23, %v396_v24 }
  0x96   : > { %1164 = vmatpush1.bf16.msra.mxu0 %v1487_v32  ;;  %1205 = vmatpush1.bf16.msra.mxu1 %v1489_v33  ;;  %v404_v32 = vld [vmem:[%s1943_s9 + $0x2f8] sm:$0xff]  ;;  %v1551_v33 = vcombine.low %v391_v21, %v395_v22 }
  0x97   : > { %1165 = vmatprep.subr.bf16.mxu0 %v1496_v34  ;;  %1206 = vmatprep.subr.bf16.mxu1 %v1498_v35  ;;  %v1553_v34 = vcombine.low %v392_v23, %v396_v24  ;;  %v1560_v35 = vcombine.high %v399_v29, %v403_v30  ;;  %v1562_v36 = vcombine.high %v400_v31, %v404_v32 }
  0x9a   : > { %1166 = vmatpush1.bf16.msra.mxu0 %v1495_v40  ;;  %1207 = vmatpush1.bf16.msra.mxu1 %v1497_v58  ;;  %v412_v40 = vld [vmem:[%s1943_s9 + $0x338] sm:$0xff]  ;;  %v1559_v58 = vcombine.low %v399_v29, %v403_v30 }
  0x9b   : > { %1167 = vmatprep.subr.bf16.mxu0 %v1504_v41  ;;  %1208 = vmatprep.subr.bf16.mxu1 %v1506_v42  ;;  %v1561_v41 = vcombine.low %v400_v31, %v404_v32  ;;  %v1568_v42 = vcombine.high %v407_v37, %v411_v38  ;;  %v1570_v43 = vcombine.high %v408_v39, %v412_v40  ;;  %v294_v31 = vld [vmem:[%s1959_s8] sm:$0xff]  ;;  %v295_v32 = vld [vmem:[%s1959_s8 + $0x8] sm:$0xff] }
  0x9e   : > { %1168 = vmatpush1.bf16.msra.mxu0 %v1503_v47  ;;  %1209 = vmatpush1.bf16.msra.mxu1 %v1505_v48  ;;  %v420_v47 = vld [vmem:[%s1943_s9 + $0x378] sm:$0xff]  ;;  %v1567_v48 = vcombine.low %v407_v37, %v411_v38 }
  0x9f   : > { %1169 = vmatprep.subr.bf16.mxu0 %v1512_v49  ;;  %1210 = vmatprep.subr.bf16.mxu1 %v1514_v50  ;;  %v1569_v49 = vcombine.low %v408_v39, %v412_v40  ;;  %v1576_v50 = vcombine.high %v415_v44, %v419_v45  ;;  %v1578_v51 = vcombine.high %v416_v46, %v420_v47 }
  0xa2   : > { %1170 = vmatpush1.bf16.msra.mxu0 %v1511_v55  ;;  %1211 = vmatpush1.bf16.msra.mxu1 %v1513_v56  ;;  %v428_v55 = vld [vmem:[%s1943_s9 + $0x3b8] sm:$0xff]  ;;  %v1575_v56 = vcombine.low %v415_v44, %v419_v45 }
  0xa3   : > { %1171 = vmatprep.subr.bf16.mxu0 %v1520_v57  ;;  %1212 = vmatprep.subr.bf16.mxu1 %v1522_v59  ;;  %v1577_v57 = vcombine.low %v416_v46, %v420_v47  ;;  %v1584_v59 = vcombine.high %v423_v52, %v427_v53  ;;  %v1586_v60 = vcombine.high %v424_v54, %v428_v55  ;;  %v301_v44 = vld [vmem:[%s1959_s8 + $0x38] sm:$0xff] }
  0xa6   : > { %1172 = vmatpush1.bf16.msra.mxu0 %v1519_v0  ;;  %1213 = vmatpush1.bf16.msra.mxu1 %v1521_v1  ;;  %v436_v0 = vld [vmem:[%s1943_s9 + $0x3f8] sm:$0xff]  ;;  %v1583_v1 = vcombine.low %v423_v52, %v427_v53  ;;  %s2119_s9 = scalar_lea.vmem [#allocation3], %s1607_s12 }
  0xa7   : > { %1173 = vmatprep.subr.bf16.mxu0 %v1528_v2  ;;  %1214 = vmatprep.subr.bf16.mxu1 %v1530_v3  ;;  %v1585_v2 = vcombine.low %v424_v54, %v428_v55  ;;  %v1592_v3 = vcombine.high %v431_v61, %v435_v62  ;;  %v1594_v4 = vcombine.high %v432_v63, %v436_v0 }
  0xa8   : > { %v1593_v6 = vcombine.low %v432_v63, %v436_v0 }
  0xaa   : > { %1174 = vmatpush1.bf16.msra.mxu0 %v1527_v8  ;;  %1215 = vmatpush1.bf16.msra.mxu1 %v1529_v9  ;;  %v297_v9 = vld [vmem:[%s1959_s8 + $0x18] sm:$0xff] }
  0xab   : > { %1175 = vmatprep.subr.bf16.mxu0 %v1536_v10  ;;  %1216 = vmatprep.subr.bf16.mxu1 %v1538_v11 }
  0xae   : > { %1176 = vmatpush1.bf16.msra.mxu0 %v1535_v17  ;;  %1217 = vmatpush1.bf16.msra.mxu1 %v1537_v18 }
  0xaf   : > { %1177 = vmatprep.subr.bf16.mxu0 %v1544_v19  ;;  %1218 = vmatprep.subr.bf16.mxu1 %v1546_v20 }
  0xb2   : > { %1178 = vmatpush1.bf16.msra.mxu0 %v1543_v25  ;;  %1219 = vmatpush1.bf16.msra.mxu1 %v1545_v26  ;;  %v1289_v25 = vld [vmem:[%s2119_s9] sm:$0xff] }
  0xb3   : > { %1179 = vmatprep.subr.bf16.mxu0 %v1552_v27  ;;  %1220 = vmatprep.subr.bf16.mxu1 %v1554_v28  ;;  %v1290_v27 = vld [vmem:[%s2119_s9 + $0x8] sm:$0xff] }
  0xb6   : > { %1180 = vmatpush1.bf16.msra.mxu0 %v1551_v33  ;;  %1221 = vmatpush1.bf16.msra.mxu1 %v1553_v34 }
  0xb7   : > { %1181 = vmatprep.subr.bf16.mxu0 %v1560_v35  ;;  %1222 = vmatprep.subr.bf16.mxu1 %v1562_v36 }
  0xba   : > { %1182 = vmatpush1.bf16.msra.mxu0 %v1559_v58  ;;  %1223 = vmatpush1.bf16.msra.mxu1 %v1561_v41  ;;  %v298_v58 = vld [vmem:[%s1959_s8 + $0x20] sm:$0xff]  ;;  %v300_v41 = vld [vmem:[%s1959_s8 + $0x30] sm:$0xff] }
  0xbb   : > { %1183 = vmatprep.subr.bf16.mxu0 %v1568_v42  ;;  %1224 = vmatprep.subr.bf16.mxu1 %v1570_v43  ;;  %v299_v42 = vld [vmem:[%s1959_s8 + $0x28] sm:$0xff] }
  0xbe   : > { %1184 = vmatpush1.bf16.msra.mxu0 %v1567_v48  ;;  %1225 = vmatpush1.bf16.msra.mxu1 %v1569_v49 }
  0xbf   : > { %1185 = vmatprep.subr.bf16.mxu0 %v1576_v50  ;;  %1226 = vmatprep.subr.bf16.mxu1 %v1578_v51 }
  0xc2   : > { %1186 = vmatpush1.bf16.msra.mxu0 %v1575_v56  ;;  %1227 = vmatpush1.bf16.msra.mxu1 %v1577_v57 }
  0xc3   : > { %1187 = vmatprep.subr.bf16.mxu0 %v1584_v59  ;;  %1228 = vmatprep.subr.bf16.mxu1 %v1586_v60 }
  0xc6   : > { %1188 = vmatpush1.bf16.msra.mxu0 %v1583_v1  ;;  %1229 = vmatpush1.bf16.msra.mxu1 %v1585_v2 }
  0xc7   : > { %1189 = vmatprep.subr.bf16.mxu0 %v1592_v3  ;;  %1230 = vmatprep.subr.bf16.mxu1 %v1594_v4 }
  0xca   : > { %1190 = vmatpush1.bf16.msra.mxu0 %v1591_v5  ;;  %1231 = vmatpush1.bf16.msra.mxu1 %v1593_v6 }
  0xcd   : > { %1192 = vmatmul.mubr.bf16.vlgmr.msra.gmra.mrb[4].mxu0 %v2049_v13  ;;  %1233 = vmatmul.mubr.bf16.vlgmr.msra.gmra.mrb[4].mxu1 %v2049_v13 }
 0x160   : > { %v1111_v8 = vpop.f32.mrb[0].mxu0  ;;  %v1152_v10 = vpop.f32.mrb[0].mxu1 }
 0x161   : > { %v1113_v11 = vpop.f32.mrb[1].mxu0  ;;  %v1243_v12 = vadd.f32 %v1152_v10, %v296_v7  ;;  %v1154_v14 = vpop.f32.mrb[1].mxu1  ;;  %v1241_v33 = vadd.f32 %v1111_v8, %v294_v31 }
 0x162   : > { %v1115_v15 = vpop.f32.mrb[2].mxu0  ;;  %v1244_v16 = vadd.f32 %v1154_v14, %v297_v9  ;;  %v1156_v17 = vpop.f32.mrb[2].mxu1  ;;  %v1242_v34 = vadd.f32 %v1113_v11, %v295_v32 }
 0x163   : > { %v1116_v18 = vpop.f32.mrb[3].mxu0  ;;  %v1597_v19 = vmul.f32 -1.442695, %v1243_v12  ;;  %v1157_v20 = vpop.f32.mrb[3].mxu1  ;;  %v1595_v35 = vmul.f32 -1.442695, %v1241_v33 }
 0x164   : > { %v1598_v21 = vmul.f32 -1.442695, %v1244_v16  ;;  %v1596_v36 = vmul.f32 -1.442695, %v1242_v34 }
 0x165   : > { %1683 = vpow2.f32 %v1597_v19 }
 0x166   : > { %1685 = vpow2.f32 %v1598_v21 }
 0x16f   : > { %v1684_v13 = vpop.eup %1683 }
 0x170   : > { %v1267_v22 = vadd.f32 1.0, %v1684_v13  ;;  %v1686_v23 = vpop.eup %1685 }
 0x171   : > { %v1268_v24 = vadd.f32 1.0, %v1686_v23 }
 0x172   : > { %1687 = vrcp.f32 %v1267_v22 }
 0x173   : > { %1689 = vrcp.f32 %v1268_v24 }
 0x174   : > { %1691 = vpow2.f32 %v1595_v35 }
 0x175   : > { %1693 = vpow2.f32 %v1596_v36 }
 0x17c   : > { %v1688_v26 = vpop.eup %1687 }
 0x17d   : > { %v1291_v28 = vmul.f32 %v1688_v26, %v1289_v25  ;;  %v1690_v29 = vpop.eup %1689 }
 0x17e   : > { %v1292_v30 = vmul.f32 %v1690_v29, %v1290_v27  ;;  %v1692_v37 = vpop.eup %1691 }
 0x17f   : > { %v1694_v38 = vpop.eup %1693  ;;  %v1255_v39 = vadd.f32 1.0, %v1692_v37 }
 0x180   : > { %v1256_v40 = vadd.f32 1.0, %v1694_v38 }
 0x181   : > { %1695 = vrcp.f32 %v1255_v39 }
 0x182   : > { %1697 = vrcp.f32 %v1256_v40 }
 0x18b   : > { %v1696_v59 = vpop.eup %1695 }
 0x18c   : > { %v1698_v60 = vpop.eup %1697 }
 0x1a0   : > { %v1193_v43 = vpop.f32.mrb[4].mxu0  ;;  %v1234_v46 = vpop.f32.mrb[4].mxu1 }
 0x1a1   : > { %v1245_v45 = vadd.f32 %v1193_v43, %v298_v58  ;;  %v1195_v47 = vpop.f32.mrb[5].mxu0  ;;  %v1247_v48 = vadd.f32 %v1234_v46, %v300_v41  ;;  %v1236_v50 = vpop.f32.mrb[5].mxu1 }
 0x1a2   : > { %v1246_v49 = vadd.f32 %v1195_v47, %v299_v42  ;;  %v1197_v51 = vpop.f32.mrb[6].mxu0  ;;  %v1248_v52 = vadd.f32 %v1236_v50, %v301_v44  ;;  %v1238_v53 = vpop.f32.mrb[6].mxu1 }
 0x1a3   : > { %1699 = vtanh.f32 %v1245_v45  ;;  %v1198_v54 = vpop.f32.mrb[7].mxu0  ;;  %v1599_v55 = vmul.f32 -1.442695, %v1247_v48  ;;  %v1239_v56 = vpop.f32.mrb[7].mxu1 }
 0x1a4   : > { %1701 = vtanh.f32 %v1246_v49  ;;  %v1600_v57 = vmul.f32 -1.442695, %v1248_v52 }
 0x1a5   : > { %1703 = vpow2.f32 %v1599_v55 }
 0x1a6   : > { %1705 = vpow2.f32 %v1600_v57 }
 0x1ad   : > { %v1700_v61 = vpop.eup %1699 }
 0x1ae   : > { %v1702_v62 = vpop.eup %1701  ;;  %v1293_v63 = vmul.f32 %v1700_v61, %v1696_v59 }
 0x1af   : > { %v1294_v0 = vmul.f32 %v1702_v62, %v1698_v60  ;;  %v1704_v1 = vpop.eup %1703 }
 0x1b0   : > { %v1295_v2 = vadd.f32 %v1293_v63, %v1291_v28  ;;  %v1706_v3 = vpop.eup %1705  ;;  %v1281_v4 = vadd.f32 1.0, %v1704_v1 }
 0x1b1   : > { %v1296_v5 = vadd.f32 %v1294_v0, %v1292_v30  ;;  %v1282_v6 = vadd.f32 1.0, %v1706_v3 }
 0x1b2   : > { %1707 = vtanh.f32 %v1295_v2  ;;  %1301 = vst [vmem:[%s2119_s9] sm:$0xff] %v1295_v2 }
 0x1b3   : > { %1709 = vrcp.f32 %v1281_v4  ;;  %1302 = vst [vmem:[%s2119_s9 + $0x8] sm:$0xff] %v1296_v5 }
 0x1b4   : > { %1711 = vtanh.f32 %v1296_v5 }
 0x1b5   : > { %1713 = vrcp.f32 %v1282_v6 }
 0x1bc   : > { %v1708_v7 = vpop.eup %1707 }
 0x1bd   : > { %v1710_v8 = vpop.eup %1709 }
 0x1be   : > { %v1712_v9 = vpop.eup %1711  ;;  %v1299_v10 = vmul.f32 %v1710_v8, %v1708_v7 }
 0x1bf   : > { %v1714_v11 = vpop.eup %1713 }
 0x1c0   : > { %1303 = vst [vmem:[%s1999_s21] sm:$0xff] %v1299_v10  ;;  %1305 = vst [vmem:[%s1964_s5] sm:$0xff] %v1299_v10  ;;  %v1300_v12 = vmul.f32 %v1714_v11, %v1712_v9 }
 0x1c2   : > { %1304 = vst [vmem:[%s1999_s21 + $0x8] sm:$0xff] %v1300_v12  ;;  %1306 = vst [vmem:[%s1964_s5 + $0x8] sm:$0xff] %v1300_v12 }
 0x1c3 PF: > { %s15_s16 = sadd.s32 1, %s1811_s16   ;;  %s2165_s9 = smov %s1787_s10 }
 0x1c4   : > { %p12_p8 = scmp.ge.s32.totalorder %s15_s16, 18   ;;  %s2166_s10 = smov %s1791_s11 }
 0x1c5   : > { %s2167_s11 = smov %s1897_s27  ;;  %s2168_s12 = smov %s1803_s14 }
 0x1c6   : > { %s2169_s13 = smov %s1807_s15  ;;  %s2170_s14 = smov %s2173_s18 }
 0x1c7   : > { %s2171_s15 = smov %s2177_s19  ;;  %14 = sbr.rel (!%p12_p8) target bundleno = 5 (0x5), region = 79 }
 0x1ce   :  { %1352 = vsyncpa [#allocation5], 1 }
 0x1cf   :  { %1354 = vsyncpa [#allocation5 + $0x1], 1 }

// kernel: sent_encoder_forward.7
= control target key start
LH: loop header
LB: loop body
LE: loop exit
PB: predicated region body
PF: predicated region fallthrough
CT: control target
= control target key end

     0   :  { %s1759_s12 = smov 0   ;;  %s1761_s13 = smov 0   ;;  %s2007_s0 = inlined_call_operand.vmem [shape: f32[2,8,8,1024], index: 0, kind: input, shape index: {}]   ;;  %s2008_s1 = inlined_call_operand.vmem [shape: bf16[2,256,1024], index: 1, kind: input, shape index: {}]   ;;  %s2009_s2 = inlined_call_operand.vmem [shape: f32[8,8,1], index: 2, kind: input, shape index: {}]   ;;  %s2010_s3 = inlined_call_operand.vmem [shape: f32[8,8,512], index: 3, kind: output, shape index: {}]  }
   0x1   :  { %s1763_s14 = smov 0   ;;  %s1765_s15 = smov 0  }
   0x2   :  { %s1767_s16 = smov 0  }
   0x3 LB: > { %s22_s17 = sadd.s32 1, %s1727_s14  ;;  %s25_s18 = sadd.s32 1, %s1731_s15  ;;  %s1735_s16 = sphi %s1767_s16, %s13_s16   ;;  %s1731_s15 = sphi %s1765_s15, %s2014_s15   ;;  %s1727_s14 = sphi %s1763_s14, %s2013_s14   ;;  %s1723_s13 = sphi %s1761_s13, %s2012_s13   ;;  %s1719_s12 = sphi %s1759_s12, %s2011_s12  }
   0x4   : > { %p23_p0 = scmp.ge.s32.totalorder %s22_s17, 8  ;;  %p1464_p1 = scmp.ge.s32.totalorder %s1735_s16, 1 }
   0x5   : > { %p197_p2 = scmp.lt.s32.totalorder %s1735_s16, 17 }
   0x6   : > { %s2016_s17 = smov (%p23_p0, %s22_s17), 0  ;;  %s2018_s18 = smov (!%p23_p0, %s25_s18), %s1731_s15 }
   0x7   : > { %p198_p3 = pnand %p1464_p1, %p197_p2  ;;  %p27_p4 = scmp.ge.s32.totalorder %s2018_s18, 2 }
   0x8   : > { %s244_s19 = ssub.s32 (!%p198_p3), 1, %s1723_s13  ;;  %s246_s20 = ssub.s32 (!%p198_p3), 7, %s1719_s12 }
   0x9   : > { %s2020_s18 = smov (%p27_p4, %s2018_s18), 0  ;;  %201 = sbr.rel (%p198_p3) target bundleno = 410 (0x19a), region = 32 }
   0xa   : > { %s245_s21 = smul.u32 (!%p198_p3), %s1719_s12, %s244_s19  ;;  %p249_p5 = scmp.lt.s32.totalorder (!%p198_p3), %s1723_s13, 1 }
   0xb   : > { %s247_s22 = smul.u32 (!%p198_p3), %s1723_s13, %s246_s20  ;;  %s1470_s25 = sshll.u32 (!%p198_p3), %s1723_s13, 1 }
   0xc   : > { %p276_p7 = scmp.lt.s32.totalorder (!%p198_p3), %s1470_s25, 3  ;;  %p1473_p8 = scmp.ne.s32.totalorder (!%p198_p3), %s1719_s12, 0 }
   0xd   : > { %s1799_s24 = sadd.s32 (!%p198_p3), %s247_s22, %s245_s21 }
   0xe   : > { %p251_p6 = scmp.lt.s32.totalorder (!%p198_p3), %s1799_s24, 7 }
  0x10   : > { %s250_s23 = scalar_select %p249_p5, %s1723_s13, 1 }
  0x11   : > { %s252_s28 = scalar_select %p251_p6, %s1799_s24, 7 }
  0x12   : > { %s1466_s26 = sshll.u32 %s250_s23, 6  ;;  %s1617_s27 = sshll.u32 %s250_s23, 10  ;;  %v1737_v0 = vmov (!%p1473_p8), 0.0  }
  0x13   : > { %s1807_s4 = scalar_lea.vmem %s2008_s1, %s1617_s27  ;;  %s1465_s5 = sshll.u32 %s252_s28, 3 }
  0x14   : > { %s255_s6 = sadd.s32 %s1466_s26, %s1465_s5  ;;  %s1471_s11 = sshll.u32 %s252_s28, 2 }
  0x15   : > { %s1467_s7 = sshll.u32 %s255_s6, 3  ;;  %s2022_s25 = smov (!%p276_p7, %s1470_s25), 3 }
  0x16   : > { %s1812_s10 = scalar_lea.vmem %s2007_s0, %s1467_s7  ;;  %s279_s19 = sadd.s32 %s1471_s11, %s2022_s25 }
  0x17   : > { %s1472_s20 = sshll.u32 %s279_s19, 3  ;;  %291 = sbr.rel (%p1473_p8) target bundleno = 30 (0x1e), region = 36 }
  0x18   : > { %s1817_s23 = scalar_lea.vmem %s2010_s3, %s1472_s20  ;;  %s1618_s26 = sshll.u32 (!%p1473_p8), %s1723_s13, 4 }
  0x19   : > { %s294_s27 = scalar_lea.vmem (!%p1473_p8), [#allocation2], %s1618_s26  ;;  %s298_s29 = scalar_lea.vmem (!%p1473_p8), [#allocation3], %s1618_s26 }
  0x1a   : > { %295 = vst [vmem:[%s294_s27] sm:$0xff] (!%p1473_p8), %v1737_v0  ;;  %296 = vst [vmem:[%s294_s27 + $0x8] sm:$0xff] (!%p1473_p8), %v1737_v0 }
  0x1b   : > { %299 = vst [vmem:[%s298_s29] sm:$0xff] (!%p1473_p8), %v1737_v0  ;;  %300 = vst [vmem:[%s298_s29 + $0x8] sm:$0xff] (!%p1473_p8), %v1737_v0 }
  0x1e PF: > { %v316_v1 = vld [vmem:[%s1807_s4] sm:$0xff]  ;;  %v317_v3 = vld [vmem:[%s1807_s4 + $0x8] sm:$0xff]  ;;  %v1738_v27 = vmov 0   ;;  %s1620_s12 = sshll.u32 %s1723_s13, 4  ;;  %s1614_s28 = sshll.u32 %s1799_s24, 3 }
  0x1f   : > { %v320_v2 = vld [vmem:[%s1807_s4 + $0x20] sm:$0xff]  ;;  %v321_v5 = vld [vmem:[%s1807_s4 + $0x28] sm:$0xff]  ;;  %1664 = vset.pattern.permute.xlu0 %v1738_v27  ;;  %s1852_s25 = scalar_lea.vmem [#allocation2], %s1620_s12  ;;  %s1318_s6 = scalar_lea.vmem %s2009_s2, %s1614_s28 }
  0x20   : > { %v1480_v4 = vcombine.high %v316_v1, %v320_v2  ;;  %v1479_v6 = vcombine.low %v316_v1, %v320_v2  ;;  %v324_v7 = vld [vmem:[%s1807_s4 + $0x40] sm:$0xff]  ;;  %v1482_v9 = vcombine.high %v317_v3, %v321_v5  ;;  %v1481_v10 = vcombine.low %v317_v3, %v321_v5  ;;  %v325_v12 = vld [vmem:[%s1807_s4 + $0x48] sm:$0xff]  ;;  %s1976_s24 = scalar_lea.vmem [#allocation3], %s1620_s12 }
  0x21   : > { %v328_v8 = vld [vmem:[%s1807_s4 + $0x60] sm:$0xff]  ;;  %v329_v13 = vld [vmem:[%s1807_s4 + $0x68] sm:$0xff] }
  0x22   : > { %v1488_v11 = vcombine.high %v324_v7, %v328_v8  ;;  %v332_v14 = vld [vmem:[%s1807_s4 + $0x80] sm:$0xff]  ;;  %1084 = vmatprep.subr.bf16.mxu0 %v1480_v4  ;;  %v1490_v15 = vcombine.high %v325_v12, %v329_v13  ;;  %v333_v17 = vld [vmem:[%s1807_s4 + $0x88] sm:$0xff]  ;;  %1125 = vmatprep.subr.bf16.mxu1 %v1482_v9  ;;  %v1487_v19 = vcombine.low %v324_v7, %v328_v8 }
  0x23   : > { %v336_v16 = vld [vmem:[%s1807_s4 + $0xa0] sm:$0xff]  ;;  %v337_v18 = vld [vmem:[%s1807_s4 + $0xa8] sm:$0xff]  ;;  %1085 = vmatpush1.bf16.msra.mxu0 %v1479_v6  ;;  %1126 = vmatpush1.bf16.msra.mxu1 %v1481_v10  ;;  %v1489_v20 = vcombine.low %v325_v12, %v329_v13 }
  0x24   : > { %1086 = vmatprep.subr.bf16.mxu0 %v1488_v11  ;;  %v1496_v21 = vcombine.high %v332_v14, %v336_v16  ;;  %1127 = vmatprep.subr.bf16.mxu1 %v1490_v15  ;;  %v1498_v22 = vcombine.high %v333_v17, %v337_v18  ;;  %v340_v23 = vld [vmem:[%s1807_s4 + $0xc0] sm:$0xff]  ;;  %v341_v25 = vld [vmem:[%s1807_s4 + $0xc8] sm:$0xff]  ;;  %v1495_v28 = vcombine.low %v332_v14, %v336_v16 }
  0x25   : > { %v344_v24 = vld [vmem:[%s1807_s4 + $0xe0] sm:$0xff]  ;;  %v345_v26 = vld [vmem:[%s1807_s4 + $0xe8] sm:$0xff]  ;;  %v1497_v29 = vcombine.low %v333_v17, %v337_v18 }
  0x26   : > { %v1504_v30 = vcombine.high %v340_v23, %v344_v24  ;;  %v1506_v31 = vcombine.high %v341_v25, %v345_v26  ;;  %v348_v32 = vld [vmem:[%s1807_s4 + $0x100] sm:$0xff]  ;;  %v349_v34 = vld [vmem:[%s1807_s4 + $0x108] sm:$0xff]  ;;  %v1503_v36 = vcombine.low %v340_v23, %v344_v24  ;;  %v1505_v37 = vcombine.low %v341_v25, %v345_v26 }
  0x27   : > { %1087 = vmatpush1.bf16.msra.mxu0 %v1487_v19  ;;  %1128 = vmatpush1.bf16.msra.mxu1 %v1489_v20  ;;  %v352_v33 = vld [vmem:[%s1807_s4 + $0x120] sm:$0xff]  ;;  %v353_v35 = vld [vmem:[%s1807_s4 + $0x128] sm:$0xff] }
  0x28   : > { %1088 = vmatprep.subr.bf16.mxu0 %v1496_v21  ;;  %1129 = vmatprep.subr.bf16.mxu1 %v1498_v22  ;;  %v1512_v38 = vcombine.high %v348_v32, %v352_v33  ;;  %v1514_v39 = vcombine.high %v349_v34, %v353_v35  ;;  %v356_v40 = vld [vmem:[%s1807_s4 + $0x140] sm:$0xff]  ;;  %v357_v42 = vld [vmem:[%s1807_s4 + $0x148] sm:$0xff]  ;;  %v1511_v44 = vcombine.low %v348_v32, %v352_v33 }
  0x29   : > { %v360_v41 = vld [vmem:[%s1807_s4 + $0x160] sm:$0xff]  ;;  %v361_v43 = vld [vmem:[%s1807_s4 + $0x168] sm:$0xff]  ;;  %v1513_v45 = vcombine.low %v349_v34, %v353_v35 }
  0x2a   : > { %v1520_v46 = vcombine.high %v356_v40, %v360_v41  ;;  %v1522_v47 = vcombine.high %v357_v42, %v361_v43  ;;  %v364_v48 = vld [vmem:[%s1807_s4 + $0x180] sm:$0xff]  ;;  %v365_v50 = vld [vmem:[%s1807_s4 + $0x188] sm:$0xff]  ;;  %v1519_v52 = vcombine.low %v356_v40, %v360_v41  ;;  %v1521_v53 = vcombine.low %v357_v42, %v361_v43 }
  0x2b   : > { %1089 = vmatpush1.bf16.msra.mxu0 %v1495_v28  ;;  %1130 = vmatpush1.bf16.msra.mxu1 %v1497_v29  ;;  %v368_v49 = vld [vmem:[%s1807_s4 + $0x1a0] sm:$0xff]  ;;  %v369_v51 = vld [vmem:[%s1807_s4 + $0x1a8] sm:$0xff] }
  0x2c   : > { %1090 = vmatprep.subr.bf16.mxu0 %v1504_v30  ;;  %1131 = vmatprep.subr.bf16.mxu1 %v1506_v31  ;;  %v1528_v54 = vcombine.high %v364_v48, %v368_v49  ;;  %v313_v55 = vld [vmem:[%s1852_s25 + $0x8] sm:$0xff]  ;;  %v1530_v56 = vcombine.high %v365_v50, %v369_v51  ;;  %v372_v57 = vld [vmem:[%s1807_s4 + $0x1c0] sm:$0xff]  ;;  %v1527_v62 = vcombine.low %v364_v48, %v368_v49 }
  0x2d   : > { %v376_v58 = vld [vmem:[%s1807_s4 + $0x1e0] sm:$0xff]  ;;  %v1857_v59 = vpack.c.bf16 %v313_v55, %v313_v55  ;;  %v373_v60 = vld [vmem:[%s1807_s4 + $0x1c8] sm:$0xff]  ;;  %v1529_v63 = vcombine.low %v365_v50, %v369_v51 }
  0x2e   : > { %v377_v61 = vld [vmem:[%s1807_s4 + $0x1e8] sm:$0xff]  ;;  %v1536_v0 = vcombine.high %v372_v57, %v376_v58  ;;  %v380_v2 = vld [vmem:[%s1807_s4 + $0x200] sm:$0xff]  ;;  %v1535_v6 = vcombine.low %v372_v57, %v376_v58 }
  0x2f   : > { %1091 = vmatpush1.bf16.msra.mxu0 %v1503_v36  ;;  %1132 = vmatpush1.bf16.msra.mxu1 %v1505_v37  ;;  %v1538_v1 = vcombine.high %v373_v60, %v377_v61  ;;  %v384_v3 = vld [vmem:[%s1807_s4 + $0x220] sm:$0xff]  ;;  %v381_v4 = vld [vmem:[%s1807_s4 + $0x208] sm:$0xff]  ;;  %v1537_v7 = vcombine.low %v373_v60, %v377_v61 }
  0x30   : > { %1092 = vmatprep.subr.bf16.mxu0 %v1512_v38  ;;  %1133 = vmatprep.subr.bf16.mxu1 %v1514_v39  ;;  %v385_v5 = vld [vmem:[%s1807_s4 + $0x228] sm:$0xff]  ;;  %v1544_v8 = vcombine.high %v380_v2, %v384_v3  ;;  %v388_v10 = vld [vmem:[%s1807_s4 + $0x240] sm:$0xff]  ;;  %v1543_v14 = vcombine.low %v380_v2, %v384_v3 }
  0x31   : > { %1116 = vmatprep.mubr.bf16.mxu0 %v1857_v59  ;;  %1157 = vmatprep.mubr.bf16.mxu1 %v1857_v59  ;;  %v1546_v9 = vcombine.high %v381_v4, %v385_v5  ;;  %v392_v11 = vld [vmem:[%s1807_s4 + $0x260] sm:$0xff]  ;;  %v389_v12 = vld [vmem:[%s1807_s4 + $0x248] sm:$0xff]  ;;  %v1545_v15 = vcombine.low %v381_v4, %v385_v5  ;;  %v318_v4 = vld [vmem:[%s1807_s4 + $0x10] sm:$0xff] }
  0x32   : > { %v393_v13 = vld [vmem:[%s1807_s4 + $0x268] sm:$0xff]  ;;  %v1552_v16 = vcombine.high %v388_v10, %v392_v11  ;;  %v396_v18 = vld [vmem:[%s1807_s4 + $0x280] sm:$0xff]  ;;  %v1551_v22 = vcombine.low %v388_v10, %v392_v11  ;;  %v322_v5 = vld [vmem:[%s1807_s4 + $0x30] sm:$0xff] }
  0x33   : > { %1093 = vmatpush1.bf16.msra.mxu0 %v1511_v44  ;;  %1134 = vmatpush1.bf16.msra.mxu1 %v1513_v45  ;;  %v1554_v17 = vcombine.high %v389_v12, %v393_v13  ;;  %v400_v19 = vld [vmem:[%s1807_s4 + $0x2a0] sm:$0xff]  ;;  %v397_v20 = vld [vmem:[%s1807_s4 + $0x288] sm:$0xff]  ;;  %v1553_v23 = vcombine.low %v389_v12, %v393_v13  ;;  %v1484_v11 = vcombine.high %v318_v4, %v322_v5  ;;  %v326_v13 = vld [vmem:[%s1807_s4 + $0x50] sm:$0xff] }
  0x34   : > { %1094 = vmatprep.subr.bf16.mxu0 %v1520_v46  ;;  %1135 = vmatprep.subr.bf16.mxu1 %v1522_v47  ;;  %v401_v21 = vld [vmem:[%s1807_s4 + $0x2a8] sm:$0xff]  ;;  %v1560_v24 = vcombine.high %v396_v18, %v400_v19  ;;  %v404_v26 = vld [vmem:[%s1807_s4 + $0x2c0] sm:$0xff]  ;;  %v1559_v30 = vcombine.low %v396_v18, %v400_v19  ;;  %v1483_v18 = vcombine.low %v318_v4, %v322_v5 }
  0x35   : > { %v1562_v25 = vcombine.high %v397_v20, %v401_v21  ;;  %v408_v27 = vld [vmem:[%s1807_s4 + $0x2e0] sm:$0xff]  ;;  %v405_v28 = vld [vmem:[%s1807_s4 + $0x2c8] sm:$0xff]  ;;  %v1561_v31 = vcombine.low %v397_v20, %v401_v21 }
  0x36   : > { %v409_v29 = vld [vmem:[%s1807_s4 + $0x2e8] sm:$0xff]  ;;  %v1568_v32 = vcombine.high %v404_v26, %v408_v27  ;;  %v412_v34 = vld [vmem:[%s1807_s4 + $0x300] sm:$0xff]  ;;  %v1567_v39 = vcombine.low %v404_v26, %v408_v27 }
  0x37   : > { %1095 = vmatpush1.bf16.msra.mxu0 %v1519_v52  ;;  %1136 = vmatpush1.bf16.msra.mxu1 %v1521_v53  ;;  %v1570_v33 = vcombine.high %v405_v28, %v409_v29  ;;  %v416_v35 = vld [vmem:[%s1807_s4 + $0x320] sm:$0xff]  ;;  %v413_v36 = vld [vmem:[%s1807_s4 + $0x308] sm:$0xff]  ;;  %v1569_v40 = vcombine.low %v405_v28, %v409_v29 }
  0x38   : > { %1096 = vmatprep.subr.bf16.mxu0 %v1528_v54  ;;  %1137 = vmatprep.subr.bf16.mxu1 %v1530_v56  ;;  %v417_v37 = vld [vmem:[%s1807_s4 + $0x328] sm:$0xff]  ;;  %v1319_v38 = vld [vmem:[%s1318_s6] sm:$0xff]  ;;  %v1576_v41 = vcombine.high %v412_v34, %v416_v35  ;;  %v1575_v47 = vcombine.low %v412_v34, %v416_v35 }
  0x39   : > { %1322 = vperm.xlu0 %1664, %v1319_v38   ;;  %v1578_v42 = vcombine.high %v413_v36, %v417_v37  ;;  %v420_v43 = vld [vmem:[%s1807_s4 + $0x340] sm:$0xff]  ;;  %v421_v45 = vld [vmem:[%s1807_s4 + $0x348] sm:$0xff]  ;;  %v1577_v48 = vcombine.low %v413_v36, %v417_v37  ;;  %v350_v38 = vld [vmem:[%s1807_s4 + $0x110] sm:$0xff] }
  0x3a   : > { %v424_v44 = vld [vmem:[%s1807_s4 + $0x360] sm:$0xff]  ;;  %v425_v46 = vld [vmem:[%s1807_s4 + $0x368] sm:$0xff] }
  0x3b   : > { %1097 = vmatpush1.bf16.msra.mxu0 %v1527_v62  ;;  %1138 = vmatpush1.bf16.msra.mxu1 %v1529_v63  ;;  %v1584_v49 = vcombine.high %v420_v43, %v424_v44  ;;  %v1586_v50 = vcombine.high %v421_v45, %v425_v46  ;;  %v428_v51 = vld [vmem:[%s1807_s4 + $0x380] sm:$0xff]  ;;  %v429_v53 = vld [vmem:[%s1807_s4 + $0x388] sm:$0xff]  ;;  %v1583_v55 = vcombine.low %v420_v43, %v424_v44 }
  0x3c   : > { %1098 = vmatprep.subr.bf16.mxu0 %v1536_v0  ;;  %1139 = vmatprep.subr.bf16.mxu1 %v1538_v1  ;;  %v432_v52 = vld [vmem:[%s1807_s4 + $0x3a0] sm:$0xff]  ;;  %v433_v54 = vld [vmem:[%s1807_s4 + $0x3a8] sm:$0xff]  ;;  %v1585_v56 = vcombine.low %v421_v45, %v425_v46  ;;  %v358_v45 = vld [vmem:[%s1807_s4 + $0x150] sm:$0xff] }
  0x3d   : > { %v1592_v57 = vcombine.high %v428_v51, %v432_v52  ;;  %v1594_v58 = vcombine.high %v429_v53, %v433_v54  ;;  %v436_v60 = vld [vmem:[%s1807_s4 + $0x3c0] sm:$0xff]  ;;  %v437_v62 = vld [vmem:[%s1807_s4 + $0x3c8] sm:$0xff]  ;;  %v1591_v0 = vcombine.low %v428_v51, %v432_v52  ;;  %v1593_v1 = vcombine.low %v429_v53, %v433_v54  ;;  %v362_v46 = vld [vmem:[%s1807_s4 + $0x170] sm:$0xff] }
  0x3e   : > { %v440_v61 = vld [vmem:[%s1807_s4 + $0x3e0] sm:$0xff]  ;;  %v441_v63 = vld [vmem:[%s1807_s4 + $0x3e8] sm:$0xff]  ;;  %v1524_v51 = vcombine.high %v358_v45, %v362_v46  ;;  %v366_v53 = vld [vmem:[%s1807_s4 + $0x190] sm:$0xff] }
  0x3f   : > { %1099 = vmatpush1.bf16.msra.mxu0 %v1535_v6  ;;  %1140 = vmatpush1.bf16.msra.mxu1 %v1537_v7  ;;  %v1600_v2 = vcombine.high %v436_v60, %v440_v61  ;;  %v1602_v3 = vcombine.high %v437_v62, %v441_v63  ;;  %v319_v6 = vld [vmem:[%s1807_s4 + $0x18] sm:$0xff]  ;;  %v1601_v10 = vcombine.low %v437_v62, %v441_v63  ;;  %v370_v54 = vld [vmem:[%s1807_s4 + $0x1b0] sm:$0xff] }
  0x40   : > { %1100 = vmatprep.subr.bf16.mxu0 %v1544_v8  ;;  %1141 = vmatprep.subr.bf16.mxu1 %v1546_v9  ;;  %v323_v7 = vld [vmem:[%s1807_s4 + $0x38] sm:$0xff]  ;;  %v1599_v8 = vcombine.low %v436_v60, %v440_v61  ;;  %v312_v9 = vld [vmem:[%s1852_s25] sm:$0xff]  ;;  %v1532_v60 = vcombine.high %v366_v53, %v370_v54  ;;  %v374_v62 = vld [vmem:[%s1807_s4 + $0x1d0] sm:$0xff] }
  0x41   : > { %v1486_v12 = vcombine.high %v319_v6, %v323_v7  ;;  %v1485_v19 = vcombine.low %v319_v6, %v323_v7  ;;  %v378_v63 = vld [vmem:[%s1807_s4 + $0x1f0] sm:$0xff] }
  0x42   : > { %v1540_v4 = vcombine.high %v374_v62, %v378_v63  ;;  %v382_v6 = vld [vmem:[%s1807_s4 + $0x210] sm:$0xff] }
  0x43   : > { %1101 = vmatpush1.bf16.msra.mxu0 %v1543_v14  ;;  %1142 = vmatpush1.bf16.msra.mxu1 %v1545_v15  ;;  %v330_v14 = vld [vmem:[%s1807_s4 + $0x70] sm:$0xff]  ;;  %v1906_v15 = vpack.c.bf16 %v312_v9, %v312_v9  ;;  %v387_v9 = vld [vmem:[%s1807_s4 + $0x238] sm:$0xff] }
  0x44   : > { %1102 = vmatprep.subr.bf16.mxu0 %v1552_v16  ;;  %1143 = vmatprep.subr.bf16.mxu1 %v1554_v17  ;;  %v327_v16 = vld [vmem:[%s1807_s4 + $0x58] sm:$0xff]  ;;  %v1492_v20 = vcombine.high %v326_v13, %v330_v14  ;;  %v1491_v26 = vcombine.low %v326_v13, %v330_v14  ;;  %v386_v7 = vld [vmem:[%s1807_s4 + $0x230] sm:$0xff] }
  0x45   : > { %v331_v17 = vld [vmem:[%s1807_s4 + $0x78] sm:$0xff]  ;;  %v390_v14 = vld [vmem:[%s1807_s4 + $0x250] sm:$0xff] }
  0x46   : > { %v1494_v21 = vcombine.high %v327_v16, %v331_v17  ;;  %v1493_v27 = vcombine.low %v327_v16, %v331_v17  ;;  %v394_v16 = vld [vmem:[%s1807_s4 + $0x270] sm:$0xff]  ;;  %v391_v17 = vld [vmem:[%s1807_s4 + $0x258] sm:$0xff] }
  0x47   : > { %1103 = vmatpush1.bf16.msra.mxu0 %v1551_v22  ;;  %1144 = vmatpush1.bf16.msra.mxu1 %v1553_v23  ;;  %v334_v22 = vld [vmem:[%s1807_s4 + $0x90] sm:$0xff] }
  0x48   : > { %1104 = vmatprep.subr.bf16.mxu0 %v1560_v24  ;;  %1145 = vmatprep.subr.bf16.mxu1 %v1562_v25  ;;  %v338_v23 = vld [vmem:[%s1807_s4 + $0xb0] sm:$0xff]  ;;  %v335_v24 = vld [vmem:[%s1807_s4 + $0x98] sm:$0xff] }
  0x49   : > { %v339_v25 = vld [vmem:[%s1807_s4 + $0xb8] sm:$0xff]  ;;  %v1500_v28 = vcombine.high %v334_v22, %v338_v23  ;;  %v1499_v34 = vcombine.low %v334_v22, %v338_v23  ;;  %v398_v23 = vld [vmem:[%s1807_s4 + $0x290] sm:$0xff] }
  0x4a   : > { %v1502_v29 = vcombine.high %v335_v24, %v339_v25  ;;  %v1501_v35 = vcombine.low %v335_v24, %v339_v25  ;;  %v402_v24 = vld [vmem:[%s1807_s4 + $0x2b0] sm:$0xff]  ;;  %v399_v25 = vld [vmem:[%s1807_s4 + $0x298] sm:$0xff] }
  0x4b   : > { %1105 = vmatpush1.bf16.msra.mxu0 %v1559_v30  ;;  %1146 = vmatpush1.bf16.msra.mxu1 %v1561_v31  ;;  %v342_v30 = vld [vmem:[%s1807_s4 + $0xd0] sm:$0xff] }
  0x4c   : > { %1106 = vmatprep.subr.bf16.mxu0 %v1568_v32  ;;  %1147 = vmatprep.subr.bf16.mxu1 %v1570_v33  ;;  %v346_v31 = vld [vmem:[%s1807_s4 + $0xf0] sm:$0xff]  ;;  %v343_v32 = vld [vmem:[%s1807_s4 + $0xd8] sm:$0xff] }
  0x4d   : > { %v347_v33 = vld [vmem:[%s1807_s4 + $0xf8] sm:$0xff]  ;;  %v1508_v36 = vcombine.high %v342_v30, %v346_v31 }
  0x4e   : > { %v1510_v37 = vcombine.high %v343_v32, %v347_v33 }
  0x4f   : > { %1107 = vmatpush1.bf16.msra.mxu0 %v1567_v39  ;;  %1148 = vmatpush1.bf16.msra.mxu1 %v1569_v40  ;;  %v354_v39 = vld [vmem:[%s1807_s4 + $0x130] sm:$0xff]  ;;  %v351_v40 = vld [vmem:[%s1807_s4 + $0x118] sm:$0xff] }
  0x50   : > { %1108 = vmatprep.subr.bf16.mxu0 %v1576_v41  ;;  %1149 = vmatprep.subr.bf16.mxu1 %v1578_v42  ;;  %v355_v41 = vld [vmem:[%s1807_s4 + $0x138] sm:$0xff]  ;;  %v1507_v42 = vcombine.low %v342_v30, %v346_v31  ;;  %v1516_v43 = vcombine.high %v350_v38, %v354_v39  ;;  %v406_v31 = vld [vmem:[%s1807_s4 + $0x2d0] sm:$0xff] }
  0x51   : > { %v1518_v44 = vcombine.high %v351_v40, %v355_v41 }
  0x53   : > { %1109 = vmatpush1.bf16.msra.mxu0 %v1575_v47  ;;  %1150 = vmatpush1.bf16.msra.mxu1 %v1577_v48  ;;  %v359_v47 = vld [vmem:[%s1807_s4 + $0x158] sm:$0xff] }
  0x54   : > { %1110 = vmatprep.subr.bf16.mxu0 %v1584_v49  ;;  %1151 = vmatprep.subr.bf16.mxu1 %v1586_v50  ;;  %v363_v48 = vld [vmem:[%s1807_s4 + $0x178] sm:$0xff]  ;;  %v1515_v49 = vcombine.low %v350_v38, %v354_v39  ;;  %v1517_v50 = vcombine.low %v351_v40, %v355_v41  ;;  %v414_v39 = vld [vmem:[%s1807_s4 + $0x310] sm:$0xff] }
  0x55   : > { %v1526_v52 = vcombine.high %v359_v47, %v363_v48  ;;  %v418_v40 = vld [vmem:[%s1807_s4 + $0x330] sm:$0xff]  ;;  %v415_v41 = vld [vmem:[%s1807_s4 + $0x318] sm:$0xff] }
  0x57   : > { %1111 = vmatpush1.bf16.msra.mxu0 %v1583_v55  ;;  %1152 = vmatpush1.bf16.msra.mxu1 %v1585_v56  ;;  %v367_v55 = vld [vmem:[%s1807_s4 + $0x198] sm:$0xff] }
  0x58   : > { %1112 = vmatprep.subr.bf16.mxu0 %v1592_v57  ;;  %1153 = vmatprep.subr.bf16.mxu1 %v1594_v58  ;;  %v371_v56 = vld [vmem:[%s1807_s4 + $0x1b8] sm:$0xff]  ;;  %v1523_v57 = vcombine.low %v358_v45, %v362_v46  ;;  %v1525_v58 = vcombine.low %v359_v47, %v363_v48  ;;  %v422_v46 = vld [vmem:[%s1807_s4 + $0x350] sm:$0xff] }
  0x59   : > { %v1534_v61 = vcombine.high %v367_v55, %v371_v56  ;;  %v426_v47 = vld [vmem:[%s1807_s4 + $0x370] sm:$0xff]  ;;  %v423_v48 = vld [vmem:[%s1807_s4 + $0x358] sm:$0xff] }
  0x5b   : > { %1113 = vmatpush1.bf16.msra.mxu0 %v1591_v0  ;;  %1154 = vmatpush1.bf16.msra.mxu1 %v1593_v1  ;;  %v375_v0 = vld [vmem:[%s1807_s4 + $0x1d8] sm:$0xff] }
  0x5c   : > { %1114 = vmatprep.subr.bf16.mxu0 %v1600_v2  ;;  %1155 = vmatprep.subr.bf16.mxu1 %v1602_v3  ;;  %v379_v1 = vld [vmem:[%s1807_s4 + $0x1f8] sm:$0xff]  ;;  %v1531_v2 = vcombine.low %v366_v53, %v370_v54  ;;  %v1533_v3 = vcombine.low %v367_v55, %v371_v56  ;;  %v430_v54 = vld [vmem:[%s1807_s4 + $0x390] sm:$0xff] }
  0x5d   : > { %v1542_v5 = vcombine.high %v375_v0, %v379_v1  ;;  %v434_v55 = vld [vmem:[%s1807_s4 + $0x3b0] sm:$0xff]  ;;  %v431_v56 = vld [vmem:[%s1807_s4 + $0x398] sm:$0xff] }
  0x5f   : > { %1115 = vmatpush1.bf16.msra.mxu0 %v1599_v8  ;;  %1156 = vmatpush1.bf16.msra.mxu1 %v1601_v10  ;;  %v383_v8 = vld [vmem:[%s1807_s4 + $0x218] sm:$0xff]  ;;  %v1539_v10 = vcombine.low %v374_v62, %v378_v63  ;;  %v438_v63 = vld [vmem:[%s1807_s4 + $0x3d0] sm:$0xff] }
  0x60   : > { %1166 = vmatprep.subr.bf16.mxu0 %v1484_v11  ;;  %1207 = vmatprep.subr.bf16.mxu1 %v1486_v12  ;;  %v1541_v11 = vcombine.low %v375_v0, %v379_v1  ;;  %v1548_v12 = vcombine.high %v382_v6, %v386_v7  ;;  %v1550_v13 = vcombine.high %v383_v8, %v387_v9  ;;  %v442_v0 = vld [vmem:[%s1807_s4 + $0x3f0] sm:$0xff]  ;;  %v439_v1 = vld [vmem:[%s1807_s4 + $0x3d8] sm:$0xff] }
  0x62   : > { %1117 = vmatmul.mubr.bf16.vlgmr.msra.gmra.mrb[0].mxu0 %v1906_v15  ;;  %1158 = vmatmul.mubr.bf16.vlgmr.msra.gmra.mrb[0].mxu1 %v1906_v15 }
  0x63   : > { %1167 = vmatpush1.bf16.msra.mxu0 %v1483_v18  ;;  %1208 = vmatpush1.bf16.msra.mxu1 %v1485_v19  ;;  %v395_v18 = vld [vmem:[%s1807_s4 + $0x278] sm:$0xff]  ;;  %v1547_v19 = vcombine.low %v382_v6, %v386_v7  ;;  %v1603_v7 = vcombine.low %v438_v63, %v442_v0 }
  0x64   : > { %1168 = vmatprep.subr.bf16.mxu0 %v1492_v20  ;;  %1209 = vmatprep.subr.bf16.mxu1 %v1494_v21  ;;  %v1549_v20 = vcombine.low %v383_v8, %v387_v9  ;;  %v1556_v21 = vcombine.high %v390_v14, %v394_v16  ;;  %v1558_v22 = vcombine.high %v391_v17, %v395_v18  ;;  %v303_v9 = vld [vmem:[%s1812_s10 + $0x10] sm:$0xff] }
  0x65   : > { %1198 = vmatprep.mubr.bf16.mxu0 %v1857_v59  ;;  %1239 = vmatprep.mubr.bf16.mxu1 %v1857_v59  ;;  %v1509_v59 = vcombine.low %v343_v32, %v347_v33  ;;  %v410_v32 = vld [vmem:[%s1807_s4 + $0x2f0] sm:$0xff]  ;;  %v407_v33 = vld [vmem:[%s1807_s4 + $0x2d8] sm:$0xff] }
  0x67   : > { %1169 = vmatpush1.bf16.msra.mxu0 %v1491_v26  ;;  %1210 = vmatpush1.bf16.msra.mxu1 %v1493_v27  ;;  %v403_v26 = vld [vmem:[%s1807_s4 + $0x2b8] sm:$0xff]  ;;  %v1555_v27 = vcombine.low %v390_v14, %v394_v16 }
  0x68   : > { %1170 = vmatprep.subr.bf16.mxu0 %v1500_v28  ;;  %1211 = vmatprep.subr.bf16.mxu1 %v1502_v29  ;;  %v1557_v28 = vcombine.low %v391_v17, %v395_v18  ;;  %v1564_v29 = vcombine.high %v398_v23, %v402_v24  ;;  %v1566_v30 = vcombine.high %v399_v25, %v403_v26 }
  0x6b   : > { %1171 = vmatpush1.bf16.msra.mxu0 %v1499_v34  ;;  %1212 = vmatpush1.bf16.msra.mxu1 %v1501_v35  ;;  %v411_v34 = vld [vmem:[%s1807_s4 + $0x2f8] sm:$0xff]  ;;  %v1563_v35 = vcombine.low %v398_v23, %v402_v24 }
  0x6c   : > { %1172 = vmatprep.subr.bf16.mxu0 %v1508_v36  ;;  %1213 = vmatprep.subr.bf16.mxu1 %v1510_v37  ;;  %v1565_v36 = vcombine.low %v399_v25, %v403_v26  ;;  %v1572_v37 = vcombine.high %v406_v31, %v410_v32  ;;  %v1574_v38 = vcombine.high %v407_v33, %v411_v34 }
  0x6f   : > { %1173 = vmatpush1.bf16.msra.mxu0 %v1507_v42  ;;  %1214 = vmatpush1.bf16.msra.mxu1 %v1509_v59  ;;  %v419_v42 = vld [vmem:[%s1807_s4 + $0x338] sm:$0xff]  ;;  %v1571_v59 = vcombine.low %v406_v31, %v410_v32 }
  0x70   : > { %1174 = vmatprep.subr.bf16.mxu0 %v1516_v43  ;;  %1215 = vmatprep.subr.bf16.mxu1 %v1518_v44  ;;  %v1573_v43 = vcombine.low %v407_v33, %v411_v34  ;;  %v1580_v44 = vcombine.high %v414_v39, %v418_v40  ;;  %v1582_v45 = vcombine.high %v415_v41, %v419_v42  ;;  %v301_v33 = vld [vmem:[%s1812_s10] sm:$0xff]  ;;  %v302_v34 = vld [vmem:[%s1812_s10 + $0x8] sm:$0xff] }
  0x73   : > { %1175 = vmatpush1.bf16.msra.mxu0 %v1515_v49  ;;  %1216 = vmatpush1.bf16.msra.mxu1 %v1517_v50  ;;  %v427_v49 = vld [vmem:[%s1807_s4 + $0x378] sm:$0xff]  ;;  %v1579_v50 = vcombine.low %v414_v39, %v418_v40 }
  0x74   : > { %1176 = vmatprep.subr.bf16.mxu0 %v1524_v51  ;;  %1217 = vmatprep.subr.bf16.mxu1 %v1526_v52  ;;  %v1581_v51 = vcombine.low %v415_v41, %v419_v42  ;;  %v1588_v52 = vcombine.high %v422_v46, %v426_v47  ;;  %v1590_v53 = vcombine.high %v423_v48, %v427_v49 }
  0x77   : > { %1177 = vmatpush1.bf16.msra.mxu0 %v1523_v57  ;;  %1218 = vmatpush1.bf16.msra.mxu1 %v1525_v58  ;;  %v435_v57 = vld [vmem:[%s1807_s4 + $0x3b8] sm:$0xff]  ;;  %v1587_v58 = vcombine.low %v422_v46, %v426_v47 }
  0x78   : > { %1178 = vmatprep.subr.bf16.mxu0 %v1532_v60  ;;  %1219 = vmatprep.subr.bf16.mxu1 %v1534_v61  ;;  %v1589_v60 = vcombine.low %v423_v48, %v427_v49  ;;  %v1596_v61 = vcombine.high %v430_v54, %v434_v55  ;;  %v1598_v62 = vcombine.high %v431_v56, %v435_v57  ;;  %v308_v46 = vld [vmem:[%s1812_s10 + $0x38] sm:$0xff] }
  0x7b   : > { %1179 = vmatpush1.bf16.msra.mxu0 %v1531_v2  ;;  %1220 = vmatpush1.bf16.msra.mxu1 %v1533_v3  ;;  %v443_v2 = vld [vmem:[%s1807_s4 + $0x3f8] sm:$0xff]  ;;  %v1595_v3 = vcombine.low %v430_v54, %v434_v55 }
  0x7c   : > { %1180 = vmatprep.subr.bf16.mxu0 %v1540_v4  ;;  %1221 = vmatprep.subr.bf16.mxu1 %v1542_v5  ;;  %v1597_v4 = vcombine.low %v431_v56, %v435_v57  ;;  %v1604_v5 = vcombine.high %v438_v63, %v442_v0  ;;  %v1606_v6 = vcombine.high %v439_v1, %v443_v2 }
  0x7d   : > { %v1605_v8 = vcombine.low %v439_v1, %v443_v2 }
  0x7f   : > { %1181 = vmatpush1.bf16.msra.mxu0 %v1539_v10  ;;  %1222 = vmatpush1.bf16.msra.mxu1 %v1541_v11  ;;  %v304_v11 = vld [vmem:[%s1812_s10 + $0x18] sm:$0xff] }
  0x80   : > { %1182 = vmatprep.subr.bf16.mxu0 %v1548_v12  ;;  %1223 = vmatprep.subr.bf16.mxu1 %v1550_v13 }
  0x83   : > { %1183 = vmatpush1.bf16.msra.mxu0 %v1547_v19  ;;  %1224 = vmatpush1.bf16.msra.mxu1 %v1549_v20 }
  0x84   : > { %1184 = vmatprep.subr.bf16.mxu0 %v1556_v21  ;;  %1225 = vmatprep.subr.bf16.mxu1 %v1558_v22 }
  0x87   : > { %1185 = vmatpush1.bf16.msra.mxu0 %v1555_v27  ;;  %1226 = vmatpush1.bf16.msra.mxu1 %v1557_v28  ;;  %v1296_v27 = vld [vmem:[%s1976_s24] sm:$0xff] }
  0x88   : > { %1186 = vmatprep.subr.bf16.mxu0 %v1564_v29  ;;  %1227 = vmatprep.subr.bf16.mxu1 %v1566_v30  ;;  %v1297_v29 = vld [vmem:[%s1976_s24 + $0x8] sm:$0xff] }
  0x8b   : > { %1187 = vmatpush1.bf16.msra.mxu0 %v1563_v35  ;;  %1228 = vmatpush1.bf16.msra.mxu1 %v1565_v36 }
  0x8c   : > { %1188 = vmatprep.subr.bf16.mxu0 %v1572_v37  ;;  %1229 = vmatprep.subr.bf16.mxu1 %v1574_v38 }
  0x8f   : > { %1189 = vmatpush1.bf16.msra.mxu0 %v1571_v59  ;;  %1230 = vmatpush1.bf16.msra.mxu1 %v1573_v43  ;;  %v305_v59 = vld [vmem:[%s1812_s10 + $0x20] sm:$0xff]  ;;  %v307_v43 = vld [vmem:[%s1812_s10 + $0x30] sm:$0xff] }
  0x90   : > { %1190 = vmatprep.subr.bf16.mxu0 %v1580_v44  ;;  %1231 = vmatprep.subr.bf16.mxu1 %v1582_v45  ;;  %v306_v44 = vld [vmem:[%s1812_s10 + $0x28] sm:$0xff] }
  0x93   : > { %1191 = vmatpush1.bf16.msra.mxu0 %v1579_v50  ;;  %1232 = vmatpush1.bf16.msra.mxu1 %v1581_v51 }
  0x94   : > { %1192 = vmatprep.subr.bf16.mxu0 %v1588_v52  ;;  %1233 = vmatprep.subr.bf16.mxu1 %v1590_v53 }
  0x97   : > { %1193 = vmatpush1.bf16.msra.mxu0 %v1587_v58  ;;  %1234 = vmatpush1.bf16.msra.mxu1 %v1589_v60 }
  0x98   : > { %1194 = vmatprep.subr.bf16.mxu0 %v1596_v61  ;;  %1235 = vmatprep.subr.bf16.mxu1 %v1598_v62 }
  0x9b   : > { %1195 = vmatpush1.bf16.msra.mxu0 %v1595_v3  ;;  %1236 = vmatpush1.bf16.msra.mxu1 %v1597_v4 }
  0x9c   : > { %1196 = vmatprep.subr.bf16.mxu0 %v1604_v5  ;;  %1237 = vmatprep.subr.bf16.mxu1 %v1606_v6 }
  0x9f   : > { %1197 = vmatpush1.bf16.msra.mxu0 %v1603_v7  ;;  %1238 = vmatpush1.bf16.msra.mxu1 %v1605_v8 }
  0xa2   : > { %1199 = vmatmul.mubr.bf16.vlgmr.msra.gmra.mrb[4].mxu0 %v1906_v15  ;;  %1240 = vmatmul.mubr.bf16.vlgmr.msra.gmra.mrb[4].mxu1 %v1906_v15 }
 0x135   : > { %v1118_v10 = vpop.f32.mrb[0].mxu0  ;;  %v1159_v12 = vpop.f32.mrb[0].mxu1 }
 0x136   : > { %v1120_v13 = vpop.f32.mrb[1].mxu0  ;;  %v1250_v14 = vadd.f32 %v1159_v12, %v303_v9  ;;  %v1161_v16 = vpop.f32.mrb[1].mxu1  ;;  %v1248_v35 = vadd.f32 %v1118_v10, %v301_v33 }
 0x137   : > { %v1122_v17 = vpop.f32.mrb[2].mxu0  ;;  %v1251_v18 = vadd.f32 %v1161_v16, %v304_v11  ;;  %v1163_v19 = vpop.f32.mrb[2].mxu1  ;;  %v1249_v36 = vadd.f32 %v1120_v13, %v302_v34 }
 0x138   : > { %v1123_v20 = vpop.f32.mrb[3].mxu0  ;;  %v1609_v21 = vmul.f32 -1.442695, %v1250_v14  ;;  %v1164_v22 = vpop.f32.mrb[3].mxu1  ;;  %v1607_v37 = vmul.f32 -1.442695, %v1248_v35 }
 0x139   : > { %v1610_v23 = vmul.f32 -1.442695, %v1251_v18  ;;  %v1608_v38 = vmul.f32 -1.442695, %v1249_v36  ;;  %v1323_v11 = vpop.permute.xlu0 %1322 }
 0x13a   : > { %1665 = vpow2.f32 %v1609_v21 }
 0x13b   : > { %1667 = vpow2.f32 %v1610_v23 }
 0x144   : > { %v1666_v15 = vpop.eup %1665 }
 0x145   : > { %v1274_v24 = vadd.f32 1.0, %v1666_v15  ;;  %v1668_v25 = vpop.eup %1667 }
 0x146   : > { %v1275_v26 = vadd.f32 1.0, %v1668_v25 }
 0x147   : > { %1669 = vrcp.f32 %v1274_v24 }
 0x148   : > { %1671 = vrcp.f32 %v1275_v26 }
 0x149   : > { %1673 = vpow2.f32 %v1607_v37 }
 0x14a   : > { %1675 = vpow2.f32 %v1608_v38 }
 0x151   : > { %v1670_v28 = vpop.eup %1669 }
 0x152   : > { %v1298_v30 = vmul.f32 %v1670_v28, %v1296_v27  ;;  %v1672_v31 = vpop.eup %1671 }
 0x153   : > { %v1299_v32 = vmul.f32 %v1672_v31, %v1297_v29  ;;  %v1674_v39 = vpop.eup %1673 }
 0x154   : > { %v1676_v40 = vpop.eup %1675  ;;  %v1262_v41 = vadd.f32 1.0, %v1674_v39 }
 0x155   : > { %v1263_v42 = vadd.f32 1.0, %v1676_v40 }
 0x156   : > { %1677 = vrcp.f32 %v1262_v41 }
 0x157   : > { %1679 = vrcp.f32 %v1263_v42 }
 0x160   : > { %v1678_v61 = vpop.eup %1677 }
 0x161   : > { %v1680_v62 = vpop.eup %1679 }
 0x175   : > { %v1200_v45 = vpop.f32.mrb[4].mxu0  ;;  %v1241_v48 = vpop.f32.mrb[4].mxu1 }
 0x176   : > { %v1252_v47 = vadd.f32 %v1200_v45, %v305_v59  ;;  %v1202_v49 = vpop.f32.mrb[5].mxu0  ;;  %v1254_v50 = vadd.f32 %v1241_v48, %v307_v43  ;;  %v1243_v52 = vpop.f32.mrb[5].mxu1 }
 0x177   : > { %v1253_v51 = vadd.f32 %v1202_v49, %v306_v44  ;;  %v1204_v53 = vpop.f32.mrb[6].mxu0  ;;  %v1255_v54 = vadd.f32 %v1243_v52, %v308_v46  ;;  %v1245_v55 = vpop.f32.mrb[6].mxu1 }
 0x178   : > { %1681 = vtanh.f32 %v1252_v47  ;;  %v1205_v56 = vpop.f32.mrb[7].mxu0  ;;  %v1611_v57 = vmul.f32 -1.442695, %v1254_v50  ;;  %v1246_v58 = vpop.f32.mrb[7].mxu1 }
 0x179   : > { %1683 = vtanh.f32 %v1253_v51  ;;  %v1612_v60 = vmul.f32 -1.442695, %v1255_v54 }
 0x17a   : > { %1685 = vpow2.f32 %v1611_v57 }
 0x17b   : > { %1687 = vpow2.f32 %v1612_v60 }
 0x182   : > { %v1682_v63 = vpop.eup %1681 }
 0x183   : > { %v1684_v0 = vpop.eup %1683  ;;  %v1300_v1 = vmul.f32 %v1682_v63, %v1678_v61 }
 0x184   : > { %v1301_v2 = vmul.f32 %v1684_v0, %v1680_v62  ;;  %v1686_v3 = vpop.eup %1685 }
 0x185   : > { %v1302_v4 = vadd.f32 %v1300_v1, %v1298_v30  ;;  %v1688_v5 = vpop.eup %1687  ;;  %v1288_v6 = vadd.f32 1.0, %v1686_v3 }
 0x186   : > { %v1303_v7 = vadd.f32 %v1301_v2, %v1299_v32  ;;  %v1289_v8 = vadd.f32 1.0, %v1688_v5 }
 0x187   : > { %1308 = vst [vmem:[%s1976_s24] sm:$0xff] %v1302_v4  ;;  %1689 = vtanh.f32 %v1302_v4 }
 0x188   : > { %1691 = vrcp.f32 %v1288_v6  ;;  %1309 = vst [vmem:[%s1976_s24 + $0x8] sm:$0xff] %v1303_v7 }
 0x189   : > { %1693 = vrcp.f32 %v1289_v8 }
 0x18a   : > { %1695 = vtanh.f32 %v1303_v7 }
 0x191   : > { %v1690_v9 = vpop.eup %1689 }
 0x192   : > { %v1692_v10 = vpop.eup %1691 }
 0x193   : > { %v1694_v12 = vpop.eup %1693  ;;  %v1306_v13 = vmul.f32 %v1692_v10, %v1690_v9 }
 0x194   : > { %v1696_v14 = vpop.eup %1695 }
 0x195   : > { %v1307_v16 = vmul.f32 %v1696_v14, %v1694_v12  ;;  %1310 = vst [vmem:[%s1852_s25] sm:$0xff] %v1306_v13  ;;  %v1325_v17 = vmul.f32 %v1323_v11, %v1306_v13 }
 0x197   : > { %1311 = vst [vmem:[%s1852_s25 + $0x8] sm:$0xff] %v1307_v16  ;;  %v1326_v18 = vmul.f32 %v1323_v11, %v1307_v16  ;;  %1327 = vst [vmem:[%s1817_s23] sm:$0xff] %v1325_v17 }
 0x199   : > { %1328 = vst [vmem:[%s1817_s23 + $0x8] sm:$0xff] %v1326_v18 }
 0x19a PF: > { %s13_s16 = sadd.s32 1, %s1735_s16   ;;  %s2011_s12 = smov %s1727_s14 }
 0x19b   : > { %p10_p9 = scmp.ge.s32.totalorder %s13_s16, 18   ;;  %s2012_s13 = smov %s1731_s15 }
 0x19c   : > { %s2013_s14 = smov %s2016_s17  ;;  %s2014_s15 = smov %s2020_s18 }
 0x19d   :  { %12 = sbr.rel (!%p10_p9) target bundleno = 3 (0x3), region = 74 }

// kernel: sent_encoder_forward.4
= control target key start
LH: loop header
LB: loop body
LE: loop exit
PB: predicated region body
PF: predicated region fallthrough
CT: control target
= control target key end

     0   :  { %8 = vsyncpa [#allocation3], 0  ;;  %s2369_s0 = inlined_call_operand.vmem [shape: f32[64,256], index: 0, kind: input, shape index: {}]   ;;  %s2370_s1 = inlined_call_operand.hbm [shape: bf16[2,256,1024], index: 1, kind: input, shape index: {}]   ;;  %s2371_s2 = inlined_call_operand.hbm [shape: f32[2,1,1024], index: 2, kind: input, shape index: {}]   ;;  %s2372_s3 = inlined_call_operand.vmem [shape: f32[2,64,1024], index: 3, kind: output, shape index: {}]  }
   0x1   :  { %10 = vsyncpa [#allocation3 + $0x1], 0 }
   0x2   :  { %11 = vsyncpa [#allocation5], 0 }
   0x3   :  { %13 = vsyncpa [#allocation5 + $0x1], 0  ;;  %s1826_s12 = smov 0   ;;  %s1828_s13 = smov 0  }
   0x4   :  { %s1830_s14 = smov 0   ;;  %s1832_s15 = smov 0  }
   0x5 LB: > { %s1845_s16 = sadd.s32 4294967295, %s1800_s15   ;;  %s1848_s17 = sadd.s32 1, %s1800_s15   ;;  %s1800_s15 = sphi %s1832_s15, %s2383_s15   ;;  %s1796_s14 = sphi %s1830_s14, %s2382_s14   ;;  %s1792_s13 = sphi %s1828_s13, %s2381_s13   ;;  %s1788_s12 = sphi %s1826_s12, %s2380_s12  }
   0x6   : > { %s44_s18 = ssub.s32 %s1800_s15, %s1848_s17  ;;  %s47_s19 = sadd.s32 1, %s1796_s14 }
   0x7   : > { %p45_p0 = scmp.eq.s32.totalorder %s44_s18, 0  ;;  %p54_p1 = scmp.ne.s32.totalorder %s1796_s14, %s1792_s13 }
   0x8   : > { %p55_p2 = scmp.eq.s32.totalorder %s1800_s15, 0  ;;  %p60_p3 = scmp.ne.s32.totalorder %s1792_s13, %s1788_s12 }
   0x9   : > { %s1858_s20 = scalar_select %p45_p0, %s1796_s14, %s47_s19  }
   0xa   : > { %p56_p4 = por %p55_p2, %p54_p1  ;;  %p61_p5 = scmp.eq.s32.totalorder %s1845_s16, 0 }
   0xb   : > { %p1667_p6 = scmp.lt.s32.totalorder %s1800_s15, 2  ;;  %s1867_s22 = sand.u32 1, %s1796_s14  }
   0xc   : > { %p1862_p7 = por %p61_p5, %p60_p3  ;;  %s1512_s23 = sshll.u32 %s1867_s22, 10 }
   0xd   : > { %s1653_s24 = sshll.u32 %s1800_s15, 14  ;;  %s143_s28 = scalar_lea.vmem [#allocation2], %s1512_s23 }
   0xe   : > { %s2374_s21 = scalar_select %p1862_p7, 1, 0 }
   0xf   : > { %s1874_s27 = scalar_lea.hbm %s2370_s1, %s1653_s24  ;;  %s150_s29 = sshll.u32 %s143_s28, 4  ;;  %s1876_s29 = int_to_ptr.vmem [resolvable:$true] %s150_s29 }
  0x10   : > { %p1878_p8 = pnand %p1667_p6, %p56_p4  ;;  %s140_s4 = scalar_lea.sflag [#allocation3], %s1867_s22 }
  0x11   : > { %s1702_s5 = scalar_lea.hbm %s1874_s27, 16384  ;;  %s1707_s8 = scalar_lea.hbm %s2370_s1, 32768 }
  0x12   : > { %p1703_p10 = scmp.ne.s32.totalorder %s1874_s27, %s1702_s5  ;;  %p1704_p11 = pneg %p1878_p8 }
  0x13   : > { %p1708_p0 = scmp.lt.u32.totalorder %s1874_s27, %s2370_s1  ;;  %p1709_p1 = scmp.lt.u32.totalorder %s1707_s8, %s1702_s5 }
  0x14   : > { %p1705_p12 = pnand %p1704_p11, %p1703_p10  ;;  %p1711_p3 = scmp.lt.u32.totalorder %s1702_s5, %s1874_s27 }
  0x15   : > { %p1710_p2 = por %p1709_p1, %p1708_p0 }
  0x16   : > { %p1706_p13 = pneg %p1705_p12 }
  0x17   : > { %p1712_p4 = por %p1711_p3, %p1710_p2 }
  0x19   : > { %p1713_p5 = pnand %p1712_p4, %p1706_p13 }
  0x1b   : > { %1716 = shalt.err (!%p1713_p5)
}
  0x1c   : > { %s1717_s11 = scalar_lea.vmem %s1876_s29, 16384  ;;  %s1802_s12 = smov [#allocation2]  }
  0x1d   : > { %p1718_p6 = scmp.ne.s32.totalorder %s1876_s29, %s1717_s11  ;;  %s1722_s18 = sshll.u32 %s1802_s12, 4  ;;  %s1723_s18 = int_to_ptr.vmem [resolvable:$false] %s1722_s18 }
  0x1e   : > { %s1724_s19 = scalar_lea.vmem %s1723_s18, 32768  ;;  %p1725_p9 = scmp.lt.s32.totalorder %s1876_s29, %s1723_s18 }
  0x1f   : > { %p1720_p10 = pnand %p1718_p6, %p1704_p11  ;;  %p1726_p0 = scmp.lt.s32.totalorder %s1724_s19, %s1717_s11 }
  0x21   : > { %p1721_p12 = pneg %p1720_p10  ;;  %p1727_p1 = por %p1726_p0, %p1725_p9 }
  0x23   : > { %p1728_p2 = pnand %p1727_p1, %p1721_p12 }
  0x25   : > { %1731 = shalt.err (!%p1728_p2)
}
  0x26   : > { %s1803_s23 = smov 512   ;;  %s1804_s24 = smov 32  }
  0x27   : > { %1663 = dma.hbm_to_vmem [thread:$0]  (!%p1878_p8), %s1874_s27, 16384, %s1876_s29, %s140_s4, %s1803_s23, %s1803_s23, %s1804_s24  }
  0x28   : > { %p177_p13 = scmp.lt.s32.totalorder %s1800_s15, 3  ;;  %s1515_s25 = sshll.u32 %s1867_s22, 3 }
  0x29   : > { %s1654_s26 = sshll.u32 %s1800_s15, 7  ;;  %p2376_p9 = scmp.ge.s32.totalorder %s1800_s15, 1 }
  0x2a   : > { %s1923_s7 = scalar_lea.hbm %s2371_s2, %s1654_s26  ;;  %s164_s8 = scalar_lea.vmem [#allocation4], %s1515_s25 }
  0x2b   : > { %p1916_p3 = pnand %p2376_p9, %p177_p13  ;;  %s172_s9 = sshll.u32 %s164_s8, 4  ;;  %s173_s9 = int_to_ptr.vmem [resolvable:$true] %s172_s9 }
  0x2c   : > { %s161_s27 = scalar_lea.sflag [#allocation5], %s1867_s22  ;;  %s1732_s29 = scalar_lea.hbm %s1923_s7, 128 }
  0x2d   : > { %s2377_s28 = scalar_select %p1916_p3, 1, 0 }
  0x2e   : > { %p1733_p4 = scmp.ne.s32.totalorder %s1923_s7, %s1732_s29  ;;  %s1737_s10 = scalar_lea.hbm %s2371_s2, 256 }
  0x2f   : > { %p1738_p10 = scmp.lt.u32.totalorder %s1923_s7, %s2371_s2  ;;  %p1739_p12 = scmp.lt.u32.totalorder %s1737_s10, %s1732_s29 }
  0x30   : > { %p1735_p5 = pnand %p1733_p4, %p1704_p11  ;;  %p1741_p1 = scmp.lt.u32.totalorder %s1732_s29, %s1923_s7 }
  0x31   : > { %p1740_p0 = por %p1739_p12, %p1738_p10 }
  0x32   : > { %p1736_p6 = pneg %p1735_p5 }
  0x33   : > { %p1742_p2 = por %p1741_p1, %p1740_p0 }
  0x35   : > { %p1743_p13 = pnand %p1742_p2, %p1736_p6 }
  0x37   : > { %1746 = shalt.err (!%p1743_p13)
}
  0x38   : > { %s1747_s22 = scalar_lea.vmem %s173_s9, 128  ;;  %s1805_s18 = smov [#allocation4]  }
  0x39   : > { %p1748_p9 = scmp.ne.s32.totalorder %s173_s9, %s1747_s22  ;;  %s1752_s19 = sshll.u32 %s1805_s18, 4  ;;  %s1753_s19 = int_to_ptr.vmem [resolvable:$false] %s1752_s19 }
  0x3a   : > { %s1754_s23 = scalar_lea.vmem %s1753_s19, 256  ;;  %p1755_p7 = scmp.lt.s32.totalorder %s173_s9, %s1753_s19 }
  0x3b   : > { %p1750_p4 = pnand %p1748_p9, %p1704_p11  ;;  %p1756_p3 = scmp.lt.s32.totalorder %s1754_s23, %s1747_s22 }
  0x3d   : > { %p1751_p5 = pneg %p1750_p4  ;;  %p1757_p10 = por %p1756_p3, %p1755_p7 }
  0x3f   : > { %p1758_p12 = pnand %p1757_p10, %p1751_p5 }
  0x41   : > { %1761 = shalt.err (!%p1758_p12)
}
  0x42   : > { %1666 = dma.hbm_to_vmem [thread:$0]  (!%p1878_p8), %s1923_s7, 128, %s173_s9, %s161_s27  }
  0x43   : > { %p2378_p6 = scmp.ne.s32.totalorder %s2377_s28, 0 }
  0x44   : > { %s183_s24 = sand.u32 (!%p2378_p6), 1, %s1792_s13   ;;  %p2379_p11 = scmp.ne.s32.totalorder (!%p2378_p6), %s2374_s21, 0 }
  0x45   : > { %181 = sbr.rel (%p2378_p6) target bundleno = 454 (0x1c6), region = 32  ;;  %s1519_s25 = sshll.u32 (!%p2378_p6), %s183_s24, 10 }
  0x46   : > { %s184_s26 = scalar_lea.sflag (!%p2378_p6), [#allocation3], %s183_s24  ;;  %s1948_s5 = scalar_lea.vmem (!%p2378_p6), [#allocation2], %s1519_s25 }
  0x4c   : > { %1779 = dma.done.wait (%p2379_p11), %s184_s26, 16384  }
  0x4d   : > { %1781 = vsyncadd (%p2379_p11), %s184_s26, 4294950912  ;;  %s1520_s6 = sshll.u32 %s183_s24, 3  ;;  %s193_s30 = scalar_lea.sflag [#allocation5], %s183_s24 }
  0x4e   : > { %s1954_s8 = scalar_lea.vmem [#allocation4], %s1520_s6 }
  0x4f   : > { %1783 = dma.done.wait (%p2379_p11), %s193_s30, 128  }
  0x50   : > { %1785 = vsyncadd (%p2379_p11), %s193_s30, 4294967168  ;;  %v253_v0 = vld [vmem:[%s1948_s5] sm:$0xff]  ;;  %v254_v2 = vld [vmem:[%s1948_s5 + $0x8] sm:$0xff]  ;;  %p224_p7 = scmp.lt.s32.totalorder %s1845_s16, 1 }
  0x51   : > { %v257_v1 = vld [vmem:[%s1948_s5 + $0x20] sm:$0xff]  ;;  %v258_v4 = vld [vmem:[%s1948_s5 + $0x28] sm:$0xff]  ;;  %v232_v54 = vld [vmem:[%s2369_s0 + $0x18] sm:$0xff] }
  0x52   : > { %v1524_v3 = vcombine.high %v253_v0, %v257_v1  ;;  %v1523_v5 = vcombine.low %v253_v0, %v257_v1  ;;  %v261_v6 = vld [vmem:[%s1948_s5 + $0x40] sm:$0xff]  ;;  %v1526_v8 = vcombine.high %v254_v2, %v258_v4  ;;  %v1525_v9 = vcombine.low %v254_v2, %v258_v4  ;;  %v262_v11 = vld [vmem:[%s1948_s5 + $0x48] sm:$0xff]  ;;  %s2385_s16 = smov (!%p224_p7, %s1845_s16), 1 }
  0x53   : > { %v265_v7 = vld [vmem:[%s1948_s5 + $0x60] sm:$0xff]  ;;  %v266_v12 = vld [vmem:[%s1948_s5 + $0x68] sm:$0xff] }
  0x54   : > { %v1532_v10 = vcombine.high %v261_v6, %v265_v7  ;;  %v269_v13 = vld [vmem:[%s1948_s5 + $0x80] sm:$0xff]  ;;  %1063 = vmatprep.subr.bf16.mxu0 %v1524_v3  ;;  %v1534_v14 = vcombine.high %v262_v11, %v266_v12  ;;  %v270_v16 = vld [vmem:[%s1948_s5 + $0x88] sm:$0xff]  ;;  %1136 = vmatprep.subr.bf16.mxu1 %v1526_v8  ;;  %v1531_v18 = vcombine.low %v261_v6, %v265_v7 }
  0x55   : > { %v273_v15 = vld [vmem:[%s1948_s5 + $0xa0] sm:$0xff]  ;;  %v274_v17 = vld [vmem:[%s1948_s5 + $0xa8] sm:$0xff]  ;;  %1064 = vmatpush1.bf16.msra.mxu0 %v1523_v5  ;;  %1137 = vmatpush1.bf16.msra.mxu1 %v1525_v9  ;;  %v1533_v19 = vcombine.low %v262_v11, %v266_v12 }
  0x56   : > { %1065 = vmatprep.subr.bf16.mxu0 %v1532_v10  ;;  %v1540_v20 = vcombine.high %v269_v13, %v273_v15  ;;  %1138 = vmatprep.subr.bf16.mxu1 %v1534_v14  ;;  %v1542_v21 = vcombine.high %v270_v16, %v274_v17  ;;  %v277_v22 = vld [vmem:[%s1948_s5 + $0xc0] sm:$0xff]  ;;  %v278_v24 = vld [vmem:[%s1948_s5 + $0xc8] sm:$0xff]  ;;  %v1539_v26 = vcombine.low %v269_v13, %v273_v15 }
  0x57   : > { %v281_v23 = vld [vmem:[%s1948_s5 + $0xe0] sm:$0xff]  ;;  %v282_v25 = vld [vmem:[%s1948_s5 + $0xe8] sm:$0xff]  ;;  %v1541_v27 = vcombine.low %v270_v16, %v274_v17 }
  0x58   : > { %v1548_v28 = vcombine.high %v277_v22, %v281_v23  ;;  %v1550_v29 = vcombine.high %v278_v24, %v282_v25  ;;  %v285_v30 = vld [vmem:[%s1948_s5 + $0x100] sm:$0xff]  ;;  %v286_v32 = vld [vmem:[%s1948_s5 + $0x108] sm:$0xff]  ;;  %v1547_v34 = vcombine.low %v277_v22, %v281_v23  ;;  %v1549_v35 = vcombine.low %v278_v24, %v282_v25 }
  0x59   : > { %1066 = vmatpush1.bf16.msra.mxu0 %v1531_v18  ;;  %1139 = vmatpush1.bf16.msra.mxu1 %v1533_v19  ;;  %v289_v31 = vld [vmem:[%s1948_s5 + $0x120] sm:$0xff]  ;;  %v290_v33 = vld [vmem:[%s1948_s5 + $0x128] sm:$0xff] }
  0x5a   : > { %1067 = vmatprep.subr.bf16.mxu0 %v1540_v20  ;;  %1140 = vmatprep.subr.bf16.mxu1 %v1542_v21  ;;  %v1556_v36 = vcombine.high %v285_v30, %v289_v31  ;;  %v1558_v37 = vcombine.high %v286_v32, %v290_v33  ;;  %v293_v38 = vld [vmem:[%s1948_s5 + $0x140] sm:$0xff]  ;;  %v294_v40 = vld [vmem:[%s1948_s5 + $0x148] sm:$0xff]  ;;  %v1555_v42 = vcombine.low %v285_v30, %v289_v31 }
  0x5b   : > { %v297_v39 = vld [vmem:[%s1948_s5 + $0x160] sm:$0xff]  ;;  %v298_v41 = vld [vmem:[%s1948_s5 + $0x168] sm:$0xff]  ;;  %v1557_v43 = vcombine.low %v286_v32, %v290_v33 }
  0x5c   : > { %v1564_v44 = vcombine.high %v293_v38, %v297_v39  ;;  %v1566_v45 = vcombine.high %v294_v40, %v298_v41  ;;  %v301_v46 = vld [vmem:[%s1948_s5 + $0x180] sm:$0xff]  ;;  %v302_v48 = vld [vmem:[%s1948_s5 + $0x188] sm:$0xff]  ;;  %v1563_v50 = vcombine.low %v293_v38, %v297_v39  ;;  %v1565_v51 = vcombine.low %v294_v40, %v298_v41 }
  0x5d   : > { %1068 = vmatpush1.bf16.msra.mxu0 %v1539_v26  ;;  %1141 = vmatpush1.bf16.msra.mxu1 %v1541_v27  ;;  %v305_v47 = vld [vmem:[%s1948_s5 + $0x1a0] sm:$0xff]  ;;  %v306_v49 = vld [vmem:[%s1948_s5 + $0x1a8] sm:$0xff] }
  0x5e   : > { %1069 = vmatprep.subr.bf16.mxu0 %v1548_v28  ;;  %1142 = vmatprep.subr.bf16.mxu1 %v1550_v29  ;;  %v1572_v52 = vcombine.high %v301_v46, %v305_v47  ;;  %v230_v53 = vld [vmem:[%s2369_s0 + $0x8] sm:$0xff]  ;;  %v1574_v55 = vcombine.high %v302_v48, %v306_v49  ;;  %v309_v56 = vld [vmem:[%s1948_s5 + $0x1c0] sm:$0xff]  ;;  %v1571_v61 = vcombine.low %v301_v46, %v305_v47 }
  0x5f   : > { %v313_v57 = vld [vmem:[%s1948_s5 + $0x1e0] sm:$0xff]  ;;  %v1996_v58 = vpack.c.bf16 %v232_v54, %v230_v53  ;;  %v310_v59 = vld [vmem:[%s1948_s5 + $0x1c8] sm:$0xff]  ;;  %v1573_v62 = vcombine.low %v302_v48, %v306_v49 }
  0x60   : > { %v314_v60 = vld [vmem:[%s1948_s5 + $0x1e8] sm:$0xff]  ;;  %v1580_v63 = vcombine.high %v309_v56, %v313_v57  ;;  %v317_v1 = vld [vmem:[%s1948_s5 + $0x200] sm:$0xff]  ;;  %v1579_v5 = vcombine.low %v309_v56, %v313_v57 }
  0x61   : > { %1070 = vmatpush1.bf16.msra.mxu0 %v1547_v34  ;;  %1143 = vmatpush1.bf16.msra.mxu1 %v1549_v35  ;;  %v1582_v0 = vcombine.high %v310_v59, %v314_v60  ;;  %v321_v2 = vld [vmem:[%s1948_s5 + $0x220] sm:$0xff]  ;;  %v318_v3 = vld [vmem:[%s1948_s5 + $0x208] sm:$0xff]  ;;  %v1581_v6 = vcombine.low %v310_v59, %v314_v60 }
  0x62   : > { %1071 = vmatprep.subr.bf16.mxu0 %v1556_v36  ;;  %1144 = vmatprep.subr.bf16.mxu1 %v1558_v37  ;;  %v322_v4 = vld [vmem:[%s1948_s5 + $0x228] sm:$0xff]  ;;  %v1588_v7 = vcombine.high %v317_v1, %v321_v2  ;;  %v325_v9 = vld [vmem:[%s1948_s5 + $0x240] sm:$0xff]  ;;  %v1587_v13 = vcombine.low %v317_v1, %v321_v2  ;;  %v255_v2 = vld [vmem:[%s1948_s5 + $0x10] sm:$0xff] }
  0x63   : > { %1095 = vmatprep.mubr.bf16.mxu0 %v1996_v58  ;;  %1168 = vmatprep.mubr.bf16.mxu1 %v1996_v58  ;;  %v1590_v8 = vcombine.high %v318_v3, %v322_v4  ;;  %v329_v10 = vld [vmem:[%s1948_s5 + $0x260] sm:$0xff]  ;;  %v326_v11 = vld [vmem:[%s1948_s5 + $0x248] sm:$0xff]  ;;  %v1589_v14 = vcombine.low %v318_v3, %v322_v4  ;;  %v259_v3 = vld [vmem:[%s1948_s5 + $0x30] sm:$0xff] }
  0x64   : > { %v330_v12 = vld [vmem:[%s1948_s5 + $0x268] sm:$0xff]  ;;  %v1596_v15 = vcombine.high %v325_v9, %v329_v10  ;;  %v333_v17 = vld [vmem:[%s1948_s5 + $0x280] sm:$0xff]  ;;  %v1595_v21 = vcombine.low %v325_v9, %v329_v10  ;;  %v256_v4 = vld [vmem:[%s1948_s5 + $0x18] sm:$0xff]  ;;  %v1528_v10 = vcombine.high %v255_v2, %v259_v3 }
  0x65   : > { %1072 = vmatpush1.bf16.msra.mxu0 %v1555_v42  ;;  %1145 = vmatpush1.bf16.msra.mxu1 %v1557_v43  ;;  %v1598_v16 = vcombine.high %v326_v11, %v330_v12  ;;  %v337_v18 = vld [vmem:[%s1948_s5 + $0x2a0] sm:$0xff]  ;;  %v334_v19 = vld [vmem:[%s1948_s5 + $0x288] sm:$0xff]  ;;  %v1597_v22 = vcombine.low %v326_v11, %v330_v12  ;;  %v263_v12 = vld [vmem:[%s1948_s5 + $0x50] sm:$0xff] }
  0x66   : > { %1073 = vmatprep.subr.bf16.mxu0 %v1564_v44  ;;  %1146 = vmatprep.subr.bf16.mxu1 %v1566_v45  ;;  %v338_v20 = vld [vmem:[%s1948_s5 + $0x2a8] sm:$0xff]  ;;  %v1604_v23 = vcombine.high %v333_v17, %v337_v18  ;;  %v341_v25 = vld [vmem:[%s1948_s5 + $0x2c0] sm:$0xff]  ;;  %v1603_v29 = vcombine.low %v333_v17, %v337_v18  ;;  %v236_v18 = vld [vmem:[%s2369_s0 + $0x38] sm:$0xff] }
  0x67   : > { %v1606_v24 = vcombine.high %v334_v19, %v338_v20  ;;  %v345_v26 = vld [vmem:[%s1948_s5 + $0x2e0] sm:$0xff]  ;;  %v342_v27 = vld [vmem:[%s1948_s5 + $0x2c8] sm:$0xff]  ;;  %v1605_v30 = vcombine.low %v334_v19, %v338_v20  ;;  %v1527_v19 = vcombine.low %v255_v2, %v259_v3 }
  0x68   : > { %v346_v28 = vld [vmem:[%s1948_s5 + $0x2e8] sm:$0xff]  ;;  %v1612_v31 = vcombine.high %v341_v25, %v345_v26  ;;  %v349_v33 = vld [vmem:[%s1948_s5 + $0x300] sm:$0xff]  ;;  %v1611_v37 = vcombine.low %v341_v25, %v345_v26  ;;  %v272_v26 = vld [vmem:[%s1948_s5 + $0x98] sm:$0xff] }
  0x69   : > { %1074 = vmatpush1.bf16.msra.mxu0 %v1563_v50  ;;  %1147 = vmatpush1.bf16.msra.mxu1 %v1565_v51  ;;  %v1614_v32 = vcombine.high %v342_v27, %v346_v28  ;;  %v353_v34 = vld [vmem:[%s1948_s5 + $0x320] sm:$0xff]  ;;  %v350_v35 = vld [vmem:[%s1948_s5 + $0x308] sm:$0xff]  ;;  %v1613_v38 = vcombine.low %v342_v27, %v346_v28  ;;  %v276_v27 = vld [vmem:[%s1948_s5 + $0xb8] sm:$0xff] }
  0x6a   : > { %1075 = vmatprep.subr.bf16.mxu0 %v1572_v52  ;;  %1148 = vmatprep.subr.bf16.mxu1 %v1574_v55  ;;  %v354_v36 = vld [vmem:[%s1948_s5 + $0x328] sm:$0xff]  ;;  %v1620_v39 = vcombine.high %v349_v33, %v353_v34  ;;  %v357_v41 = vld [vmem:[%s1948_s5 + $0x340] sm:$0xff]  ;;  %v1619_v45 = vcombine.low %v349_v33, %v353_v34  ;;  %v1546_v33 = vcombine.high %v272_v26, %v276_v27  ;;  %v279_v34 = vld [vmem:[%s1948_s5 + $0xd0] sm:$0xff] }
  0x6b   : > { %v1622_v40 = vcombine.high %v350_v35, %v354_v36  ;;  %v361_v42 = vld [vmem:[%s1948_s5 + $0x360] sm:$0xff]  ;;  %v358_v43 = vld [vmem:[%s1948_s5 + $0x348] sm:$0xff]  ;;  %v1621_v46 = vcombine.low %v350_v35, %v354_v36  ;;  %v283_v35 = vld [vmem:[%s1948_s5 + $0xf0] sm:$0xff] }
  0x6c   : > { %v362_v44 = vld [vmem:[%s1948_s5 + $0x368] sm:$0xff]  ;;  %v1628_v47 = vcombine.high %v357_v41, %v361_v42  ;;  %v365_v49 = vld [vmem:[%s1948_s5 + $0x380] sm:$0xff]  ;;  %v1627_v53 = vcombine.low %v357_v41, %v361_v42  ;;  %v280_v36 = vld [vmem:[%s1948_s5 + $0xd8] sm:$0xff]  ;;  %v1545_v42 = vcombine.low %v272_v26, %v276_v27 }
  0x6d   : > { %1076 = vmatpush1.bf16.msra.mxu0 %v1571_v61  ;;  %1149 = vmatpush1.bf16.msra.mxu1 %v1573_v62  ;;  %v1630_v48 = vcombine.high %v358_v43, %v362_v44  ;;  %v369_v50 = vld [vmem:[%s1948_s5 + $0x3a0] sm:$0xff]  ;;  %v366_v51 = vld [vmem:[%s1948_s5 + $0x388] sm:$0xff]  ;;  %v1629_v54 = vcombine.low %v358_v43, %v362_v44  ;;  %v1552_v43 = vcombine.high %v279_v34, %v283_v35  ;;  %v319_v26 = vld [vmem:[%s1948_s5 + $0x210] sm:$0xff] }
  0x6e   : > { %1077 = vmatprep.subr.bf16.mxu0 %v1580_v63  ;;  %1150 = vmatprep.subr.bf16.mxu1 %v1582_v0  ;;  %v370_v52 = vld [vmem:[%s1948_s5 + $0x3a8] sm:$0xff]  ;;  %v1636_v55 = vcombine.high %v365_v49, %v369_v50  ;;  %v373_v57 = vld [vmem:[%s1948_s5 + $0x3c0] sm:$0xff]  ;;  %v1635_v62 = vcombine.low %v365_v49, %v369_v50  ;;  %v292_v49 = vld [vmem:[%s1948_s5 + $0x138] sm:$0xff]  ;;  %v1551_v50 = vcombine.low %v279_v34, %v283_v35 }
  0x6f   : > { %v1638_v56 = vcombine.high %v366_v51, %v370_v52  ;;  %v377_v59 = vld [vmem:[%s1948_s5 + $0x3e0] sm:$0xff]  ;;  %v374_v60 = vld [vmem:[%s1948_s5 + $0x3c8] sm:$0xff]  ;;  %v1637_v63 = vcombine.low %v366_v51, %v370_v52  ;;  %v239_v52 = vld [vmem:[%s2369_s0 + $0x50] sm:$0xff] }
  0x70   : > { %v378_v61 = vld [vmem:[%s1948_s5 + $0x3e8] sm:$0xff]  ;;  %v1644_v0 = vcombine.high %v373_v57, %v377_v59  ;;  %v237_v51 = vld [vmem:[%s2369_s0 + $0x40] sm:$0xff]  ;;  %v323_v27 = vld [vmem:[%s1948_s5 + $0x230] sm:$0xff] }
  0x71   : > { %1078 = vmatpush1.bf16.msra.mxu0 %v1579_v5  ;;  %1151 = vmatpush1.bf16.msra.mxu1 %v1581_v6  ;;  %v1646_v1 = vcombine.high %v374_v60, %v378_v61  ;;  %v260_v5 = vld [vmem:[%s1948_s5 + $0x38] sm:$0xff]  ;;  %v1643_v6 = vcombine.low %v373_v57, %v377_v59  ;;  %v1645_v9 = vcombine.low %v374_v60, %v378_v61  ;;  %v234_v17 = vld [vmem:[%s2369_s0 + $0x28] sm:$0xff]  ;;  %v299_v57 = vld [vmem:[%s1948_s5 + $0x170] sm:$0xff] }
  0x72   : > { %1079 = vmatprep.subr.bf16.mxu0 %v1588_v7  ;;  %1152 = vmatprep.subr.bf16.mxu1 %v1590_v8  ;;  %v229_v7 = vld [vmem:[%s2369_s0] sm:$0xff]  ;;  %v231_v8 = vld [vmem:[%s2369_s0 + $0x10] sm:$0xff]  ;;  %v1530_v11 = vcombine.high %v256_v4, %v260_v5  ;;  %v1529_v20 = vcombine.low %v256_v4, %v260_v5  ;;  %v2058_v25 = vpack.c.bf16 %v236_v18, %v234_v17  ;;  %v296_v59 = vld [vmem:[%s1948_s5 + $0x158] sm:$0xff] }
  0x73   : > { %v300_v60 = vld [vmem:[%s1948_s5 + $0x178] sm:$0xff]  ;;  %v2104_v61 = vpack.c.bf16 %v239_v52, %v237_v51  ;;  %v303_v4 = vld [vmem:[%s1948_s5 + $0x190] sm:$0xff] }
  0x74   : > { %v1570_v3 = vcombine.high %v296_v59, %v300_v60  ;;  %v307_v5 = vld [vmem:[%s1948_s5 + $0x1b0] sm:$0xff]  ;;  %v312_v18 = vld [vmem:[%s1948_s5 + $0x1d8] sm:$0xff] }
  0x75   : > { %1080 = vmatpush1.bf16.msra.mxu0 %v1587_v13  ;;  %1153 = vmatpush1.bf16.msra.mxu1 %v1589_v14  ;;  %v267_v13 = vld [vmem:[%s1948_s5 + $0x70] sm:$0xff]  ;;  %v264_v14 = vld [vmem:[%s1948_s5 + $0x58] sm:$0xff] }
  0x76   : > { %1081 = vmatprep.subr.bf16.mxu0 %v1596_v15  ;;  %1154 = vmatprep.subr.bf16.mxu1 %v1598_v16  ;;  %v2047_v15 = vpack.c.bf16 %v231_v8, %v229_v7  ;;  %v268_v16 = vld [vmem:[%s1948_s5 + $0x78] sm:$0xff]  ;;  %v1535_v28 = vcombine.low %v263_v12, %v267_v13  ;;  %v315_v17 = vld [vmem:[%s1948_s5 + $0x1f0] sm:$0xff] }
  0x77   : > { %v304_v7 = vld [vmem:[%s1948_s5 + $0x198] sm:$0xff]  ;;  %v327_v34 = vld [vmem:[%s1948_s5 + $0x250] sm:$0xff] }
  0x78   : > { %v308_v8 = vld [vmem:[%s1948_s5 + $0x1b8] sm:$0xff]  ;;  %v331_v35 = vld [vmem:[%s1948_s5 + $0x270] sm:$0xff] }
  0x79   : > { %1082 = vmatpush1.bf16.msra.mxu0 %v1595_v21  ;;  %1155 = vmatpush1.bf16.msra.mxu1 %v1597_v22  ;;  %v1536_v21 = vcombine.high %v263_v12, %v267_v13  ;;  %v1538_v22 = vcombine.high %v264_v14, %v268_v16  ;;  %v1569_v12 = vcombine.low %v296_v59, %v300_v60  ;;  %v343_v51 = vld [vmem:[%s1948_s5 + $0x2d0] sm:$0xff] }
  0x7a   : > { %1083 = vmatprep.subr.bf16.mxu0 %v1604_v23  ;;  %1156 = vmatprep.subr.bf16.mxu1 %v1606_v24  ;;  %v271_v23 = vld [vmem:[%s1948_s5 + $0x90] sm:$0xff]  ;;  %v1576_v13 = vcombine.high %v303_v4, %v307_v5 }
  0x7b   : > { %v275_v24 = vld [vmem:[%s1948_s5 + $0xb0] sm:$0xff] }
  0x7c   : > { %v1543_v41 = vcombine.low %v271_v23, %v275_v24  ;;  %v347_v52 = vld [vmem:[%s1948_s5 + $0x2f0] sm:$0xff] }
  0x7d   : > { %1084 = vmatpush1.bf16.msra.mxu0 %v1603_v29  ;;  %1157 = vmatpush1.bf16.msra.mxu1 %v1605_v30  ;;  %v233_v29 = vld [vmem:[%s2369_s0 + $0x20] sm:$0xff]  ;;  %v235_v30 = vld [vmem:[%s2369_s0 + $0x30] sm:$0xff] }
  0x7e   : > { %1085 = vmatprep.subr.bf16.mxu0 %v1612_v31  ;;  %1158 = vmatprep.subr.bf16.mxu1 %v1614_v32  ;;  %v1537_v31 = vcombine.low %v264_v14, %v268_v16  ;;  %v1544_v32 = vcombine.high %v271_v23, %v275_v24  ;;  %v1578_v14 = vcombine.high %v304_v7, %v308_v8  ;;  %v311_v16 = vld [vmem:[%s1948_s5 + $0x1d0] sm:$0xff] }
  0x7f   : > { %v1584_v23 = vcombine.high %v311_v16, %v315_v17  ;;  %v351_v60 = vld [vmem:[%s1948_s5 + $0x310] sm:$0xff] }
  0x81   : > { %1086 = vmatpush1.bf16.msra.mxu0 %v1611_v37  ;;  %1159 = vmatpush1.bf16.msra.mxu1 %v1613_v38  ;;  %v284_v37 = vld [vmem:[%s1948_s5 + $0xf8] sm:$0xff]  ;;  %v2076_v38 = vpack.c.bf16 %v235_v30, %v233_v29  ;;  %v1583_v30 = vcombine.low %v311_v16, %v315_v17  ;;  %v371_v16 = vld [vmem:[%s1948_s5 + $0x3b0] sm:$0xff] }
  0x82   : > { %1087 = vmatprep.subr.bf16.mxu0 %v1620_v39  ;;  %1160 = vmatprep.subr.bf16.mxu1 %v1622_v40  ;;  %v238_v39 = vld [vmem:[%s2369_s0 + $0x48] sm:$0xff]  ;;  %v240_v40 = vld [vmem:[%s2369_s0 + $0x58] sm:$0xff]  ;;  %v1554_v44 = vcombine.high %v280_v36, %v284_v37 }
  0x83   : > { %v324_v29 = vld [vmem:[%s1948_s5 + $0x238] sm:$0xff] }
  0x84   : > { %v368_v17 = vld [vmem:[%s1948_s5 + $0x398] sm:$0xff] }
  0x85   : > { %1088 = vmatpush1.bf16.msra.mxu0 %v1619_v45  ;;  %1161 = vmatpush1.bf16.msra.mxu1 %v1621_v46  ;;  %v287_v45 = vld [vmem:[%s1948_s5 + $0x110] sm:$0xff] }
  0x86   : > { %1089 = vmatprep.subr.bf16.mxu0 %v1628_v47  ;;  %1162 = vmatprep.subr.bf16.mxu1 %v1630_v48  ;;  %v291_v46 = vld [vmem:[%s1948_s5 + $0x130] sm:$0xff]  ;;  %v2086_v47 = vpack.c.bf16 %v240_v40, %v238_v39  ;;  %v288_v48 = vld [vmem:[%s1948_s5 + $0x118] sm:$0xff]  ;;  %v1591_v39 = vcombine.low %v319_v26, %v323_v27 }
  0x89   : > { %1090 = vmatpush1.bf16.msra.mxu0 %v1627_v53  ;;  %1163 = vmatpush1.bf16.msra.mxu1 %v1629_v54  ;;  %v1553_v53 = vcombine.low %v280_v36, %v284_v37  ;;  %v1560_v54 = vcombine.high %v287_v45, %v291_v46  ;;  %v328_v36 = vld [vmem:[%s1948_s5 + $0x258] sm:$0xff] }
  0x8a   : > { %1091 = vmatprep.subr.bf16.mxu0 %v1636_v55  ;;  %1164 = vmatprep.subr.bf16.mxu1 %v1638_v56  ;;  %v1562_v55 = vcombine.high %v288_v48, %v292_v49  ;;  %v295_v56 = vld [vmem:[%s1948_s5 + $0x150] sm:$0xff]  ;;  %v332_v37 = vld [vmem:[%s1948_s5 + $0x278] sm:$0xff] }
  0x8b   : > { %v1568_v2 = vcombine.high %v295_v56, %v299_v57 }
  0x8d   : > { %1092 = vmatpush1.bf16.msra.mxu0 %v1635_v62  ;;  %1165 = vmatpush1.bf16.msra.mxu1 %v1637_v63  ;;  %v242_v62 = vld [vmem:[%s2369_s0 + $0x68] sm:$0xff]  ;;  %v244_v63 = vld [vmem:[%s2369_s0 + $0x78] sm:$0xff] }
  0x8e   : > { %1093 = vmatprep.subr.bf16.mxu0 %v1644_v0  ;;  %1166 = vmatprep.subr.bf16.mxu1 %v1646_v1  ;;  %v1559_v0 = vcombine.low %v287_v45, %v291_v46  ;;  %v1561_v1 = vcombine.low %v288_v48, %v292_v49  ;;  %v336_v45 = vld [vmem:[%s1948_s5 + $0x298] sm:$0xff]  ;;  %v1599_v48 = vcombine.low %v327_v34, %v331_v35 }
  0x8f   : > { %v340_v46 = vld [vmem:[%s1948_s5 + $0x2b8] sm:$0xff] }
  0x91   : > { %1094 = vmatpush1.bf16.msra.mxu0 %v1643_v6  ;;  %1167 = vmatpush1.bf16.msra.mxu1 %v1645_v9  ;;  %v2114_v6 = vpack.c.bf16 %v244_v63, %v242_v62  ;;  %v1567_v9 = vcombine.low %v295_v56, %v299_v57  ;;  %v1609_v56 = vcombine.low %v336_v45, %v340_v46  ;;  %v355_v62 = vld [vmem:[%s1948_s5 + $0x330] sm:$0xff]  ;;  %v352_v63 = vld [vmem:[%s1948_s5 + $0x318] sm:$0xff] }
  0x92   : > { %1209 = vmatprep.subr.bf16.mxu0 %v1528_v10  ;;  %1282 = vmatprep.subr.bf16.mxu1 %v1530_v11  ;;  %v241_v10 = vld [vmem:[%s2369_s0 + $0x60] sm:$0xff]  ;;  %v243_v11 = vld [vmem:[%s2369_s0 + $0x70] sm:$0xff]  ;;  %v1616_v57 = vcombine.high %v343_v51, %v347_v52 }
  0x94   : > { %1096 = vmatmul.mubr.bf16.vlgmr.msra.gmra.mrb[0].mxu0 %v2047_v15  ;;  %1169 = vmatmul.mubr.bf16.vlgmr.msra.gmra.mrb[0].mxu1 %v2047_v15 }
  0x95   : > { %1210 = vmatpush1.bf16.msra.mxu0 %v1527_v19  ;;  %1283 = vmatpush1.bf16.msra.mxu1 %v1529_v20  ;;  %v316_v19 = vld [vmem:[%s1948_s5 + $0x1f8] sm:$0xff]  ;;  %v2132_v20 = vpack.c.bf16 %v243_v11, %v241_v10  ;;  %v1623_v10 = vcombine.low %v351_v60, %v355_v62 }
  0x96   : > { %1211 = vmatprep.subr.bf16.mxu0 %v1536_v21  ;;  %1284 = vmatprep.subr.bf16.mxu1 %v1538_v22  ;;  %v1575_v21 = vcombine.low %v303_v4, %v307_v5  ;;  %v1577_v22 = vcombine.low %v304_v7, %v308_v8  ;;  %v1586_v24 = vcombine.high %v312_v18, %v316_v19  ;;  %v359_v5 = vld [vmem:[%s1948_s5 + $0x350] sm:$0xff]  ;;  %v360_v8 = vld [vmem:[%s1948_s5 + $0x358] sm:$0xff] }
  0x97   : > { %1105 = vmatprep.mubr.bf16.mxu0 %v2058_v25  ;;  %1178 = vmatprep.mubr.bf16.mxu1 %v2058_v25  ;;  %v363_v7 = vld [vmem:[%s1948_s5 + $0x370] sm:$0xff] }
  0x99   : > { %1212 = vmatpush1.bf16.msra.mxu0 %v1535_v28  ;;  %1285 = vmatpush1.bf16.msra.mxu1 %v1537_v31  ;;  %v320_v28 = vld [vmem:[%s1948_s5 + $0x218] sm:$0xff]  ;;  %v1585_v31 = vcombine.low %v312_v18, %v316_v19  ;;  %v1631_v19 = vcombine.low %v359_v5, %v363_v7 }
  0x9a   : > { %1213 = vmatprep.subr.bf16.mxu0 %v1544_v32  ;;  %1286 = vmatprep.subr.bf16.mxu1 %v1546_v33  ;;  %v1592_v32 = vcombine.high %v319_v26, %v323_v27  ;;  %v1594_v33 = vcombine.high %v320_v28, %v324_v29  ;;  %v1593_v40 = vcombine.low %v320_v28, %v324_v29  ;;  %v372_v18 = vld [vmem:[%s1948_s5 + $0x3b8] sm:$0xff]  ;;  %v379_v26 = vld [vmem:[%s1948_s5 + $0x3f0] sm:$0xff] }
  0x9b   : > { %v376_v27 = vld [vmem:[%s1948_s5 + $0x3d8] sm:$0xff] }
  0x9c   : > { %1106 = vmatmul.mubr.bf16.gmra.mrb[4].mxu0 %v2076_v38  ;;  %1179 = vmatmul.mubr.bf16.gmra.mrb[4].mxu1 %v2076_v38  ;;  %v380_v28 = vld [vmem:[%s1948_s5 + $0x3f8] sm:$0xff] }
  0x9d   : > { %1214 = vmatpush1.bf16.msra.mxu0 %v1543_v41  ;;  %1287 = vmatpush1.bf16.msra.mxu1 %v1545_v42  ;;  %v1600_v41 = vcombine.high %v327_v34, %v331_v35  ;;  %v1602_v42 = vcombine.high %v328_v36, %v332_v37  ;;  %v1649_v34 = vcombine.low %v376_v27, %v380_v28 }
  0x9e   : > { %1215 = vmatprep.subr.bf16.mxu0 %v1552_v43  ;;  %1288 = vmatprep.subr.bf16.mxu1 %v1554_v44  ;;  %v335_v43 = vld [vmem:[%s1948_s5 + $0x290] sm:$0xff] }
  0x9f   : > { %1115 = vmatprep.mubr.bf16.mxu0 %v2086_v47  ;;  %1188 = vmatprep.mubr.bf16.mxu1 %v2086_v47  ;;  %v339_v44 = vld [vmem:[%s1948_s5 + $0x2b0] sm:$0xff] }
  0xa0   : > { %v1608_v49 = vcombine.high %v335_v43, %v339_v44 }
  0xa1   : > { %1216 = vmatpush1.bf16.msra.mxu0 %v1551_v50  ;;  %1289 = vmatpush1.bf16.msra.mxu1 %v1553_v53  ;;  %v1610_v50 = vcombine.high %v336_v45, %v340_v46  ;;  %v344_v53 = vld [vmem:[%s1948_s5 + $0x2d8] sm:$0xff] }
  0xa2   : > { %1217 = vmatprep.subr.bf16.mxu0 %v1560_v54  ;;  %1290 = vmatprep.subr.bf16.mxu1 %v1562_v55  ;;  %v348_v54 = vld [vmem:[%s1948_s5 + $0x2f8] sm:$0xff]  ;;  %v1607_v55 = vcombine.low %v335_v43, %v339_v44 }
  0xa3   : > { %v1618_v59 = vcombine.high %v344_v53, %v348_v54 }
  0xa4   : > { %1116 = vmatmul.mubr.bf16.gmra.mrb[8].mxu0 %v2104_v61  ;;  %1189 = vmatmul.mubr.bf16.gmra.mrb[8].mxu1 %v2104_v61 }
  0xa5   : > { %1218 = vmatpush1.bf16.msra.mxu0 %v1559_v0  ;;  %1291 = vmatpush1.bf16.msra.mxu1 %v1561_v1  ;;  %v356_v0 = vld [vmem:[%s1948_s5 + $0x338] sm:$0xff]  ;;  %v1615_v1 = vcombine.low %v343_v51, %v347_v52 }
  0xa6   : > { %1219 = vmatprep.subr.bf16.mxu0 %v1568_v2  ;;  %1292 = vmatprep.subr.bf16.mxu1 %v1570_v3  ;;  %v1617_v2 = vcombine.low %v344_v53, %v348_v54  ;;  %v1624_v3 = vcombine.high %v351_v60, %v355_v62  ;;  %v1626_v4 = vcombine.high %v352_v63, %v356_v0 }
  0xa7   : > { %1125 = vmatprep.mubr.bf16.mxu0 %v2114_v6  ;;  %1198 = vmatprep.mubr.bf16.mxu1 %v2114_v6  ;;  %v1625_v11 = vcombine.low %v352_v63, %v356_v0 }
  0xa9   : > { %1220 = vmatpush1.bf16.msra.mxu0 %v1567_v9  ;;  %1293 = vmatpush1.bf16.msra.mxu1 %v1569_v12  ;;  %v364_v9 = vld [vmem:[%s1948_s5 + $0x378] sm:$0xff]  ;;  %v1632_v12 = vcombine.high %v359_v5, %v363_v7 }
  0xaa   : > { %1221 = vmatprep.subr.bf16.mxu0 %v1576_v13  ;;  %1294 = vmatprep.subr.bf16.mxu1 %v1578_v14  ;;  %v1634_v13 = vcombine.high %v360_v8, %v364_v9  ;;  %v367_v14 = vld [vmem:[%s1948_s5 + $0x390] sm:$0xff] }
  0xab   : > { %v1639_v29 = vcombine.low %v367_v14, %v371_v16 }
  0xac   : > { %1126 = vmatmul.mubr.bf16.gmra.mrb[12].mxu0 %v2132_v20  ;;  %1199 = vmatmul.mubr.bf16.gmra.mrb[12].mxu1 %v2132_v20 }
  0xad   : > { %1222 = vmatpush1.bf16.msra.mxu0 %v1575_v21  ;;  %1295 = vmatpush1.bf16.msra.mxu1 %v1577_v22  ;;  %v1633_v21 = vcombine.low %v360_v8, %v364_v9  ;;  %v1640_v22 = vcombine.high %v367_v14, %v371_v16 }
  0xae   : > { %1223 = vmatprep.subr.bf16.mxu0 %v1584_v23  ;;  %1296 = vmatprep.subr.bf16.mxu1 %v1586_v24  ;;  %v1642_v23 = vcombine.high %v368_v17, %v372_v18  ;;  %v375_v24 = vld [vmem:[%s1948_s5 + $0x3d0] sm:$0xff]  ;;  %s1655_s5 = sshll.u32 %s2385_s16, 9 }
  0xaf   : > { %1241 = vmatprep.mubr.bf16.mxu0 %v1996_v58  ;;  %1314 = vmatprep.mubr.bf16.mxu1 %v1996_v58  ;;  %v1601_v58 = vcombine.low %v328_v36, %v332_v37  ;;  %s2210_s19 = scalar_lea.vmem %s2372_s3, %s1655_s5 }
  0xb1   : > { %1224 = vmatpush1.bf16.msra.mxu0 %v1583_v30  ;;  %1297 = vmatpush1.bf16.msra.mxu1 %v1585_v31  ;;  %v1641_v30 = vcombine.low %v368_v17, %v372_v18  ;;  %v1648_v31 = vcombine.high %v375_v24, %v379_v26 }
  0xb2   : > { %1225 = vmatprep.subr.bf16.mxu0 %v1592_v32  ;;  %1298 = vmatprep.subr.bf16.mxu1 %v1594_v33  ;;  %v1650_v32 = vcombine.high %v376_v27, %v380_v28  ;;  %v1647_v33 = vcombine.low %v375_v24, %v379_v26 }
  0xb5   : > { %1226 = vmatpush1.bf16.msra.mxu0 %v1591_v39  ;;  %1299 = vmatpush1.bf16.msra.mxu1 %v1593_v40 }
  0xb6   : > { %1227 = vmatprep.subr.bf16.mxu0 %v1600_v41  ;;  %1300 = vmatprep.subr.bf16.mxu1 %v1602_v42 }
  0xb9   : > { %1228 = vmatpush1.bf16.msra.mxu0 %v1599_v48  ;;  %1301 = vmatpush1.bf16.msra.mxu1 %v1601_v58 }
  0xba   : > { %1229 = vmatprep.subr.bf16.mxu0 %v1608_v49  ;;  %1302 = vmatprep.subr.bf16.mxu1 %v1610_v50 }
  0xbd   : > { %1230 = vmatpush1.bf16.msra.mxu0 %v1607_v55  ;;  %1303 = vmatpush1.bf16.msra.mxu1 %v1609_v56 }
  0xbe   : > { %1231 = vmatprep.subr.bf16.mxu0 %v1616_v57  ;;  %1304 = vmatprep.subr.bf16.mxu1 %v1618_v59 }
  0xc1   : > { %1232 = vmatpush1.bf16.msra.mxu0 %v1615_v1  ;;  %1305 = vmatpush1.bf16.msra.mxu1 %v1617_v2 }
  0xc2   : > { %1233 = vmatprep.subr.bf16.mxu0 %v1624_v3  ;;  %1306 = vmatprep.subr.bf16.mxu1 %v1626_v4 }
  0xc5   : > { %1234 = vmatpush1.bf16.msra.mxu0 %v1623_v10  ;;  %1307 = vmatpush1.bf16.msra.mxu1 %v1625_v11 }
  0xc6   : > { %1235 = vmatprep.subr.bf16.mxu0 %v1632_v12  ;;  %1308 = vmatprep.subr.bf16.mxu1 %v1634_v13 }
  0xc9   : > { %1236 = vmatpush1.bf16.msra.mxu0 %v1631_v19  ;;  %1309 = vmatpush1.bf16.msra.mxu1 %v1633_v21 }
  0xca   : > { %1237 = vmatprep.subr.bf16.mxu0 %v1640_v22  ;;  %1310 = vmatprep.subr.bf16.mxu1 %v1642_v23 }
  0xcd   : > { %1238 = vmatpush1.bf16.msra.mxu0 %v1639_v29  ;;  %1311 = vmatpush1.bf16.msra.mxu1 %v1641_v30 }
  0xce   : > { %1239 = vmatprep.subr.bf16.mxu0 %v1648_v31  ;;  %1312 = vmatprep.subr.bf16.mxu1 %v1650_v32 }
  0xd1   : > { %1240 = vmatpush1.bf16.msra.mxu0 %v1647_v33  ;;  %1313 = vmatpush1.bf16.msra.mxu1 %v1649_v34 }
  0xd4   : > { %1242 = vmatmul.mubr.bf16.vlgmr.msra.gmra.mrb[16].mxu0 %v2047_v15  ;;  %1315 = vmatmul.mubr.bf16.vlgmr.msra.gmra.mrb[16].mxu1 %v2047_v15  ;;  %v383_v15 = vlaneseq }
  0xd5   : > { %1251 = vmatprep.mubr.bf16.mxu0 %v2058_v25  ;;  %1324 = vmatprep.mubr.bf16.mxu1 %v2058_v25 }
  0xd6   : > { %v2185_v25 = vshrl.u32 %v383_v15, 7 }
  0xd8   : > { %v393_v35 = vsub.s32 2, %v2185_v25  ;;  %v397_v36 = vsub.s32 3, %v2185_v25 }
  0xdc   : > { %1252 = vmatmul.mubr.bf16.gmra.mrb[20].mxu0 %v2076_v38  ;;  %1325 = vmatmul.mubr.bf16.gmra.mrb[20].mxu1 %v2076_v38  ;;  %v385_v38 = vsub.s32 0, %v2185_v25 }
  0xdd   : > { %1261 = vmatprep.mubr.bf16.mxu0 %v2086_v47  ;;  %1334 = vmatprep.mubr.bf16.mxu1 %v2086_v47  ;;  %v2190_v47 = vld [vmem:[%s1954_s8] sm:$0xff] }
  0xde   : > { %v2205_v39 = vrot.slane %v2190_v47, %v397_v36 }
  0xe4   : > { %1262 = vmatmul.mubr.bf16.gmra.mrb[24].mxu0 %v2104_v61  ;;  %1335 = vmatmul.mubr.bf16.gmra.mrb[24].mxu1 %v2104_v61  ;;  %v389_v61 = vsub.s32 1, %v2185_v25 }
  0xe5   : > { %1271 = vmatprep.mubr.bf16.mxu0 %v2114_v6  ;;  %1344 = vmatprep.mubr.bf16.mxu1 %v2114_v6  ;;  %v2196_v6 = vrot.slane %v2190_v47, %v385_v38 }
  0xe6   : > { %v2202_v37 = vrot.slane %v2190_v47, %v389_v61 }
  0xec   : > { %1272 = vmatmul.mubr.bf16.gmra.mrb[28].mxu0 %v2132_v20  ;;  %1345 = vmatmul.mubr.bf16.gmra.mrb[28].mxu1 %v2132_v20  ;;  %v2199_v20 = vrot.slane %v2190_v47, %v393_v35 }
 0x167   : > { %v1097_v40 = vpop.f32.mrb[0].mxu0  ;;  %v1170_v42 = vpop.f32.mrb[0].mxu1 }
 0x168   : > { %v1098_v41 = vadd.f32 %v1097_v40, %v2196_v6  ;;  %v1099_v43 = vpop.f32.mrb[1].mxu0  ;;  %v1171_v44 = vadd.f32 %v1170_v42, %v2199_v20  ;;  %v1172_v46 = vpop.f32.mrb[1].mxu1 }
 0x169   : > { %v1100_v45 = vadd.f32 %v1099_v43, %v2202_v37  ;;  %v1101_v48 = vpop.f32.mrb[2].mxu0  ;;  %v1173_v58 = vadd.f32 %v1172_v46, %v2205_v39  ;;  %v1174_v50 = vpop.f32.mrb[2].mxu1  ;;  %v401_v46 = vsub.s32 4, %v2185_v25 }
 0x16a   : > { %1355 = vst [vmem:[%s2210_s19] sm:$0xff] %v1098_v41  ;;  %v1102_v49 = vadd.f32 %v1101_v48, %v2196_v6  ;;  %v1103_v51 = vpop.f32.mrb[3].mxu0  ;;  %1357 = vst [vmem:[%s2210_s19 + $0x10] sm:$0xff] %v1171_v44  ;;  %v1175_v52 = vadd.f32 %v1174_v50, %v2199_v20  ;;  %v1176_v54 = vpop.f32.mrb[3].mxu1  ;;  %v405_v48 = vsub.s32 5, %v2185_v25 }
 0x16b   : > { %1356 = vst [vmem:[%s2210_s19 + $0x8] sm:$0xff] %v1100_v45  ;;  %v1104_v53 = vadd.f32 %v1103_v51, %v2202_v37  ;;  %1358 = vst [vmem:[%s2210_s19 + $0x18] sm:$0xff] %v1173_v58  ;;  %v1177_v55 = vadd.f32 %v1176_v54, %v2205_v39  ;;  %v413_v58 = vsub.s32 7, %v2185_v25 }
 0x16c   : > { %1363 = vst [vmem:[%s2210_s19 + $0x40] sm:$0xff] %v1102_v49  ;;  %1365 = vst [vmem:[%s2210_s19 + $0x50] sm:$0xff] %v1175_v52 }
 0x16d   : > { %1364 = vst [vmem:[%s2210_s19 + $0x48] sm:$0xff] %v1104_v53  ;;  %1366 = vst [vmem:[%s2210_s19 + $0x58] sm:$0xff] %v1177_v55  ;;  %v2290_v49 = vrot.slane %v2190_v47, %v413_v58 }
 0x16f   : > { %v1107_v56 = vpop.f32.mrb[4].mxu0  ;;  %v1180_v59 = vpop.f32.mrb[4].mxu1 }
 0x170   : > { %v1108_v57 = vadd.f32 %v1107_v56, %v2196_v6  ;;  %v1109_v60 = vpop.f32.mrb[5].mxu0  ;;  %v1181_v62 = vadd.f32 %v1180_v59, %v2199_v20  ;;  %v1182_v0 = vpop.f32.mrb[5].mxu1 }
 0x171   : > { %v1110_v63 = vadd.f32 %v1109_v60, %v2202_v37  ;;  %v1111_v1 = vpop.f32.mrb[6].mxu0  ;;  %v1183_v2 = vadd.f32 %v1182_v0, %v2205_v39  ;;  %v1184_v4 = vpop.f32.mrb[6].mxu1 }
 0x172   : > { %1371 = vst [vmem:[%s2210_s19 + $0x80] sm:$0xff] %v1108_v57  ;;  %v1112_v3 = vadd.f32 %v1111_v1, %v2196_v6  ;;  %v1113_v5 = vpop.f32.mrb[7].mxu0  ;;  %1373 = vst [vmem:[%s2210_s19 + $0x90] sm:$0xff] %v1181_v62  ;;  %v1185_v7 = vadd.f32 %v1184_v4, %v2199_v20  ;;  %v1186_v9 = vpop.f32.mrb[7].mxu1 }
 0x173   : > { %1372 = vst [vmem:[%s2210_s19 + $0x88] sm:$0xff] %v1110_v63  ;;  %v1114_v8 = vadd.f32 %v1113_v5, %v2202_v37  ;;  %1374 = vst [vmem:[%s2210_s19 + $0x98] sm:$0xff] %v1183_v2  ;;  %v1187_v10 = vadd.f32 %v1186_v9, %v2205_v39 }
 0x174   : > { %1379 = vst [vmem:[%s2210_s19 + $0xc0] sm:$0xff] %v1112_v3  ;;  %1381 = vst [vmem:[%s2210_s19 + $0xd0] sm:$0xff] %v1185_v7 }
 0x175   : > { %1380 = vst [vmem:[%s2210_s19 + $0xc8] sm:$0xff] %v1114_v8  ;;  %1382 = vst [vmem:[%s2210_s19 + $0xd8] sm:$0xff] %v1187_v10 }
 0x177   : > { %v1117_v11 = vpop.f32.mrb[8].mxu0  ;;  %v1190_v13 = vpop.f32.mrb[8].mxu1 }
 0x178   : > { %v1118_v12 = vadd.f32 %v1117_v11, %v2196_v6  ;;  %v1119_v14 = vpop.f32.mrb[9].mxu0  ;;  %v1191_v16 = vadd.f32 %v1190_v13, %v2199_v20  ;;  %v1192_v18 = vpop.f32.mrb[9].mxu1 }
 0x179   : > { %v1120_v17 = vadd.f32 %v1119_v14, %v2202_v37  ;;  %v1121_v19 = vpop.f32.mrb[10].mxu0  ;;  %v1193_v21 = vadd.f32 %v1192_v18, %v2205_v39  ;;  %v1194_v23 = vpop.f32.mrb[10].mxu1 }
 0x17a   : > { %1387 = vst [vmem:[%s2210_s19 + $0x100] sm:$0xff] %v1118_v12  ;;  %v1122_v22 = vadd.f32 %v1121_v19, %v2196_v6  ;;  %v1123_v24 = vpop.f32.mrb[11].mxu0  ;;  %1389 = vst [vmem:[%s2210_s19 + $0x110] sm:$0xff] %v1191_v16  ;;  %v1195_v26 = vadd.f32 %v1194_v23, %v2199_v20  ;;  %v1196_v28 = vpop.f32.mrb[11].mxu1 }
 0x17b   : > { %1388 = vst [vmem:[%s2210_s19 + $0x108] sm:$0xff] %v1120_v17  ;;  %v1124_v27 = vadd.f32 %v1123_v24, %v2202_v37  ;;  %1390 = vst [vmem:[%s2210_s19 + $0x118] sm:$0xff] %v1193_v21  ;;  %v1197_v29 = vadd.f32 %v1196_v28, %v2205_v39 }
 0x17c   : > { %1395 = vst [vmem:[%s2210_s19 + $0x140] sm:$0xff] %v1122_v22  ;;  %1397 = vst [vmem:[%s2210_s19 + $0x150] sm:$0xff] %v1195_v26 }
 0x17d   : > { %1396 = vst [vmem:[%s2210_s19 + $0x148] sm:$0xff] %v1124_v27  ;;  %1398 = vst [vmem:[%s2210_s19 + $0x158] sm:$0xff] %v1197_v29 }
 0x17f   : > { %v1127_v30 = vpop.f32.mrb[12].mxu0  ;;  %v1200_v32 = vpop.f32.mrb[12].mxu1 }
 0x180   : > { %v1128_v31 = vadd.f32 %v1127_v30, %v2196_v6  ;;  %v1129_v33 = vpop.f32.mrb[13].mxu0  ;;  %v1201_v34 = vadd.f32 %v1200_v32, %v2199_v20  ;;  %v1202_v38 = vpop.f32.mrb[13].mxu1 }
 0x181   : > { %v1130_v15 = vadd.f32 %v1129_v33, %v2202_v37  ;;  %v1131_v35 = vpop.f32.mrb[14].mxu0  ;;  %v1203_v61 = vadd.f32 %v1202_v38, %v2205_v39  ;;  %v1204_v40 = vpop.f32.mrb[14].mxu1 }
 0x182   : > { %1403 = vst [vmem:[%s2210_s19 + $0x180] sm:$0xff] %v1128_v31  ;;  %v1132_v36 = vadd.f32 %v1131_v35, %v2196_v6  ;;  %v1133_v41 = vpop.f32.mrb[15].mxu0  ;;  %1405 = vst [vmem:[%s2210_s19 + $0x190] sm:$0xff] %v1201_v34  ;;  %v1205_v42 = vadd.f32 %v1204_v40, %v2199_v20  ;;  %v1206_v44 = vpop.f32.mrb[15].mxu1  ;;  %v409_v6 = vsub.s32 6, %v2185_v25  ;;  %v2281_v20 = vrot.slane %v2190_v47, %v401_v46 }
 0x183   : > { %1404 = vst [vmem:[%s2210_s19 + $0x188] sm:$0xff] %v1130_v15  ;;  %v1134_v43 = vadd.f32 %v1133_v41, %v2202_v37  ;;  %1406 = vst [vmem:[%s2210_s19 + $0x198] sm:$0xff] %v1203_v61  ;;  %v1207_v45 = vadd.f32 %v1206_v44, %v2205_v39  ;;  %v2287_v39 = vrot.slane %v2190_v47, %v405_v48 }
 0x184   : > { %1411 = vst [vmem:[%s2210_s19 + $0x1c0] sm:$0xff] %v1132_v36  ;;  %1413 = vst [vmem:[%s2210_s19 + $0x1d0] sm:$0xff] %v1205_v42  ;;  %v2284_v37 = vrot.slane %v2190_v47, %v409_v6 }
 0x185   : > { %1412 = vst [vmem:[%s2210_s19 + $0x1c8] sm:$0xff] %v1134_v43  ;;  %1414 = vst [vmem:[%s2210_s19 + $0x1d8] sm:$0xff] %v1207_v45 }
 0x1a7   : > { %v1243_v50 = vpop.f32.mrb[16].mxu0  ;;  %v1316_v52 = vpop.f32.mrb[16].mxu1 }
 0x1a8   : > { %v1244_v51 = vadd.f32 %v1243_v50, %v2281_v20  ;;  %v1245_v25 = vpop.f32.mrb[17].mxu0  ;;  %v1317_v53 = vadd.f32 %v1316_v52, %v2284_v37  ;;  %v1318_v55 = vpop.f32.mrb[17].mxu1 }
 0x1a9   : > { %v1246_v54 = vadd.f32 %v1245_v25, %v2287_v39  ;;  %v1247_v56 = vpop.f32.mrb[18].mxu0  ;;  %v1319_v47 = vadd.f32 %v1318_v55, %v2290_v49  ;;  %v1320_v59 = vpop.f32.mrb[18].mxu1 }
 0x1aa   : > { %1359 = vst [vmem:[%s2210_s19 + $0x20] sm:$0xff] %v1244_v51  ;;  %v1248_v57 = vadd.f32 %v1247_v56, %v2281_v20  ;;  %v1249_v60 = vpop.f32.mrb[19].mxu0  ;;  %1361 = vst [vmem:[%s2210_s19 + $0x30] sm:$0xff] %v1317_v53  ;;  %v1321_v62 = vadd.f32 %v1320_v59, %v2284_v37  ;;  %v1322_v0 = vpop.f32.mrb[19].mxu1 }
 0x1ab   : > { %1360 = vst [vmem:[%s2210_s19 + $0x28] sm:$0xff] %v1246_v54  ;;  %v1250_v63 = vadd.f32 %v1249_v60, %v2287_v39  ;;  %1362 = vst [vmem:[%s2210_s19 + $0x38] sm:$0xff] %v1319_v47  ;;  %v1323_v1 = vadd.f32 %v1322_v0, %v2290_v49 }
 0x1ac   : > { %1367 = vst [vmem:[%s2210_s19 + $0x60] sm:$0xff] %v1248_v57  ;;  %1369 = vst [vmem:[%s2210_s19 + $0x70] sm:$0xff] %v1321_v62 }
 0x1ad   : > { %1368 = vst [vmem:[%s2210_s19 + $0x68] sm:$0xff] %v1250_v63  ;;  %1370 = vst [vmem:[%s2210_s19 + $0x78] sm:$0xff] %v1323_v1 }
 0x1af   : > { %v1253_v2 = vpop.f32.mrb[20].mxu0  ;;  %v1326_v4 = vpop.f32.mrb[20].mxu1 }
 0x1b0   : > { %v1254_v3 = vadd.f32 %v1253_v2, %v2281_v20  ;;  %v1255_v5 = vpop.f32.mrb[21].mxu0  ;;  %v1327_v7 = vadd.f32 %v1326_v4, %v2284_v37  ;;  %v1328_v9 = vpop.f32.mrb[21].mxu1 }
 0x1b1   : > { %v1256_v8 = vadd.f32 %v1255_v5, %v2287_v39  ;;  %v1257_v10 = vpop.f32.mrb[22].mxu0  ;;  %v1329_v11 = vadd.f32 %v1328_v9, %v2290_v49  ;;  %v1330_v13 = vpop.f32.mrb[22].mxu1 }
 0x1b2   : > { %1375 = vst [vmem:[%s2210_s19 + $0xa0] sm:$0xff] %v1254_v3  ;;  %v1258_v12 = vadd.f32 %v1257_v10, %v2281_v20  ;;  %v1259_v14 = vpop.f32.mrb[23].mxu0  ;;  %1377 = vst [vmem:[%s2210_s19 + $0xb0] sm:$0xff] %v1327_v7  ;;  %v1331_v16 = vadd.f32 %v1330_v13, %v2284_v37  ;;  %v1332_v18 = vpop.f32.mrb[23].mxu1 }
 0x1b3   : > { %1376 = vst [vmem:[%s2210_s19 + $0xa8] sm:$0xff] %v1256_v8  ;;  %v1260_v17 = vadd.f32 %v1259_v14, %v2287_v39  ;;  %1378 = vst [vmem:[%s2210_s19 + $0xb8] sm:$0xff] %v1329_v11  ;;  %v1333_v19 = vadd.f32 %v1332_v18, %v2290_v49 }
 0x1b4   : > { %1383 = vst [vmem:[%s2210_s19 + $0xe0] sm:$0xff] %v1258_v12  ;;  %1385 = vst [vmem:[%s2210_s19 + $0xf0] sm:$0xff] %v1331_v16 }
 0x1b5   : > { %1384 = vst [vmem:[%s2210_s19 + $0xe8] sm:$0xff] %v1260_v17  ;;  %1386 = vst [vmem:[%s2210_s19 + $0xf8] sm:$0xff] %v1333_v19 }
 0x1b7   : > { %v1263_v21 = vpop.f32.mrb[24].mxu0  ;;  %v1336_v23 = vpop.f32.mrb[24].mxu1 }
 0x1b8   : > { %v1264_v22 = vadd.f32 %v1263_v21, %v2281_v20  ;;  %v1265_v24 = vpop.f32.mrb[25].mxu0  ;;  %v1337_v26 = vadd.f32 %v1336_v23, %v2284_v37  ;;  %v1338_v28 = vpop.f32.mrb[25].mxu1 }
 0x1b9   : > { %v1266_v27 = vadd.f32 %v1265_v24, %v2287_v39  ;;  %v1267_v29 = vpop.f32.mrb[26].mxu0  ;;  %v1339_v30 = vadd.f32 %v1338_v28, %v2290_v49  ;;  %v1340_v32 = vpop.f32.mrb[26].mxu1 }
 0x1ba   : > { %1391 = vst [vmem:[%s2210_s19 + $0x120] sm:$0xff] %v1264_v22  ;;  %v1268_v31 = vadd.f32 %v1267_v29, %v2281_v20  ;;  %v1269_v33 = vpop.f32.mrb[27].mxu0  ;;  %1393 = vst [vmem:[%s2210_s19 + $0x130] sm:$0xff] %v1337_v26  ;;  %v1341_v34 = vadd.f32 %v1340_v32, %v2284_v37  ;;  %v1342_v38 = vpop.f32.mrb[27].mxu1 }
 0x1bb   : > { %1392 = vst [vmem:[%s2210_s19 + $0x128] sm:$0xff] %v1266_v27  ;;  %v1270_v15 = vadd.f32 %v1269_v33, %v2287_v39  ;;  %1394 = vst [vmem:[%s2210_s19 + $0x138] sm:$0xff] %v1339_v30  ;;  %v1343_v35 = vadd.f32 %v1342_v38, %v2290_v49 }
 0x1bc   : > { %1399 = vst [vmem:[%s2210_s19 + $0x160] sm:$0xff] %v1268_v31  ;;  %1401 = vst [vmem:[%s2210_s19 + $0x170] sm:$0xff] %v1341_v34 }
 0x1bd   : > { %1400 = vst [vmem:[%s2210_s19 + $0x168] sm:$0xff] %v1270_v15  ;;  %1402 = vst [vmem:[%s2210_s19 + $0x178] sm:$0xff] %v1343_v35 }
 0x1bf   : > { %v1273_v61 = vpop.f32.mrb[28].mxu0  ;;  %v1346_v40 = vpop.f32.mrb[28].mxu1 }
 0x1c0   : > { %v1274_v36 = vadd.f32 %v1273_v61, %v2281_v20  ;;  %v1275_v41 = vpop.f32.mrb[29].mxu0  ;;  %v1347_v42 = vadd.f32 %v1346_v40, %v2284_v37  ;;  %v1348_v44 = vpop.f32.mrb[29].mxu1 }
 0x1c1   : > { %v1276_v43 = vadd.f32 %v1275_v41, %v2287_v39  ;;  %v1277_v45 = vpop.f32.mrb[30].mxu0  ;;  %v1349_v46 = vadd.f32 %v1348_v44, %v2290_v49  ;;  %v1350_v48 = vpop.f32.mrb[30].mxu1 }
 0x1c2   : > { %1407 = vst [vmem:[%s2210_s19 + $0x1a0] sm:$0xff] %v1274_v36  ;;  %v1278_v6 = vadd.f32 %v1277_v45, %v2281_v20  ;;  %v1279_v58 = vpop.f32.mrb[31].mxu0  ;;  %1409 = vst [vmem:[%s2210_s19 + $0x1b0] sm:$0xff] %v1347_v42  ;;  %v1351_v50 = vadd.f32 %v1350_v48, %v2284_v37  ;;  %v1352_v52 = vpop.f32.mrb[31].mxu1 }
 0x1c3   : > { %1408 = vst [vmem:[%s2210_s19 + $0x1a8] sm:$0xff] %v1276_v43  ;;  %v1280_v51 = vadd.f32 %v1279_v58, %v2287_v39  ;;  %1410 = vst [vmem:[%s2210_s19 + $0x1b8] sm:$0xff] %v1349_v46  ;;  %v1353_v25 = vadd.f32 %v1352_v52, %v2290_v49 }
 0x1c4   : > { %1415 = vst [vmem:[%s2210_s19 + $0x1e0] sm:$0xff] %v1278_v6  ;;  %1417 = vst [vmem:[%s2210_s19 + $0x1f0] sm:$0xff] %v1351_v50 }
 0x1c5   : > { %1416 = vst [vmem:[%s2210_s19 + $0x1e8] sm:$0xff] %v1280_v51  ;;  %1418 = vst [vmem:[%s2210_s19 + $0x1f8] sm:$0xff] %v1353_v25 }
 0x1c6 PF: > { %p16_p8 = scmp.ge.s32.totalorder %s1848_s17, 4   ;;  %s2380_s12 = smov %s1792_s13 }
 0x1c7   : > { %s2381_s13 = smov %s1796_s14  ;;  %s2382_s14 = smov %s1858_s20 }
 0x1c8   : > { %s2383_s15 = smov %s1848_s17  ;;  %18 = sbr.rel (!%p16_p8) target bundleno = 5 (0x5), region = 85 }
 0x1cf   :  { %1440 = vsyncpa [#allocation3], 1 }
 0x1d0   :  { %1442 = vsyncpa [#allocation3 + $0x1], 1 }
 0x1d1   :  { %1443 = vsyncpa [#allocation5], 1 }
 0x1d2   :  { %1445 = vsyncpa [#allocation5 + $0x1], 1 }

// kernel: sent_encoder_forward.6
= control target key start
LH: loop header
LB: loop body
LE: loop exit
PB: predicated region body
PF: predicated region fallthrough
CT: control target
= control target key end

     0   :  { %s2963_s12 = smov 0   ;;  %s3604_s0 = inlined_call_operand.vmem [shape: f32[64,512], index: 0, kind: input, shape index: {}]   ;;  %s3605_s1 = inlined_call_operand.vmem [shape: bf16[2,512,1024], index: 1, kind: input, shape index: {}]   ;;  %s3606_s2 = inlined_call_operand.vmem [shape: f32[2,1,1024], index: 2, kind: input, shape index: {}]   ;;  %s3607_s3 = inlined_call_operand.vmem [shape: f32[2,64,1024], index: 3, kind: output, shape index: {}]  }
   0x1 LB: > { %s2529_s13 = sadd.s32 4294967295, %s2941_s12   ;;  %p2533_p0 = scmp.ge.s32.totalorder %s2941_s12, 1  ;;  %s2941_s12 = sphi %s2963_s12, %s13_s12  }
   0x2   : > { %p146_p1 = scmp.lt.s32.totalorder %s2941_s12, 3 }
   0x4   : > { %p147_p2 = pnand %p2533_p0, %p146_p1 }
   0x5   : > { %p174_p3 = scmp.lt.s32.totalorder (!%p147_p2), %s2529_s13, 1  ;;  %v189_v0 = vld [vmem:[%s3604_s0 + $0x8] sm:$0xff] (!%p147_p2) }
   0x6   : > { %150 = sbr.rel (%p147_p2) target bundleno = 518 (0x206), region = 32  ;;  %v193_v1 = vld [vmem:[%s3604_s0 + $0x28] sm:$0xff] (!%p147_p2) }
   0x7   : > { %v2977_v2 = vpack.c.bf16 (!%p147_p2), %v193_v1, %v189_v0 }
   0x9   : > { %1846 = vmatprep.mubr.bf16.mxu0 (!%p147_p2), %v2977_v2  ;;  %1992 = vmatprep.mubr.bf16.mxu1 (!%p147_p2), %v2977_v2 }
   0xd   : > { %s3609_s13 = smov (!%p174_p3, %s2529_s13), 1 }
   0xe   : > { %s2797_s18 = sshll.u32 %s3609_s13, 11  ;;  %s2798_s10 = sshll.u32 %s3609_s13, 9 }
   0xf   : > { %s2987_s21 = scalar_lea.vmem %s3605_s1, %s2797_s18  ;;  %s3455_s15 = scalar_lea.vmem %s3607_s3, %s2798_s10 }
  0x10   : > { %v236_v3 = vld [vmem:[%s2987_s21] sm:$0xff]  ;;  %v237_v5 = vld [vmem:[%s2987_s21 + $0x8] sm:$0xff] }
  0x11   : > { %v240_v4 = vld [vmem:[%s2987_s21 + $0x20] sm:$0xff]  ;;  %v241_v7 = vld [vmem:[%s2987_s21 + $0x28] sm:$0xff] }
  0x12   : > { %v2540_v6 = vcombine.high %v236_v3, %v240_v4  ;;  %v2539_v8 = vcombine.low %v236_v3, %v240_v4  ;;  %v244_v9 = vld [vmem:[%s2987_s21 + $0x40] sm:$0xff]  ;;  %v2542_v11 = vcombine.high %v237_v5, %v241_v7  ;;  %v2541_v12 = vcombine.low %v237_v5, %v241_v7  ;;  %v245_v14 = vld [vmem:[%s2987_s21 + $0x48] sm:$0xff] }
  0x13   : > { %v248_v10 = vld [vmem:[%s2987_s21 + $0x60] sm:$0xff]  ;;  %v249_v15 = vld [vmem:[%s2987_s21 + $0x68] sm:$0xff] }
  0x14   : > { %v2548_v13 = vcombine.high %v244_v9, %v248_v10  ;;  %v252_v16 = vld [vmem:[%s2987_s21 + $0x80] sm:$0xff]  ;;  %1814 = vmatprep.subr.bf16.mxu0 %v2540_v6  ;;  %v2550_v17 = vcombine.high %v245_v14, %v249_v15  ;;  %v253_v19 = vld [vmem:[%s2987_s21 + $0x88] sm:$0xff]  ;;  %1960 = vmatprep.subr.bf16.mxu1 %v2542_v11  ;;  %v2547_v21 = vcombine.low %v244_v9, %v248_v10 }
  0x15   : > { %v256_v18 = vld [vmem:[%s2987_s21 + $0xa0] sm:$0xff]  ;;  %v257_v20 = vld [vmem:[%s2987_s21 + $0xa8] sm:$0xff]  ;;  %1815 = vmatpush1.bf16.msra.mxu0 %v2539_v8  ;;  %1961 = vmatpush1.bf16.msra.mxu1 %v2541_v12  ;;  %v2549_v22 = vcombine.low %v245_v14, %v249_v15 }
  0x16   : > { %1816 = vmatprep.subr.bf16.mxu0 %v2548_v13  ;;  %v2556_v23 = vcombine.high %v252_v16, %v256_v18  ;;  %1962 = vmatprep.subr.bf16.mxu1 %v2550_v17  ;;  %v2558_v24 = vcombine.high %v253_v19, %v257_v20  ;;  %v260_v25 = vld [vmem:[%s2987_s21 + $0xc0] sm:$0xff]  ;;  %v261_v27 = vld [vmem:[%s2987_s21 + $0xc8] sm:$0xff]  ;;  %v2555_v29 = vcombine.low %v252_v16, %v256_v18 }
  0x17   : > { %v264_v26 = vld [vmem:[%s2987_s21 + $0xe0] sm:$0xff]  ;;  %v265_v28 = vld [vmem:[%s2987_s21 + $0xe8] sm:$0xff]  ;;  %v2557_v30 = vcombine.low %v253_v19, %v257_v20 }
  0x18   : > { %v2564_v31 = vcombine.high %v260_v25, %v264_v26  ;;  %v2566_v32 = vcombine.high %v261_v27, %v265_v28  ;;  %v268_v33 = vld [vmem:[%s2987_s21 + $0x100] sm:$0xff]  ;;  %v269_v35 = vld [vmem:[%s2987_s21 + $0x108] sm:$0xff]  ;;  %v2563_v37 = vcombine.low %v260_v25, %v264_v26  ;;  %v2565_v38 = vcombine.low %v261_v27, %v265_v28 }
  0x19   : > { %1817 = vmatpush1.bf16.msra.mxu0 %v2547_v21  ;;  %1963 = vmatpush1.bf16.msra.mxu1 %v2549_v22  ;;  %v272_v34 = vld [vmem:[%s2987_s21 + $0x120] sm:$0xff]  ;;  %v273_v36 = vld [vmem:[%s2987_s21 + $0x128] sm:$0xff] }
  0x1a   : > { %1818 = vmatprep.subr.bf16.mxu0 %v2556_v23  ;;  %1964 = vmatprep.subr.bf16.mxu1 %v2558_v24  ;;  %v2572_v39 = vcombine.high %v268_v33, %v272_v34  ;;  %v2574_v40 = vcombine.high %v269_v35, %v273_v36  ;;  %v276_v41 = vld [vmem:[%s2987_s21 + $0x140] sm:$0xff]  ;;  %v277_v43 = vld [vmem:[%s2987_s21 + $0x148] sm:$0xff]  ;;  %v2571_v45 = vcombine.low %v268_v33, %v272_v34 }
  0x1b   : > { %v280_v42 = vld [vmem:[%s2987_s21 + $0x160] sm:$0xff]  ;;  %v281_v44 = vld [vmem:[%s2987_s21 + $0x168] sm:$0xff]  ;;  %v2573_v46 = vcombine.low %v269_v35, %v273_v36 }
  0x1c   : > { %v2580_v47 = vcombine.high %v276_v41, %v280_v42  ;;  %v2582_v48 = vcombine.high %v277_v43, %v281_v44  ;;  %v284_v49 = vld [vmem:[%s2987_s21 + $0x180] sm:$0xff]  ;;  %v285_v51 = vld [vmem:[%s2987_s21 + $0x188] sm:$0xff]  ;;  %v2579_v53 = vcombine.low %v276_v41, %v280_v42  ;;  %v2581_v54 = vcombine.low %v277_v43, %v281_v44 }
  0x1d   : > { %1819 = vmatpush1.bf16.msra.mxu0 %v2555_v29  ;;  %1965 = vmatpush1.bf16.msra.mxu1 %v2557_v30  ;;  %v288_v50 = vld [vmem:[%s2987_s21 + $0x1a0] sm:$0xff]  ;;  %v289_v52 = vld [vmem:[%s2987_s21 + $0x1a8] sm:$0xff] }
  0x1e   : > { %1820 = vmatprep.subr.bf16.mxu0 %v2564_v31  ;;  %1966 = vmatprep.subr.bf16.mxu1 %v2566_v32  ;;  %v2588_v55 = vcombine.high %v284_v49, %v288_v50  ;;  %v2590_v56 = vcombine.high %v285_v51, %v289_v52  ;;  %v292_v57 = vld [vmem:[%s2987_s21 + $0x1c0] sm:$0xff]  ;;  %v293_v59 = vld [vmem:[%s2987_s21 + $0x1c8] sm:$0xff]  ;;  %v2587_v61 = vcombine.low %v284_v49, %v288_v50 }
  0x1f   : > { %v296_v58 = vld [vmem:[%s2987_s21 + $0x1e0] sm:$0xff]  ;;  %v297_v60 = vld [vmem:[%s2987_s21 + $0x1e8] sm:$0xff]  ;;  %v2589_v62 = vcombine.low %v285_v51, %v289_v52 }
  0x20   : > { %v2596_v63 = vcombine.high %v292_v57, %v296_v58  ;;  %v2598_v0 = vcombine.high %v293_v59, %v297_v60  ;;  %v300_v1 = vld [vmem:[%s2987_s21 + $0x200] sm:$0xff]  ;;  %v301_v4 = vld [vmem:[%s2987_s21 + $0x208] sm:$0xff]  ;;  %v2595_v6 = vcombine.low %v292_v57, %v296_v58  ;;  %v2597_v7 = vcombine.low %v293_v59, %v297_v60 }
  0x21   : > { %1821 = vmatpush1.bf16.msra.mxu0 %v2563_v37  ;;  %1967 = vmatpush1.bf16.msra.mxu1 %v2565_v38  ;;  %v304_v3 = vld [vmem:[%s2987_s21 + $0x220] sm:$0xff]  ;;  %v305_v5 = vld [vmem:[%s2987_s21 + $0x228] sm:$0xff] }
  0x22   : > { %1822 = vmatprep.subr.bf16.mxu0 %v2572_v39  ;;  %1968 = vmatprep.subr.bf16.mxu1 %v2574_v40  ;;  %v2604_v8 = vcombine.high %v300_v1, %v304_v3  ;;  %v2606_v9 = vcombine.high %v301_v4, %v305_v5  ;;  %v308_v10 = vld [vmem:[%s2987_s21 + $0x240] sm:$0xff]  ;;  %v309_v12 = vld [vmem:[%s2987_s21 + $0x248] sm:$0xff]  ;;  %v2603_v14 = vcombine.low %v300_v1, %v304_v3 }
  0x23   : > { %v312_v11 = vld [vmem:[%s2987_s21 + $0x260] sm:$0xff]  ;;  %v313_v13 = vld [vmem:[%s2987_s21 + $0x268] sm:$0xff]  ;;  %v2605_v15 = vcombine.low %v301_v4, %v305_v5 }
  0x24   : > { %v2612_v16 = vcombine.high %v308_v10, %v312_v11  ;;  %v2614_v17 = vcombine.high %v309_v12, %v313_v13  ;;  %v316_v18 = vld [vmem:[%s2987_s21 + $0x280] sm:$0xff]  ;;  %v317_v20 = vld [vmem:[%s2987_s21 + $0x288] sm:$0xff]  ;;  %v2611_v22 = vcombine.low %v308_v10, %v312_v11  ;;  %v2613_v23 = vcombine.low %v309_v12, %v313_v13 }
  0x25   : > { %1823 = vmatpush1.bf16.msra.mxu0 %v2571_v45  ;;  %1969 = vmatpush1.bf16.msra.mxu1 %v2573_v46  ;;  %v320_v19 = vld [vmem:[%s2987_s21 + $0x2a0] sm:$0xff]  ;;  %v321_v21 = vld [vmem:[%s2987_s21 + $0x2a8] sm:$0xff] }
  0x26   : > { %1824 = vmatprep.subr.bf16.mxu0 %v2580_v47  ;;  %1970 = vmatprep.subr.bf16.mxu1 %v2582_v48  ;;  %v2620_v24 = vcombine.high %v316_v18, %v320_v19  ;;  %v2622_v25 = vcombine.high %v317_v20, %v321_v21  ;;  %v324_v26 = vld [vmem:[%s2987_s21 + $0x2c0] sm:$0xff]  ;;  %v325_v28 = vld [vmem:[%s2987_s21 + $0x2c8] sm:$0xff]  ;;  %v2619_v30 = vcombine.low %v316_v18, %v320_v19 }
  0x27   : > { %v328_v27 = vld [vmem:[%s2987_s21 + $0x2e0] sm:$0xff]  ;;  %v329_v29 = vld [vmem:[%s2987_s21 + $0x2e8] sm:$0xff]  ;;  %v2621_v31 = vcombine.low %v317_v20, %v321_v21 }
  0x28   : > { %v2628_v32 = vcombine.high %v324_v26, %v328_v27  ;;  %v2630_v33 = vcombine.high %v325_v28, %v329_v29  ;;  %v332_v34 = vld [vmem:[%s2987_s21 + $0x300] sm:$0xff]  ;;  %v333_v36 = vld [vmem:[%s2987_s21 + $0x308] sm:$0xff]  ;;  %v2627_v38 = vcombine.low %v324_v26, %v328_v27  ;;  %v2629_v39 = vcombine.low %v325_v28, %v329_v29 }
  0x29   : > { %1825 = vmatpush1.bf16.msra.mxu0 %v2579_v53  ;;  %1971 = vmatpush1.bf16.msra.mxu1 %v2581_v54  ;;  %v336_v35 = vld [vmem:[%s2987_s21 + $0x320] sm:$0xff]  ;;  %v337_v37 = vld [vmem:[%s2987_s21 + $0x328] sm:$0xff] }
  0x2a   : > { %1826 = vmatprep.subr.bf16.mxu0 %v2588_v55  ;;  %1972 = vmatprep.subr.bf16.mxu1 %v2590_v56  ;;  %v2636_v40 = vcombine.high %v332_v34, %v336_v35  ;;  %v2638_v41 = vcombine.high %v333_v36, %v337_v37  ;;  %v340_v42 = vld [vmem:[%s2987_s21 + $0x340] sm:$0xff]  ;;  %v341_v44 = vld [vmem:[%s2987_s21 + $0x348] sm:$0xff]  ;;  %v2635_v46 = vcombine.low %v332_v34, %v336_v35 }
  0x2b   : > { %v344_v43 = vld [vmem:[%s2987_s21 + $0x360] sm:$0xff]  ;;  %v345_v45 = vld [vmem:[%s2987_s21 + $0x368] sm:$0xff]  ;;  %v2637_v47 = vcombine.low %v333_v36, %v337_v37 }
  0x2c   : > { %v2644_v48 = vcombine.high %v340_v42, %v344_v43  ;;  %v2646_v49 = vcombine.high %v341_v44, %v345_v45  ;;  %v348_v50 = vld [vmem:[%s2987_s21 + $0x380] sm:$0xff]  ;;  %v349_v52 = vld [vmem:[%s2987_s21 + $0x388] sm:$0xff]  ;;  %v2643_v54 = vcombine.low %v340_v42, %v344_v43  ;;  %v2645_v55 = vcombine.low %v341_v44, %v345_v45 }
  0x2d   : > { %1827 = vmatpush1.bf16.msra.mxu0 %v2587_v61  ;;  %1973 = vmatpush1.bf16.msra.mxu1 %v2589_v62  ;;  %v352_v51 = vld [vmem:[%s2987_s21 + $0x3a0] sm:$0xff]  ;;  %v353_v53 = vld [vmem:[%s2987_s21 + $0x3a8] sm:$0xff] }
  0x2e   : > { %1828 = vmatprep.subr.bf16.mxu0 %v2596_v63  ;;  %1974 = vmatprep.subr.bf16.mxu1 %v2598_v0  ;;  %v2652_v56 = vcombine.high %v348_v50, %v352_v51  ;;  %v2654_v57 = vcombine.high %v349_v52, %v353_v53  ;;  %v356_v58 = vld [vmem:[%s2987_s21 + $0x3c0] sm:$0xff]  ;;  %v357_v60 = vld [vmem:[%s2987_s21 + $0x3c8] sm:$0xff]  ;;  %v2651_v62 = vcombine.low %v348_v50, %v352_v51 }
  0x2f   : > { %v360_v59 = vld [vmem:[%s2987_s21 + $0x3e0] sm:$0xff]  ;;  %v361_v61 = vld [vmem:[%s2987_s21 + $0x3e8] sm:$0xff]  ;;  %v2653_v63 = vcombine.low %v349_v52, %v353_v53 }
  0x30   : > { %v2660_v0 = vcombine.high %v356_v58, %v360_v59  ;;  %v2662_v1 = vcombine.high %v357_v60, %v361_v61  ;;  %v364_v3 = vld [vmem:[%s2987_s21 + $0x400] sm:$0xff]  ;;  %v365_v5 = vld [vmem:[%s2987_s21 + $0x408] sm:$0xff]  ;;  %v2661_v10 = vcombine.low %v357_v60, %v361_v61 }
  0x31   : > { %1829 = vmatpush1.bf16.msra.mxu0 %v2595_v6  ;;  %1975 = vmatpush1.bf16.msra.mxu1 %v2597_v7  ;;  %v368_v4 = vld [vmem:[%s2987_s21 + $0x420] sm:$0xff]  ;;  %v369_v6 = vld [vmem:[%s2987_s21 + $0x428] sm:$0xff]  ;;  %v2659_v7 = vcombine.low %v356_v58, %v360_v59 }
  0x32   : > { %1830 = vmatprep.subr.bf16.mxu0 %v2604_v8  ;;  %1976 = vmatprep.subr.bf16.mxu1 %v2606_v9  ;;  %v188_v8 = vld [vmem:[%s3604_s0] sm:$0xff]  ;;  %v2668_v11 = vcombine.high %v364_v3, %v368_v4  ;;  %v2670_v12 = vcombine.high %v365_v5, %v369_v6  ;;  %v377_v18 = vld [vmem:[%s2987_s21 + $0x468] sm:$0xff]  ;;  %v2667_v20 = vcombine.low %v364_v3, %v368_v4 }
  0x33   : > { %v192_v9 = vld [vmem:[%s3604_s0 + $0x20] sm:$0xff]  ;;  %v201_v19 = vld [vmem:[%s3604_s0 + $0x68] sm:$0xff]  ;;  %v2669_v21 = vcombine.low %v365_v5, %v369_v6 }
  0x34   : > { %v372_v13 = vld [vmem:[%s2987_s21 + $0x440] sm:$0xff]  ;;  %v381_v27 = vld [vmem:[%s2987_s21 + $0x488] sm:$0xff] }
  0x35   : > { %1831 = vmatpush1.bf16.msra.mxu0 %v2603_v14  ;;  %1977 = vmatpush1.bf16.msra.mxu1 %v2605_v15  ;;  %v376_v14 = vld [vmem:[%s2987_s21 + $0x460] sm:$0xff]  ;;  %v197_v15 = vld [vmem:[%s3604_s0 + $0x48] sm:$0xff] }
  0x36   : > { %1832 = vmatprep.subr.bf16.mxu0 %v2612_v16  ;;  %1978 = vmatprep.subr.bf16.mxu1 %v2614_v17  ;;  %v3068_v16 = vpack.c.bf16 %v192_v9, %v188_v8  ;;  %v373_v17 = vld [vmem:[%s2987_s21 + $0x448] sm:$0xff]  ;;  %v3077_v26 = vpack.c.bf16 %v201_v19, %v197_v15  ;;  %v2675_v29 = vcombine.low %v372_v13, %v376_v14  ;;  %v388_v35 = vld [vmem:[%s2987_s21 + $0x4c0] sm:$0xff] }
  0x37   : > { %v385_v28 = vld [vmem:[%s2987_s21 + $0x4a8] sm:$0xff]  ;;  %v392_v36 = vld [vmem:[%s2987_s21 + $0x4e0] sm:$0xff] }
  0x38   : > { %v2686_v34 = vcombine.high %v381_v27, %v385_v28  ;;  %v205_v37 = vld [vmem:[%s3604_s0 + $0x88] sm:$0xff]  ;;  %v2685_v43 = vcombine.low %v381_v27, %v385_v28  ;;  %v2692_v44 = vcombine.high %v388_v35, %v392_v36  ;;  %v2691_v51 = vcombine.low %v388_v35, %v392_v36  ;;  %v204_v52 = vld [vmem:[%s3604_s0 + $0x80] sm:$0xff] }
  0x39   : > { %1833 = vmatpush1.bf16.msra.mxu0 %v2611_v22  ;;  %1979 = vmatpush1.bf16.msra.mxu1 %v2613_v23  ;;  %v2676_v22 = vcombine.high %v372_v13, %v376_v14  ;;  %v2678_v23 = vcombine.high %v373_v17, %v377_v18  ;;  %v401_v50 = vld [vmem:[%s2987_s21 + $0x528] sm:$0xff]  ;;  %v208_v53 = vld [vmem:[%s3604_s0 + $0xa0] sm:$0xff] }
  0x3a   : > { %1834 = vmatprep.subr.bf16.mxu0 %v2620_v24  ;;  %1980 = vmatprep.subr.bf16.mxu1 %v2622_v25  ;;  %v380_v24 = vld [vmem:[%s2987_s21 + $0x480] sm:$0xff]  ;;  %v213_v59 = vld [vmem:[%s3604_s0 + $0xc8] sm:$0xff] }
  0x3b   : > { %v384_v25 = vld [vmem:[%s2987_s21 + $0x4a0] sm:$0xff]  ;;  %v405_v60 = vld [vmem:[%s2987_s21 + $0x548] sm:$0xff] }
  0x3c   : > { %v2683_v42 = vcombine.low %v380_v24, %v384_v25  ;;  %v408_v58 = vld [vmem:[%s2987_s21 + $0x560] sm:$0xff]  ;;  %v409_v61 = vld [vmem:[%s2987_s21 + $0x568] sm:$0xff] }
  0x3d   : > { %1835 = vmatpush1.bf16.msra.mxu0 %v2619_v30  ;;  %1981 = vmatpush1.bf16.msra.mxu1 %v2621_v31  ;;  %v196_v30 = vld [vmem:[%s3604_s0 + $0x40] sm:$0xff]  ;;  %v2710_v4 = vcombine.high %v405_v60, %v409_v61  ;;  %v413_v8 = vld [vmem:[%s2987_s21 + $0x588] sm:$0xff]  ;;  %v2709_v13 = vcombine.low %v405_v60, %v409_v61 }
  0x3e   : > { %1836 = vmatprep.subr.bf16.mxu0 %v2628_v32  ;;  %1982 = vmatprep.subr.bf16.mxu1 %v2630_v33  ;;  %v200_v31 = vld [vmem:[%s3604_s0 + $0x60] sm:$0xff]  ;;  %v2677_v32 = vcombine.low %v373_v17, %v377_v18  ;;  %v2684_v33 = vcombine.high %v380_v24, %v384_v25  ;;  %v417_v9 = vld [vmem:[%s2987_s21 + $0x5a8] sm:$0xff] }
  0x3f   : > { %v412_v5 = vld [vmem:[%s2987_s21 + $0x580] sm:$0xff]  ;;  %v2718_v15 = vcombine.high %v413_v8, %v417_v9  ;;  %v421_v19 = vld [vmem:[%s2987_s21 + $0x5c8] sm:$0xff]  ;;  %v2717_v25 = vcombine.low %v413_v8, %v417_v9 }
  0x40   : > { %v416_v6 = vld [vmem:[%s2987_s21 + $0x5a0] sm:$0xff] }
  0x41   : > { %1837 = vmatpush1.bf16.msra.mxu0 %v2627_v38  ;;  %1983 = vmatpush1.bf16.msra.mxu1 %v2629_v39  ;;  %v389_v38 = vld [vmem:[%s2987_s21 + $0x4c8] sm:$0xff]  ;;  %v2716_v14 = vcombine.high %v412_v5, %v416_v6  ;;  %v420_v17 = vld [vmem:[%s2987_s21 + $0x5c0] sm:$0xff]  ;;  %v2715_v24 = vcombine.low %v412_v5, %v416_v6 }
  0x42   : > { %1838 = vmatprep.subr.bf16.mxu0 %v2636_v40  ;;  %1984 = vmatprep.subr.bf16.mxu1 %v2638_v41  ;;  %v393_v39 = vld [vmem:[%s2987_s21 + $0x4e8] sm:$0xff]  ;;  %v3098_v40 = vpack.c.bf16 %v200_v31, %v196_v30  ;;  %v424_v18 = vld [vmem:[%s2987_s21 + $0x5e0] sm:$0xff] }
  0x43   : > { %v209_v41 = vld [vmem:[%s3604_s0 + $0xa8] sm:$0xff]  ;;  %v2694_v45 = vcombine.high %v389_v38, %v393_v39  ;;  %v2724_v27 = vcombine.high %v420_v17, %v424_v18  ;;  %v432_v30 = vld [vmem:[%s2987_s21 + $0x620] sm:$0xff] }
  0x44   : > { %v465_v5 = vld [vmem:[%s2987_s21 + $0x728] sm:$0xff] }
  0x45   : > { %1839 = vmatpush1.bf16.msra.mxu0 %v2635_v46  ;;  %1985 = vmatpush1.bf16.msra.mxu1 %v2637_v47  ;;  %v396_v46 = vld [vmem:[%s2987_s21 + $0x500] sm:$0xff] }
  0x46   : > { %1840 = vmatprep.subr.bf16.mxu0 %v2644_v48  ;;  %1986 = vmatprep.subr.bf16.mxu1 %v2646_v49  ;;  %v400_v47 = vld [vmem:[%s2987_s21 + $0x520] sm:$0xff]  ;;  %v3105_v48 = vpack.c.bf16 %v209_v41, %v205_v37  ;;  %v397_v49 = vld [vmem:[%s2987_s21 + $0x508] sm:$0xff] }
  0x47   : > { %v437_v41 = vld [vmem:[%s2987_s21 + $0x648] sm:$0xff] }
  0x49   : > { %1841 = vmatpush1.bf16.msra.mxu0 %v2643_v54  ;;  %1987 = vmatpush1.bf16.msra.mxu1 %v2645_v55  ;;  %v2693_v54 = vcombine.low %v389_v38, %v393_v39  ;;  %v2700_v55 = vcombine.high %v396_v46, %v400_v47  ;;  %v436_v38 = vld [vmem:[%s2987_s21 + $0x640] sm:$0xff] }
  0x4a   : > { %1842 = vmatprep.subr.bf16.mxu0 %v2652_v56  ;;  %1988 = vmatprep.subr.bf16.mxu1 %v2654_v57  ;;  %v2702_v56 = vcombine.high %v397_v49, %v401_v50  ;;  %v404_v57 = vld [vmem:[%s2987_s21 + $0x540] sm:$0xff] }
  0x4b   : > { %v2708_v3 = vcombine.high %v404_v57, %v408_v58  ;;  %v440_v39 = vld [vmem:[%s2987_s21 + $0x660] sm:$0xff] }
  0x4d   : > { %1843 = vmatpush1.bf16.msra.mxu0 %v2651_v62  ;;  %1989 = vmatpush1.bf16.msra.mxu1 %v2653_v63  ;;  %v3126_v62 = vpack.c.bf16 %v208_v53, %v204_v52  ;;  %v217_v63 = vld [vmem:[%s3604_s0 + $0xe8] sm:$0xff]  ;;  %v2739_v52 = vcombine.low %v436_v38, %v440_v39 }
  0x4e   : > { %1844 = vmatprep.subr.bf16.mxu0 %v2660_v0  ;;  %1990 = vmatprep.subr.bf16.mxu1 %v2662_v1  ;;  %v2699_v0 = vcombine.low %v396_v46, %v400_v47  ;;  %v2701_v1 = vcombine.low %v397_v49, %v401_v50  ;;  %v444_v47 = vld [vmem:[%s2987_s21 + $0x680] sm:$0xff]  ;;  %v445_v50 = vld [vmem:[%s2987_s21 + $0x688] sm:$0xff] }
  0x4f   : > { %v448_v49 = vld [vmem:[%s2987_s21 + $0x6a0] sm:$0xff] }
  0x50   : > { %v2747_v60 = vcombine.low %v444_v47, %v448_v49 }
  0x51   : > { %1845 = vmatpush1.bf16.msra.mxu0 %v2659_v7  ;;  %1991 = vmatpush1.bf16.msra.mxu1 %v2661_v10  ;;  %v3133_v7 = vpack.c.bf16 %v217_v63, %v213_v59  ;;  %v2707_v10 = vcombine.low %v404_v57, %v408_v58  ;;  %v456_v57 = vld [vmem:[%s2987_s21 + $0x6e0] sm:$0xff]  ;;  %v453_v58 = vld [vmem:[%s2987_s21 + $0x6c8] sm:$0xff] }
  0x52   : > { %1887 = vmatprep.subr.bf16.mxu0 %v2668_v11  ;;  %2033 = vmatprep.subr.bf16.mxu1 %v2670_v12  ;;  %v212_v11 = vld [vmem:[%s3604_s0 + $0xc0] sm:$0xff]  ;;  %v457_v59 = vld [vmem:[%s2987_s21 + $0x6e8] sm:$0xff] }
  0x53   : > { %v216_v12 = vld [vmem:[%s3604_s0 + $0xe0] sm:$0xff]  ;;  %v2757_v8 = vcombine.low %v453_v58, %v457_v59 }
  0x54   : > { %1847 = vmatmul.mubr.bf16.vlgmr.msra.gmra.mrb[0].mxu0 %v3068_v16  ;;  %1993 = vmatmul.mubr.bf16.vlgmr.msra.gmra.mrb[0].mxu1 %v3068_v16 }
  0x55   : > { %1888 = vmatpush1.bf16.msra.mxu0 %v2667_v20  ;;  %2034 = vmatpush1.bf16.msra.mxu1 %v2669_v21  ;;  %v425_v20 = vld [vmem:[%s2987_s21 + $0x5e8] sm:$0xff]  ;;  %v3151_v21 = vpack.c.bf16 %v216_v12, %v212_v11  ;;  %v468_v11 = vld [vmem:[%s2987_s21 + $0x740] sm:$0xff] }
  0x56   : > { %1889 = vmatprep.subr.bf16.mxu0 %v2676_v22  ;;  %2035 = vmatprep.subr.bf16.mxu1 %v2678_v23  ;;  %v191_v22 = vld [vmem:[%s3604_s0 + $0x18] sm:$0xff]  ;;  %v2726_v28 = vcombine.high %v421_v19, %v425_v20  ;;  %v2725_v35 = vcombine.low %v421_v19, %v425_v20  ;;  %v472_v12 = vld [vmem:[%s2987_s21 + $0x760] sm:$0xff] }
  0x57   : > { %1856 = vmatprep.mubr.bf16.mxu0 %v3077_v26  ;;  %2002 = vmatprep.mubr.bf16.mxu1 %v3077_v26  ;;  %v195_v23 = vld [vmem:[%s3604_s0 + $0x38] sm:$0xff]  ;;  %v476_v20 = vld [vmem:[%s2987_s21 + $0x780] sm:$0xff] }
  0x58   : > { %v3161_v31 = vpack.c.bf16 %v195_v23, %v191_v22  ;;  %v480_v22 = vld [vmem:[%s2987_s21 + $0x7a0] sm:$0xff]  ;;  %v477_v23 = vld [vmem:[%s2987_s21 + $0x788] sm:$0xff] }
  0x59   : > { %1890 = vmatpush1.bf16.msra.mxu0 %v2675_v29  ;;  %2036 = vmatpush1.bf16.msra.mxu1 %v2677_v32  ;;  %v428_v29 = vld [vmem:[%s2987_s21 + $0x600] sm:$0xff]  ;;  %v429_v32 = vld [vmem:[%s2987_s21 + $0x608] sm:$0xff] }
  0x5a   : > { %1891 = vmatprep.subr.bf16.mxu0 %v2684_v33  ;;  %2037 = vmatprep.subr.bf16.mxu1 %v2686_v34  ;;  %v433_v33 = vld [vmem:[%s2987_s21 + $0x628] sm:$0xff]  ;;  %v2723_v34 = vcombine.low %v420_v17, %v424_v18  ;;  %v2732_v36 = vcombine.high %v428_v29, %v432_v30  ;;  %v2772_v18 = vcombine.high %v468_v11, %v472_v12 }
  0x5b   : > { %v2734_v37 = vcombine.high %v429_v32, %v433_v33 }
  0x5c   : > { %1857 = vmatmul.mubr.bf16.gmra.mrb[4].mxu0 %v3098_v40  ;;  %2003 = vmatmul.mubr.bf16.gmra.mrb[4].mxu1 %v3098_v40 }
  0x5d   : > { %1892 = vmatpush1.bf16.msra.mxu0 %v2683_v42  ;;  %2038 = vmatpush1.bf16.msra.mxu1 %v2685_v43  ;;  %v441_v42 = vld [vmem:[%s2987_s21 + $0x668] sm:$0xff]  ;;  %v2731_v43 = vcombine.low %v428_v29, %v432_v30  ;;  %v484_v30 = vld [vmem:[%s2987_s21 + $0x7c0] sm:$0xff] }
  0x5e   : > { %1893 = vmatprep.subr.bf16.mxu0 %v2692_v44  ;;  %2039 = vmatprep.subr.bf16.mxu1 %v2694_v45  ;;  %v2733_v44 = vcombine.low %v429_v32, %v433_v33  ;;  %v2740_v45 = vcombine.high %v436_v38, %v440_v39  ;;  %v2742_v46 = vcombine.high %v437_v41, %v441_v42  ;;  %v488_v32 = vld [vmem:[%s2987_s21 + $0x7e0] sm:$0xff]  ;;  %v485_v33 = vld [vmem:[%s2987_s21 + $0x7c8] sm:$0xff]  ;;  %v238_v39 = vld [vmem:[%s2987_s21 + $0x10] sm:$0xff] }
  0x5f   : > { %1866 = vmatprep.mubr.bf16.mxu0 %v3105_v48  ;;  %2012 = vmatprep.mubr.bf16.mxu1 %v3105_v48  ;;  %v2741_v53 = vcombine.low %v437_v41, %v441_v42  ;;  %v242_v41 = vld [vmem:[%s2987_s21 + $0x30] sm:$0xff]  ;;  %v239_v42 = vld [vmem:[%s2987_s21 + $0x18] sm:$0xff] }
  0x61   : > { %1894 = vmatpush1.bf16.msra.mxu0 %v2691_v51  ;;  %2040 = vmatpush1.bf16.msra.mxu1 %v2693_v54  ;;  %v449_v51 = vld [vmem:[%s2987_s21 + $0x6a8] sm:$0xff]  ;;  %v2748_v54 = vcombine.high %v444_v47, %v448_v49  ;;  %v2544_v49 = vcombine.high %v238_v39, %v242_v41 }
  0x62   : > { %1895 = vmatprep.subr.bf16.mxu0 %v2700_v55  ;;  %2041 = vmatprep.subr.bf16.mxu1 %v2702_v56  ;;  %v2750_v55 = vcombine.high %v445_v50, %v449_v51  ;;  %v452_v56 = vld [vmem:[%s2987_s21 + $0x6c0] sm:$0xff]  ;;  %v2749_v61 = vcombine.low %v445_v50, %v449_v51  ;;  %v246_v51 = vld [vmem:[%s2987_s21 + $0x50] sm:$0xff] }
  0x63   : > { %v2756_v63 = vcombine.high %v452_v56, %v456_v57  ;;  %v2755_v6 = vcombine.low %v452_v56, %v456_v57  ;;  %v199_v56 = vld [vmem:[%s3604_s0 + $0x58] sm:$0xff] }
  0x64   : > { %1867 = vmatmul.mubr.bf16.gmra.mrb[8].mxu0 %v3126_v62  ;;  %2013 = vmatmul.mubr.bf16.gmra.mrb[8].mxu1 %v3126_v62  ;;  %v203_v57 = vld [vmem:[%s3604_s0 + $0x78] sm:$0xff] }
  0x65   : > { %1896 = vmatpush1.bf16.msra.mxu0 %v2699_v0  ;;  %2042 = vmatpush1.bf16.msra.mxu1 %v2701_v1  ;;  %v2758_v0 = vcombine.high %v453_v58, %v457_v59  ;;  %v460_v1 = vld [vmem:[%s2987_s21 + $0x700] sm:$0xff]  ;;  %v2543_v58 = vcombine.low %v238_v39, %v242_v41  ;;  %v282_v39 = vld [vmem:[%s2987_s21 + $0x170] sm:$0xff]  ;;  %v279_v41 = vld [vmem:[%s2987_s21 + $0x158] sm:$0xff] }
  0x66   : > { %1897 = vmatprep.subr.bf16.mxu0 %v2708_v3  ;;  %2043 = vmatprep.subr.bf16.mxu1 %v2710_v4  ;;  %v464_v3 = vld [vmem:[%s2987_s21 + $0x720] sm:$0xff]  ;;  %v461_v4 = vld [vmem:[%s2987_s21 + $0x708] sm:$0xff] }
  0x67   : > { %1876 = vmatprep.mubr.bf16.mxu0 %v3133_v7  ;;  %2022 = vmatprep.mubr.bf16.mxu1 %v3133_v7  ;;  %v2764_v9 = vcombine.high %v460_v1, %v464_v3  ;;  %v2765_v17 = vcombine.low %v461_v4, %v465_v5 }
  0x69   : > { %1898 = vmatpush1.bf16.msra.mxu0 %v2707_v10  ;;  %2044 = vmatpush1.bf16.msra.mxu1 %v2709_v13  ;;  %v2766_v10 = vcombine.high %v461_v4, %v465_v5  ;;  %v469_v13 = vld [vmem:[%s2987_s21 + $0x748] sm:$0xff]  ;;  %v259_v4 = vld [vmem:[%s2987_s21 + $0xb8] sm:$0xff] }
  0x6a   : > { %1899 = vmatprep.subr.bf16.mxu0 %v2716_v14  ;;  %2045 = vmatprep.subr.bf16.mxu1 %v2718_v15  ;;  %v473_v14 = vld [vmem:[%s2987_s21 + $0x768] sm:$0xff]  ;;  %v2763_v15 = vcombine.low %v460_v1, %v464_v3  ;;  %v258_v1 = vld [vmem:[%s2987_s21 + $0xb0] sm:$0xff]  ;;  %v255_v3 = vld [vmem:[%s2987_s21 + $0x98] sm:$0xff] }
  0x6b   : > { %v2774_v19 = vcombine.high %v469_v13, %v473_v14 }
  0x6c   : > { %1877 = vmatmul.mubr.bf16.gmra.mrb[12].mxu0 %v3151_v21  ;;  %2023 = vmatmul.mubr.bf16.gmra.mrb[12].mxu1 %v3151_v21 }
  0x6d   : > { %1900 = vmatpush1.bf16.msra.mxu0 %v2715_v24  ;;  %2046 = vmatpush1.bf16.msra.mxu1 %v2717_v25  ;;  %v481_v24 = vld [vmem:[%s2987_s21 + $0x7a8] sm:$0xff]  ;;  %v2771_v25 = vcombine.low %v468_v11, %v472_v12  ;;  %v2562_v11 = vcombine.high %v255_v3, %v259_v4  ;;  %v262_v12 = vld [vmem:[%s2987_s21 + $0xd0] sm:$0xff] }
  0x6e   : > { %1901 = vmatprep.subr.bf16.mxu0 %v2724_v27  ;;  %2047 = vmatprep.subr.bf16.mxu1 %v2726_v28  ;;  %v2773_v27 = vcombine.low %v469_v13, %v473_v14  ;;  %v2780_v28 = vcombine.high %v476_v20, %v480_v22  ;;  %v2782_v29 = vcombine.high %v477_v23, %v481_v24  ;;  %v266_v13 = vld [vmem:[%s2987_s21 + $0xf0] sm:$0xff]  ;;  %v263_v14 = vld [vmem:[%s2987_s21 + $0xd8] sm:$0xff] }
  0x6f   : > { %1919 = vmatprep.mubr.bf16.mxu0 %v3161_v31  ;;  %2065 = vmatprep.mubr.bf16.mxu1 %v3161_v31 }
  0x71   : > { %1902 = vmatpush1.bf16.msra.mxu0 %v2723_v34  ;;  %2048 = vmatpush1.bf16.msra.mxu1 %v2725_v35  ;;  %v489_v34 = vld [vmem:[%s2987_s21 + $0x7e8] sm:$0xff]  ;;  %v2779_v35 = vcombine.low %v476_v20, %v480_v22  ;;  %v2561_v22 = vcombine.low %v255_v3, %v259_v4  ;;  %v298_v3 = vld [vmem:[%s2987_s21 + $0x1f0] sm:$0xff] }
  0x72   : > { %1903 = vmatprep.subr.bf16.mxu0 %v2732_v36  ;;  %2049 = vmatprep.subr.bf16.mxu1 %v2734_v37  ;;  %v2781_v36 = vcombine.low %v477_v23, %v481_v24  ;;  %v2788_v37 = vcombine.high %v484_v30, %v488_v32  ;;  %v2790_v38 = vcombine.high %v485_v33, %v489_v34 }
  0x73   : > { %v2789_v47 = vcombine.low %v485_v33, %v489_v34  ;;  %v2568_v23 = vcombine.high %v262_v12, %v266_v13  ;;  %v206_v33 = vld [vmem:[%s3604_s0 + $0x90] sm:$0xff] }
  0x74   : > { %v210_v34 = vld [vmem:[%s3604_s0 + $0xb0] sm:$0xff] }
  0x75   : > { %1904 = vmatpush1.bf16.msra.mxu0 %v2731_v43  ;;  %2050 = vmatpush1.bf16.msra.mxu1 %v2733_v44  ;;  %v243_v43 = vld [vmem:[%s2987_s21 + $0x38] sm:$0xff]  ;;  %v2787_v44 = vcombine.low %v484_v30, %v488_v32  ;;  %v2567_v32 = vcombine.low %v262_v12, %v266_v13  ;;  %v302_v12 = vld [vmem:[%s2987_s21 + $0x210] sm:$0xff] }
  0x76   : > { %1905 = vmatprep.subr.bf16.mxu0 %v2740_v45  ;;  %2051 = vmatprep.subr.bf16.mxu1 %v2742_v46  ;;  %v190_v45 = vld [vmem:[%s3604_s0 + $0x10] sm:$0xff]  ;;  %v2546_v50 = vcombine.high %v239_v42, %v243_v43  ;;  %v2545_v59 = vcombine.low %v239_v42, %v243_v43  ;;  %v275_v30 = vld [vmem:[%s2987_s21 + $0x138] sm:$0xff]  ;;  %v3266_v42 = vpack.c.bf16 %v210_v34, %v206_v33 }
  0x77   : > { %v194_v46 = vld [vmem:[%s3604_s0 + $0x30] sm:$0xff]  ;;  %v283_v43 = vld [vmem:[%s2987_s21 + $0x178] sm:$0xff] }
  0x78   : > { %v306_v13 = vld [vmem:[%s2987_s21 + $0x230] sm:$0xff] }
  0x79   : > { %1906 = vmatpush1.bf16.msra.mxu0 %v2739_v52  ;;  %2052 = vmatpush1.bf16.msra.mxu1 %v2741_v53  ;;  %v250_v52 = vld [vmem:[%s2987_s21 + $0x70] sm:$0xff]  ;;  %v247_v53 = vld [vmem:[%s2987_s21 + $0x58] sm:$0xff] }
  0x7a   : > { %1907 = vmatprep.subr.bf16.mxu0 %v2748_v54  ;;  %2053 = vmatprep.subr.bf16.mxu1 %v2750_v55  ;;  %v3210_v54 = vpack.c.bf16 %v194_v46, %v190_v45  ;;  %v251_v55 = vld [vmem:[%s2987_s21 + $0x78] sm:$0xff]  ;;  %v2551_v5 = vcombine.low %v246_v51, %v250_v52  ;;  %v318_v34 = vld [vmem:[%s2987_s21 + $0x290] sm:$0xff] }
  0x7b   : > { %v219_v45 = vld [vmem:[%s3604_s0 + $0xf8] sm:$0xff] }
  0x7d   : > { %1908 = vmatpush1.bf16.msra.mxu0 %v2747_v60  ;;  %2054 = vmatpush1.bf16.msra.mxu1 %v2749_v61  ;;  %v2552_v60 = vcombine.high %v246_v51, %v250_v52  ;;  %v2554_v61 = vcombine.high %v247_v53, %v251_v55  ;;  %v286_v52 = vld [vmem:[%s2987_s21 + $0x190] sm:$0xff] }
  0x7e   : > { %1909 = vmatprep.subr.bf16.mxu0 %v2756_v63  ;;  %2055 = vmatprep.subr.bf16.mxu1 %v2758_v0  ;;  %v3219_v63 = vpack.c.bf16 %v203_v57, %v199_v56  ;;  %v254_v0 = vld [vmem:[%s2987_s21 + $0x90] sm:$0xff]  ;;  %v291_v56 = vld [vmem:[%s2987_s21 + $0x1b8] sm:$0xff] }
  0x7f   : > { %v2559_v20 = vcombine.low %v254_v0, %v258_v1 }
  0x81   : > { %1910 = vmatpush1.bf16.msra.mxu0 %v2755_v6  ;;  %2056 = vmatpush1.bf16.msra.mxu1 %v2757_v8  ;;  %v198_v6 = vld [vmem:[%s3604_s0 + $0x50] sm:$0xff] }
  0x82   : > { %1911 = vmatprep.subr.bf16.mxu0 %v2764_v9  ;;  %2057 = vmatprep.subr.bf16.mxu1 %v2766_v10  ;;  %v202_v8 = vld [vmem:[%s3604_s0 + $0x70] sm:$0xff]  ;;  %v2553_v9 = vcombine.low %v247_v53, %v251_v55  ;;  %v2560_v10 = vcombine.high %v254_v0, %v258_v1  ;;  %v287_v55 = vld [vmem:[%s2987_s21 + $0x198] sm:$0xff] }
  0x83   : > { %v290_v53 = vld [vmem:[%s2987_s21 + $0x1b0] sm:$0xff]  ;;  %v2594_v0 = vcombine.high %v287_v55, %v291_v56 }
  0x84   : > { %v294_v1 = vld [vmem:[%s2987_s21 + $0x1d0] sm:$0xff] }
  0x85   : > { %1912 = vmatpush1.bf16.msra.mxu0 %v2763_v15  ;;  %2058 = vmatpush1.bf16.msra.mxu1 %v2765_v17  ;;  %v3238_v15 = vpack.c.bf16 %v202_v8, %v198_v6  ;;  %v267_v17 = vld [vmem:[%s2987_s21 + $0xf8] sm:$0xff]  ;;  %v2591_v8 = vcombine.low %v286_v52, %v290_v53 }
  0x86   : > { %1913 = vmatprep.subr.bf16.mxu0 %v2772_v18  ;;  %2059 = vmatprep.subr.bf16.mxu1 %v2774_v19  ;;  %v207_v18 = vld [vmem:[%s3604_s0 + $0x98] sm:$0xff]  ;;  %v2570_v24 = vcombine.high %v263_v14, %v267_v17 }
  0x87   : > { %v211_v19 = vld [vmem:[%s3604_s0 + $0xb8] sm:$0xff] }
  0x88   : > { %v299_v6 = vld [vmem:[%s2987_s21 + $0x1f8] sm:$0xff] }
  0x89   : > { %1914 = vmatpush1.bf16.msra.mxu0 %v2771_v25  ;;  %2060 = vmatpush1.bf16.msra.mxu1 %v2773_v27  ;;  %v3247_v25 = vpack.c.bf16 %v211_v19, %v207_v18  ;;  %v270_v27 = vld [vmem:[%s2987_s21 + $0x110] sm:$0xff]  ;;  %v2599_v18 = vcombine.low %v294_v1, %v298_v3 }
  0x8a   : > { %1915 = vmatprep.subr.bf16.mxu0 %v2780_v28  ;;  %2061 = vmatprep.subr.bf16.mxu1 %v2782_v29  ;;  %v274_v28 = vld [vmem:[%s2987_s21 + $0x130] sm:$0xff]  ;;  %v271_v29 = vld [vmem:[%s2987_s21 + $0x118] sm:$0xff] }
  0x8b   : > { %v2575_v46 = vcombine.low %v270_v27, %v274_v28 }
  0x8d   : > { %1916 = vmatpush1.bf16.msra.mxu0 %v2779_v35  ;;  %2062 = vmatpush1.bf16.msra.mxu1 %v2781_v36  ;;  %v2569_v35 = vcombine.low %v263_v14, %v267_v17  ;;  %v2576_v36 = vcombine.high %v270_v27, %v274_v28  ;;  %v303_v14 = vld [vmem:[%s2987_s21 + $0x218] sm:$0xff] }
  0x8e   : > { %1917 = vmatprep.subr.bf16.mxu0 %v2788_v37  ;;  %2063 = vmatprep.subr.bf16.mxu1 %v2790_v38  ;;  %v2578_v37 = vcombine.high %v271_v29, %v275_v30  ;;  %v278_v38 = vld [vmem:[%s2987_s21 + $0x150] sm:$0xff]  ;;  %v307_v17 = vld [vmem:[%s2987_s21 + $0x238] sm:$0xff] }
  0x8f   : > { %v2583_v57 = vcombine.low %v278_v38, %v282_v39  ;;  %v311_v27 = vld [vmem:[%s2987_s21 + $0x258] sm:$0xff] }
  0x90   : > { %v315_v28 = vld [vmem:[%s2987_s21 + $0x278] sm:$0xff] }
  0x91   : > { %1918 = vmatpush1.bf16.msra.mxu0 %v2787_v44  ;;  %2064 = vmatpush1.bf16.msra.mxu1 %v2789_v47  ;;  %v215_v44 = vld [vmem:[%s3604_s0 + $0xd8] sm:$0xff]  ;;  %v2577_v47 = vcombine.low %v271_v29, %v275_v30  ;;  %v2607_v29 = vcombine.low %v302_v12, %v306_v13  ;;  %v2609_v30 = vcombine.low %v303_v14, %v307_v17 }
  0x92   : > { %2106 = vmatprep.subr.bf16.mxu0 %v2544_v49  ;;  %2252 = vmatprep.subr.bf16.mxu1 %v2546_v50  ;;  %v2584_v49 = vcombine.high %v278_v38, %v282_v39  ;;  %v2586_v50 = vcombine.high %v279_v41, %v283_v43  ;;  %v3275_v51 = vpack.c.bf16 %v219_v45, %v215_v44  ;;  %v330_v44 = vld [vmem:[%s2987_s21 + $0x2f0] sm:$0xff]  ;;  %v327_v45 = vld [vmem:[%s2987_s21 + $0x2d8] sm:$0xff] }
  0x93   : > { %v2618_v33 = vcombine.high %v311_v27, %v315_v28 }
  0x94   : > { %1920 = vmatmul.mubr.bf16.vlgmr.msra.gmra.mrb[0].mxu0 %v3210_v54  ;;  %2066 = vmatmul.mubr.bf16.vlgmr.msra.gmra.mrb[0].mxu1 %v3210_v54 }
  0x95   : > { %2107 = vmatpush1.bf16.msra.mxu0 %v2543_v58  ;;  %2253 = vmatpush1.bf16.msra.mxu1 %v2545_v59  ;;  %v214_v58 = vld [vmem:[%s3604_s0 + $0xd0] sm:$0xff] }
  0x96   : > { %2108 = vmatprep.subr.bf16.mxu0 %v2552_v60  ;;  %2254 = vmatprep.subr.bf16.mxu1 %v2554_v61  ;;  %v218_v59 = vld [vmem:[%s3604_s0 + $0xf0] sm:$0xff]  ;;  %v2585_v60 = vcombine.low %v279_v41, %v283_v43  ;;  %v2592_v61 = vcombine.high %v286_v52, %v290_v53 }
  0x97   : > { %1929 = vmatprep.mubr.bf16.mxu0 %v3219_v63  ;;  %2075 = vmatprep.mubr.bf16.mxu1 %v3219_v63  ;;  %v3293_v4 = vpack.c.bf16 %v218_v59, %v214_v58  ;;  %v326_v43 = vld [vmem:[%s2987_s21 + $0x2d0] sm:$0xff] }
  0x98   : > { %v334_v53 = vld [vmem:[%s2987_s21 + $0x310] sm:$0xff]  ;;  %v2631_v58 = vcombine.low %v326_v43, %v330_v44 }
  0x99   : > { %2109 = vmatpush1.bf16.msra.mxu0 %v2551_v5  ;;  %2255 = vmatpush1.bf16.msra.mxu1 %v2553_v9  ;;  %v295_v5 = vld [vmem:[%s2987_s21 + $0x1d8] sm:$0xff]  ;;  %v2593_v9 = vcombine.low %v287_v55, %v291_v56  ;;  %v338_v55 = vld [vmem:[%s2987_s21 + $0x330] sm:$0xff] }
  0x9a   : > { %2110 = vmatprep.subr.bf16.mxu0 %v2560_v10  ;;  %2256 = vmatprep.subr.bf16.mxu1 %v2562_v11  ;;  %v2600_v10 = vcombine.high %v294_v1, %v298_v3  ;;  %v2602_v11 = vcombine.high %v295_v5, %v299_v6  ;;  %v2601_v19 = vcombine.low %v295_v5, %v299_v6  ;;  %v335_v56 = vld [vmem:[%s2987_s21 + $0x318] sm:$0xff]  ;;  %v346_v1 = vld [vmem:[%s2987_s21 + $0x370] sm:$0xff] }
  0x9b   : > { %v343_v3 = vld [vmem:[%s2987_s21 + $0x358] sm:$0xff]  ;;  %v2639_v6 = vcombine.low %v334_v53, %v338_v55 }
  0x9c   : > { %1930 = vmatmul.mubr.bf16.gmra.mrb[4].mxu0 %v3238_v15  ;;  %2076 = vmatmul.mubr.bf16.gmra.mrb[4].mxu1 %v3238_v15  ;;  %v347_v5 = vld [vmem:[%s2987_s21 + $0x378] sm:$0xff] }
  0x9d   : > { %2111 = vmatpush1.bf16.msra.mxu0 %v2559_v20  ;;  %2257 = vmatpush1.bf16.msra.mxu1 %v2561_v22  ;;  %v2608_v20 = vcombine.high %v302_v12, %v306_v13  ;;  %v2610_v22 = vcombine.high %v303_v14, %v307_v17  ;;  %v354_v12 = vld [vmem:[%s2987_s21 + $0x3b0] sm:$0xff]  ;;  %v351_v13 = vld [vmem:[%s2987_s21 + $0x398] sm:$0xff] }
  0x9e   : > { %2112 = vmatprep.subr.bf16.mxu0 %v2568_v23  ;;  %2258 = vmatprep.subr.bf16.mxu1 %v2570_v24  ;;  %v310_v23 = vld [vmem:[%s2987_s21 + $0x250] sm:$0xff]  ;;  %v355_v14 = vld [vmem:[%s2987_s21 + $0x3b8] sm:$0xff] }
  0x9f   : > { %1939 = vmatprep.mubr.bf16.mxu0 %v3247_v25  ;;  %2085 = vmatprep.mubr.bf16.mxu1 %v3247_v25  ;;  %v314_v24 = vld [vmem:[%s2987_s21 + $0x270] sm:$0xff] }
  0xa0   : > { %v2615_v38 = vcombine.low %v310_v23, %v314_v24 }
  0xa1   : > { %2113 = vmatpush1.bf16.msra.mxu0 %v2567_v32  ;;  %2259 = vmatpush1.bf16.msra.mxu1 %v2569_v35  ;;  %v2616_v32 = vcombine.high %v310_v23, %v314_v24  ;;  %v322_v35 = vld [vmem:[%s2987_s21 + $0x2b0] sm:$0xff]  ;;  %v359_v24 = vld [vmem:[%s2987_s21 + $0x3d8] sm:$0xff] }
  0xa2   : > { %2114 = vmatprep.subr.bf16.mxu0 %v2576_v36  ;;  %2260 = vmatprep.subr.bf16.mxu1 %v2578_v37  ;;  %v319_v36 = vld [vmem:[%s2987_s21 + $0x298] sm:$0xff]  ;;  %v2624_v39 = vcombine.high %v318_v34, %v322_v35  ;;  %v362_v23 = vld [vmem:[%s2987_s21 + $0x3f0] sm:$0xff] }
  0xa3   : > { %v323_v37 = vld [vmem:[%s2987_s21 + $0x2b8] sm:$0xff] }
  0xa4   : > { %1940 = vmatmul.mubr.bf16.gmra.mrb[8].mxu0 %v3266_v42  ;;  %2086 = vmatmul.mubr.bf16.gmra.mrb[8].mxu1 %v3266_v42  ;;  %v2626_v41 = vcombine.high %v319_v36, %v323_v37 }
  0xa5   : > { %2115 = vmatpush1.bf16.msra.mxu0 %v2575_v46  ;;  %2261 = vmatpush1.bf16.msra.mxu1 %v2577_v47  ;;  %v331_v46 = vld [vmem:[%s2987_s21 + $0x2f8] sm:$0xff]  ;;  %v2623_v47 = vcombine.low %v318_v34, %v322_v35  ;;  %v370_v34 = vld [vmem:[%s2987_s21 + $0x430] sm:$0xff] }
  0xa6   : > { %2116 = vmatprep.subr.bf16.mxu0 %v2584_v49  ;;  %2262 = vmatprep.subr.bf16.mxu1 %v2586_v50  ;;  %v2625_v49 = vcombine.low %v319_v36, %v323_v37  ;;  %v2632_v50 = vcombine.high %v326_v43, %v330_v44  ;;  %v2634_v52 = vcombine.high %v327_v45, %v331_v46  ;;  %v367_v35 = vld [vmem:[%s2987_s21 + $0x418] sm:$0xff]  ;;  %v378_v43 = vld [vmem:[%s2987_s21 + $0x470] sm:$0xff] }
  0xa7   : > { %1949 = vmatprep.mubr.bf16.mxu0 %v3275_v51  ;;  %2095 = vmatprep.mubr.bf16.mxu1 %v3275_v51  ;;  %v2633_v59 = vcombine.low %v327_v45, %v331_v46  ;;  %v371_v36 = vld [vmem:[%s2987_s21 + $0x438] sm:$0xff] }
  0xa8   : > { %v375_v44 = vld [vmem:[%s2987_s21 + $0x458] sm:$0xff] }
  0xa9   : > { %2117 = vmatpush1.bf16.msra.mxu0 %v2583_v57  ;;  %2263 = vmatpush1.bf16.msra.mxu1 %v2585_v60  ;;  %v339_v57 = vld [vmem:[%s2987_s21 + $0x338] sm:$0xff]  ;;  %v2640_v60 = vcombine.high %v334_v53, %v338_v55  ;;  %v386_v53 = vld [vmem:[%s2987_s21 + $0x4b0] sm:$0xff] }
  0xaa   : > { %2118 = vmatprep.subr.bf16.mxu0 %v2592_v61  ;;  %2264 = vmatprep.subr.bf16.mxu1 %v2594_v0  ;;  %v2642_v61 = vcombine.high %v335_v56, %v339_v57  ;;  %v342_v0 = vld [vmem:[%s2987_s21 + $0x350] sm:$0xff]  ;;  %v379_v45 = vld [vmem:[%s2987_s21 + $0x478] sm:$0xff] }
  0xab   : > { %v2647_v17 = vcombine.low %v342_v0, %v346_v1  ;;  %v383_v55 = vld [vmem:[%s2987_s21 + $0x498] sm:$0xff] }
  0xac   : > { %1950 = vmatmul.mubr.bf16.gmra.mrb[12].mxu0 %v3293_v4  ;;  %2096 = vmatmul.mubr.bf16.gmra.mrb[12].mxu1 %v3293_v4 }
  0xad   : > { %2119 = vmatpush1.bf16.msra.mxu0 %v2591_v8  ;;  %2265 = vmatpush1.bf16.msra.mxu1 %v2593_v9  ;;  %v2641_v8 = vcombine.low %v335_v56, %v339_v57  ;;  %v2648_v9 = vcombine.high %v342_v0, %v346_v1  ;;  %v387_v56 = vld [vmem:[%s2987_s21 + $0x4b8] sm:$0xff]  ;;  %v394_v0 = vld [vmem:[%s2987_s21 + $0x4f0] sm:$0xff] }
  0xae   : > { %2120 = vmatprep.subr.bf16.mxu0 %v2600_v10  ;;  %2266 = vmatprep.subr.bf16.mxu1 %v2602_v11  ;;  %v2650_v10 = vcombine.high %v343_v3, %v347_v5  ;;  %v350_v11 = vld [vmem:[%s2987_s21 + $0x390] sm:$0xff]  ;;  %v391_v1 = vld [vmem:[%s2987_s21 + $0x4d8] sm:$0xff] }
  0xaf   : > { %2138 = vmatprep.mubr.bf16.mxu0 %v2977_v2  ;;  %2284 = vmatprep.mubr.bf16.mxu1 %v2977_v2  ;;  %v2617_v2 = vcombine.low %v311_v27, %v315_v28  ;;  %v363_v27 = vld [vmem:[%s2987_s21 + $0x3f8] sm:$0xff]  ;;  %v2655_v28 = vcombine.low %v350_v11, %v354_v12 }
  0xb1   : > { %2121 = vmatpush1.bf16.msra.mxu0 %v2599_v18  ;;  %2267 = vmatpush1.bf16.msra.mxu1 %v2601_v19  ;;  %v2649_v18 = vcombine.low %v343_v3, %v347_v5  ;;  %v2656_v19 = vcombine.high %v350_v11, %v354_v12  ;;  %v395_v3 = vld [vmem:[%s2987_s21 + $0x4f8] sm:$0xff]  ;;  %v2689_v5 = vcombine.low %v383_v55, %v387_v56 }
  0xb2   : > { %2122 = vmatprep.subr.bf16.mxu0 %v2608_v20  ;;  %2268 = vmatprep.subr.bf16.mxu1 %v2610_v22  ;;  %v2658_v20 = vcombine.high %v351_v13, %v355_v14  ;;  %v358_v22 = vld [vmem:[%s2987_s21 + $0x3d0] sm:$0xff]  ;;  %v399_v11 = vld [vmem:[%s2987_s21 + $0x518] sm:$0xff] }
  0xb3   : > { %v2663_v37 = vcombine.low %v358_v22, %v362_v23  ;;  %v403_v12 = vld [vmem:[%s2987_s21 + $0x538] sm:$0xff] }
  0xb5   : > { %2123 = vmatpush1.bf16.msra.mxu0 %v2607_v29  ;;  %2269 = vmatpush1.bf16.msra.mxu1 %v2609_v30  ;;  %v2657_v29 = vcombine.low %v351_v13, %v355_v14  ;;  %v2664_v30 = vcombine.high %v358_v22, %v362_v23  ;;  %v2697_v13 = vcombine.low %v391_v1, %v395_v3  ;;  %v411_v22 = vld [vmem:[%s2987_s21 + $0x578] sm:$0xff] }
  0xb6   : > { %2124 = vmatprep.subr.bf16.mxu0 %v2616_v32  ;;  %2270 = vmatprep.subr.bf16.mxu1 %v2618_v33  ;;  %v2666_v32 = vcombine.high %v359_v24, %v363_v27  ;;  %v366_v33 = vld [vmem:[%s2987_s21 + $0x410] sm:$0xff]  ;;  %v2705_v23 = vcombine.low %v399_v11, %v403_v12 }
  0xb7   : > { %v2671_v46 = vcombine.low %v366_v33, %v370_v34 }
  0xb9   : > { %2125 = vmatpush1.bf16.msra.mxu0 %v2615_v38  ;;  %2271 = vmatpush1.bf16.msra.mxu1 %v2617_v2  ;;  %v2665_v38 = vcombine.low %v359_v24, %v363_v27  ;;  %v2672_v2 = vcombine.high %v366_v33, %v370_v34 }
  0xba   : > { %2126 = vmatprep.subr.bf16.mxu0 %v2624_v39  ;;  %2272 = vmatprep.subr.bf16.mxu1 %v2626_v41  ;;  %v2674_v39 = vcombine.high %v367_v35, %v371_v36  ;;  %v374_v41 = vld [vmem:[%s2987_s21 + $0x450] sm:$0xff] }
  0xbb   : > { %v2679_v57 = vcombine.low %v374_v41, %v378_v43 }
  0xbd   : > { %2127 = vmatpush1.bf16.msra.mxu0 %v2623_v47  ;;  %2273 = vmatpush1.bf16.msra.mxu1 %v2625_v49  ;;  %v2673_v47 = vcombine.low %v367_v35, %v371_v36  ;;  %v2680_v49 = vcombine.high %v374_v41, %v378_v43  ;;  %v422_v36 = vld [vmem:[%s2987_s21 + $0x5d0] sm:$0xff] }
  0xbe   : > { %2128 = vmatprep.subr.bf16.mxu0 %v2632_v50  ;;  %2274 = vmatprep.subr.bf16.mxu1 %v2634_v52  ;;  %v2682_v50 = vcombine.high %v375_v44, %v379_v45  ;;  %v382_v52 = vld [vmem:[%s2987_s21 + $0x490] sm:$0xff] }
  0xc1   : > { %2129 = vmatpush1.bf16.msra.mxu0 %v2631_v58  ;;  %2275 = vmatpush1.bf16.msra.mxu1 %v2633_v59  ;;  %v2681_v58 = vcombine.low %v375_v44, %v379_v45  ;;  %v2688_v59 = vcombine.high %v382_v52, %v386_v53  ;;  %v430_v44 = vld [vmem:[%s2987_s21 + $0x610] sm:$0xff] }
  0xc2   : > { %2130 = vmatprep.subr.bf16.mxu0 %v2640_v60  ;;  %2276 = vmatprep.subr.bf16.mxu1 %v2642_v61  ;;  %v2690_v60 = vcombine.high %v383_v55, %v387_v56  ;;  %v390_v61 = vld [vmem:[%s2987_s21 + $0x4d0] sm:$0xff]  ;;  %v439_v56 = vld [vmem:[%s2987_s21 + $0x658] sm:$0xff] }
  0xc3   : > { %v434_v45 = vld [vmem:[%s2987_s21 + $0x630] sm:$0xff] }
  0xc4   : > { %v442_v55 = vld [vmem:[%s2987_s21 + $0x670] sm:$0xff] }
  0xc5   : > { %2131 = vmatpush1.bf16.msra.mxu0 %v2639_v6  ;;  %2277 = vmatpush1.bf16.msra.mxu1 %v2641_v8  ;;  %v2696_v6 = vcombine.high %v390_v61, %v394_v0  ;;  %v2698_v8 = vcombine.high %v391_v1, %v395_v3  ;;  %v447_v1 = vld [vmem:[%s2987_s21 + $0x698] sm:$0xff] }
  0xc6   : > { %2132 = vmatprep.subr.bf16.mxu0 %v2648_v9  ;;  %2278 = vmatprep.subr.bf16.mxu1 %v2650_v10  ;;  %v398_v9 = vld [vmem:[%s2987_s21 + $0x510] sm:$0xff]  ;;  %v451_v3 = vld [vmem:[%s2987_s21 + $0x6b8] sm:$0xff] }
  0xc7   : > { %v402_v10 = vld [vmem:[%s2987_s21 + $0x530] sm:$0xff] }
  0xc8   : > { %v2704_v14 = vcombine.high %v398_v9, %v402_v10 }
  0xc9   : > { %2133 = vmatpush1.bf16.msra.mxu0 %v2647_v17  ;;  %2279 = vmatpush1.bf16.msra.mxu1 %v2649_v18  ;;  %v2706_v17 = vcombine.high %v399_v11, %v403_v12  ;;  %v406_v18 = vld [vmem:[%s2987_s21 + $0x550] sm:$0xff]  ;;  %v459_v11 = vld [vmem:[%s2987_s21 + $0x6f8] sm:$0xff] }
  0xca   : > { %2134 = vmatprep.subr.bf16.mxu0 %v2656_v19  ;;  %2280 = vmatprep.subr.bf16.mxu1 %v2658_v20  ;;  %v410_v19 = vld [vmem:[%s2987_s21 + $0x570] sm:$0xff]  ;;  %v407_v20 = vld [vmem:[%s2987_s21 + $0x558] sm:$0xff] }
  0xcb   : > { %v2712_v24 = vcombine.high %v406_v18, %v410_v19  ;;  %v2714_v27 = vcombine.high %v407_v20, %v411_v22  ;;  %v2713_v33 = vcombine.low %v407_v20, %v411_v22  ;;  %v467_v20 = vld [vmem:[%s2987_s21 + $0x738] sm:$0xff] }
  0xcd   : > { %2135 = vmatpush1.bf16.msra.mxu0 %v2655_v28  ;;  %2281 = vmatpush1.bf16.msra.mxu1 %v2657_v29  ;;  %v414_v28 = vld [vmem:[%s2987_s21 + $0x590] sm:$0xff] }
  0xce   : > { %2136 = vmatprep.subr.bf16.mxu0 %v2664_v30  ;;  %2282 = vmatprep.subr.bf16.mxu1 %v2666_v32  ;;  %v418_v29 = vld [vmem:[%s2987_s21 + $0x5b0] sm:$0xff]  ;;  %v415_v30 = vld [vmem:[%s2987_s21 + $0x598] sm:$0xff] }
  0xcf   : > { %v419_v32 = vld [vmem:[%s2987_s21 + $0x5b8] sm:$0xff]  ;;  %v2720_v34 = vcombine.high %v414_v28, %v418_v29 }
  0xd0   : > { %v2722_v35 = vcombine.high %v415_v30, %v419_v32 }
  0xd1   : > { %2137 = vmatpush1.bf16.msra.mxu0 %v2663_v37  ;;  %2283 = vmatpush1.bf16.msra.mxu1 %v2665_v38  ;;  %v426_v37 = vld [vmem:[%s2987_s21 + $0x5f0] sm:$0xff]  ;;  %v423_v38 = vld [vmem:[%s2987_s21 + $0x5d8] sm:$0xff] }
  0xd2   : > { %2179 = vmatprep.subr.bf16.mxu0 %v2672_v2  ;;  %2325 = vmatprep.subr.bf16.mxu1 %v2674_v39  ;;  %v427_v2 = vld [vmem:[%s2987_s21 + $0x5f8] sm:$0xff]  ;;  %v2721_v39 = vcombine.low %v415_v30, %v419_v32  ;;  %v2728_v41 = vcombine.high %v422_v36, %v426_v37 }
  0xd3   : > { %v2730_v43 = vcombine.high %v423_v38, %v427_v2  ;;  %v475_v30 = vld [vmem:[%s2987_s21 + $0x778] sm:$0xff] }
  0xd4   : > { %2139 = vmatmul.mubr.bf16.vlgmr.msra.gmra.mrb[16].mxu0 %v3068_v16  ;;  %2285 = vmatmul.mubr.bf16.vlgmr.msra.gmra.mrb[16].mxu1 %v3068_v16  ;;  %v2687_v16 = vcombine.low %v382_v52, %v386_v53  ;;  %v438_v53 = vld [vmem:[%s2987_s21 + $0x650] sm:$0xff] }
  0xd5   : > { %2180 = vmatpush1.bf16.msra.mxu0 %v2671_v46  ;;  %2326 = vmatpush1.bf16.msra.mxu1 %v2673_v47  ;;  %v431_v46 = vld [vmem:[%s2987_s21 + $0x618] sm:$0xff] }
  0xd6   : > { %2181 = vmatprep.subr.bf16.mxu0 %v2680_v49  ;;  %2327 = vmatprep.subr.bf16.mxu1 %v2682_v50  ;;  %v435_v47 = vld [vmem:[%s2987_s21 + $0x638] sm:$0xff]  ;;  %v2729_v49 = vcombine.low %v423_v38, %v427_v2  ;;  %v2736_v50 = vcombine.high %v430_v44, %v434_v45 }
  0xd7   : > { %2148 = vmatprep.mubr.bf16.mxu0 %v3077_v26  ;;  %2294 = vmatprep.mubr.bf16.mxu1 %v3077_v26  ;;  %v2695_v26 = vcombine.low %v390_v61, %v394_v0  ;;  %v2738_v52 = vcombine.high %v431_v46, %v435_v47  ;;  %v446_v61 = vld [vmem:[%s2987_s21 + $0x690] sm:$0xff]  ;;  %v483_v38 = vld [vmem:[%s2987_s21 + $0x7b8] sm:$0xff] }
  0xd8   : > { %v450_v0 = vld [vmem:[%s2987_s21 + $0x6b0] sm:$0xff] }
  0xd9   : > { %2182 = vmatpush1.bf16.msra.mxu0 %v2679_v57  ;;  %2328 = vmatpush1.bf16.msra.mxu1 %v2681_v58  ;;  %v443_v57 = vld [vmem:[%s2987_s21 + $0x678] sm:$0xff]  ;;  %v2737_v58 = vcombine.low %v431_v46, %v435_v47  ;;  %v2751_v12 = vcombine.low %v446_v61, %v450_v0 }
  0xda   : > { %2183 = vmatprep.subr.bf16.mxu0 %v2688_v59  ;;  %2329 = vmatprep.subr.bf16.mxu1 %v2690_v60  ;;  %v2744_v59 = vcombine.high %v438_v53, %v442_v55  ;;  %v2746_v60 = vcombine.high %v439_v56, %v443_v57  ;;  %v491_v46 = vld [vmem:[%s2987_s21 + $0x7f8] sm:$0xff] }
  0xdc   : > { %2149 = vmatmul.mubr.bf16.gmra.mrb[20].mxu0 %v3098_v40  ;;  %2295 = vmatmul.mubr.bf16.gmra.mrb[20].mxu1 %v3098_v40  ;;  %v2703_v40 = vcombine.low %v398_v9, %v402_v10  ;;  %v458_v9 = vld [vmem:[%s2987_s21 + $0x6f0] sm:$0xff]  ;;  %v455_v10 = vld [vmem:[%s2987_s21 + $0x6d8] sm:$0xff] }
  0xdd   : > { %2184 = vmatpush1.bf16.msra.mxu0 %v2687_v16  ;;  %2330 = vmatpush1.bf16.msra.mxu1 %v2689_v5  ;;  %v2743_v16 = vcombine.low %v438_v53, %v442_v55  ;;  %v2752_v5 = vcombine.high %v446_v61, %v450_v0 }
  0xde   : > { %2185 = vmatprep.subr.bf16.mxu0 %v2696_v6  ;;  %2331 = vmatprep.subr.bf16.mxu1 %v2698_v8  ;;  %v2754_v6 = vcombine.high %v447_v1, %v451_v3  ;;  %v454_v8 = vld [vmem:[%s2987_s21 + $0x6d0] sm:$0xff] }
  0xdf   : > { %2158 = vmatprep.mubr.bf16.mxu0 %v3105_v48  ;;  %2304 = vmatprep.mubr.bf16.mxu1 %v3105_v48  ;;  %v2711_v48 = vcombine.low %v406_v18, %v410_v19  ;;  %v466_v18 = vld [vmem:[%s2987_s21 + $0x730] sm:$0xff]  ;;  %v463_v19 = vld [vmem:[%s2987_s21 + $0x718] sm:$0xff]  ;;  %v2759_v22 = vcombine.low %v454_v8, %v458_v9 }
  0xe1   : > { %2186 = vmatpush1.bf16.msra.mxu0 %v2695_v26  ;;  %2332 = vmatpush1.bf16.msra.mxu1 %v2697_v13  ;;  %v2753_v26 = vcombine.low %v447_v1, %v451_v3  ;;  %v2760_v13 = vcombine.high %v454_v8, %v458_v9 }
  0xe2   : > { %2187 = vmatprep.subr.bf16.mxu0 %v2704_v14  ;;  %2333 = vmatprep.subr.bf16.mxu1 %v2706_v17  ;;  %v2762_v14 = vcombine.high %v455_v10, %v459_v11  ;;  %v462_v17 = vld [vmem:[%s2987_s21 + $0x710] sm:$0xff] }
  0xe3   : > { %v2767_v32 = vcombine.low %v462_v17, %v466_v18 }
  0xe4   : > { %2159 = vmatmul.mubr.bf16.gmra.mrb[24].mxu0 %v3126_v62  ;;  %2305 = vmatmul.mubr.bf16.gmra.mrb[24].mxu1 %v3126_v62  ;;  %v2719_v62 = vcombine.low %v414_v28, %v418_v29  ;;  %v474_v28 = vld [vmem:[%s2987_s21 + $0x770] sm:$0xff]  ;;  %v471_v29 = vld [vmem:[%s2987_s21 + $0x758] sm:$0xff] }
  0xe5   : > { %2188 = vmatpush1.bf16.msra.mxu0 %v2703_v40  ;;  %2334 = vmatpush1.bf16.msra.mxu1 %v2705_v23  ;;  %v2761_v40 = vcombine.low %v455_v10, %v459_v11  ;;  %v2768_v23 = vcombine.high %v462_v17, %v466_v18 }
  0xe6   : > { %2189 = vmatprep.subr.bf16.mxu0 %v2712_v24  ;;  %2335 = vmatprep.subr.bf16.mxu1 %v2714_v27  ;;  %v2770_v24 = vcombine.high %v463_v19, %v467_v20  ;;  %v470_v27 = vld [vmem:[%s2987_s21 + $0x750] sm:$0xff] }
  0xe7   : > { %2168 = vmatprep.mubr.bf16.mxu0 %v3133_v7  ;;  %2314 = vmatprep.mubr.bf16.mxu1 %v3133_v7  ;;  %v2727_v7 = vcombine.low %v422_v36, %v426_v37  ;;  %v482_v36 = vld [vmem:[%s2987_s21 + $0x7b0] sm:$0xff]  ;;  %v479_v37 = vld [vmem:[%s2987_s21 + $0x798] sm:$0xff]  ;;  %v2775_v2 = vcombine.low %v470_v27, %v474_v28 }
  0xe9   : > { %2190 = vmatpush1.bf16.msra.mxu0 %v2711_v48  ;;  %2336 = vmatpush1.bf16.msra.mxu1 %v2713_v33  ;;  %v2769_v48 = vcombine.low %v463_v19, %v467_v20  ;;  %v2776_v33 = vcombine.high %v470_v27, %v474_v28 }
  0xea   : > { %2191 = vmatprep.subr.bf16.mxu0 %v2720_v34  ;;  %2337 = vmatprep.subr.bf16.mxu1 %v2722_v35  ;;  %v2778_v34 = vcombine.high %v471_v29, %v475_v30  ;;  %v478_v35 = vld [vmem:[%s2987_s21 + $0x790] sm:$0xff] }
  0xeb   : > { %v2783_v47 = vcombine.low %v478_v35, %v482_v36 }
  0xec   : > { %2169 = vmatmul.mubr.bf16.gmra.mrb[28].mxu0 %v3151_v21  ;;  %2315 = vmatmul.mubr.bf16.gmra.mrb[28].mxu1 %v3151_v21  ;;  %v2735_v21 = vcombine.low %v430_v44, %v434_v45  ;;  %v490_v44 = vld [vmem:[%s2987_s21 + $0x7f0] sm:$0xff]  ;;  %v487_v45 = vld [vmem:[%s2987_s21 + $0x7d8] sm:$0xff] }
  0xed   : > { %2192 = vmatpush1.bf16.msra.mxu0 %v2719_v62  ;;  %2338 = vmatpush1.bf16.msra.mxu1 %v2721_v39  ;;  %v2777_v62 = vcombine.low %v471_v29, %v475_v30  ;;  %v2784_v39 = vcombine.high %v478_v35, %v482_v36  ;;  %v2793_v53 = vcombine.low %v487_v45, %v491_v46 }
  0xee   : > { %2193 = vmatprep.subr.bf16.mxu0 %v2728_v41  ;;  %2339 = vmatprep.subr.bf16.mxu1 %v2730_v43  ;;  %v2786_v41 = vcombine.high %v479_v37, %v483_v38  ;;  %v486_v43 = vld [vmem:[%s2987_s21 + $0x7d0] sm:$0xff]  ;;  %s2536_s21 = sshll.u32 %s3609_s13, 3 }
  0xef   : > { %2211 = vmatprep.mubr.bf16.mxu0 %v3161_v31  ;;  %2357 = vmatprep.mubr.bf16.mxu1 %v3161_v31  ;;  %v2745_v31 = vcombine.low %v439_v56, %v443_v57  ;;  %s182_s9 = scalar_lea.vmem %s3606_s2, %s2536_s21 }
  0xf1   : > { %2194 = vmatpush1.bf16.msra.mxu0 %v2727_v7  ;;  %2340 = vmatpush1.bf16.msra.mxu1 %v2729_v49  ;;  %v2785_v7 = vcombine.low %v479_v37, %v483_v38  ;;  %v2792_v49 = vcombine.high %v486_v43, %v490_v44 }
  0xf2   : > { %2195 = vmatprep.subr.bf16.mxu0 %v2736_v50  ;;  %2341 = vmatprep.subr.bf16.mxu1 %v2738_v52  ;;  %v2794_v50 = vcombine.high %v487_v45, %v491_v46  ;;  %v2791_v52 = vcombine.low %v486_v43, %v490_v44 }
  0xf5   : > { %2196 = vmatpush1.bf16.msra.mxu0 %v2735_v21  ;;  %2342 = vmatpush1.bf16.msra.mxu1 %v2737_v58 }
  0xf6   : > { %2197 = vmatprep.subr.bf16.mxu0 %v2744_v59  ;;  %2343 = vmatprep.subr.bf16.mxu1 %v2746_v60 }
  0xf9   : > { %2198 = vmatpush1.bf16.msra.mxu0 %v2743_v16  ;;  %2344 = vmatpush1.bf16.msra.mxu1 %v2745_v31 }
  0xfa   : > { %2199 = vmatprep.subr.bf16.mxu0 %v2752_v5  ;;  %2345 = vmatprep.subr.bf16.mxu1 %v2754_v6 }
  0xfd   : > { %2200 = vmatpush1.bf16.msra.mxu0 %v2751_v12  ;;  %2346 = vmatpush1.bf16.msra.mxu1 %v2753_v26 }
  0xfe   : > { %2201 = vmatprep.subr.bf16.mxu0 %v2760_v13  ;;  %2347 = vmatprep.subr.bf16.mxu1 %v2762_v14 }
 0x101   : > { %2202 = vmatpush1.bf16.msra.mxu0 %v2759_v22  ;;  %2348 = vmatpush1.bf16.msra.mxu1 %v2761_v40 }
 0x102   : > { %2203 = vmatprep.subr.bf16.mxu0 %v2768_v23  ;;  %2349 = vmatprep.subr.bf16.mxu1 %v2770_v24 }
 0x105   : > { %2204 = vmatpush1.bf16.msra.mxu0 %v2767_v32  ;;  %2350 = vmatpush1.bf16.msra.mxu1 %v2769_v48 }
 0x106   : > { %2205 = vmatprep.subr.bf16.mxu0 %v2776_v33  ;;  %2351 = vmatprep.subr.bf16.mxu1 %v2778_v34 }
 0x109   : > { %2206 = vmatpush1.bf16.msra.mxu0 %v2775_v2  ;;  %2352 = vmatpush1.bf16.msra.mxu1 %v2777_v62 }
 0x10a   : > { %2207 = vmatprep.subr.bf16.mxu0 %v2784_v39  ;;  %2353 = vmatprep.subr.bf16.mxu1 %v2786_v41 }
 0x10d   : > { %2208 = vmatpush1.bf16.msra.mxu0 %v2783_v47  ;;  %2354 = vmatpush1.bf16.msra.mxu1 %v2785_v7 }
 0x10e   : > { %2209 = vmatprep.subr.bf16.mxu0 %v2792_v49  ;;  %2355 = vmatprep.subr.bf16.mxu1 %v2794_v50 }
 0x111   : > { %2210 = vmatpush1.bf16.msra.mxu0 %v2791_v52  ;;  %2356 = vmatpush1.bf16.msra.mxu1 %v2793_v53 }
 0x114   : > { %2212 = vmatmul.mubr.bf16.vlgmr.msra.gmra.mrb[16].mxu0 %v3210_v54  ;;  %2358 = vmatmul.mubr.bf16.vlgmr.msra.gmra.mrb[16].mxu1 %v3210_v54  ;;  %v494_v54 = vlaneseq }
 0x115   : > { %2221 = vmatprep.mubr.bf16.mxu0 %v3219_v63  ;;  %2367 = vmatprep.mubr.bf16.mxu1 %v3219_v63 }
 0x116   : > { %v3428_v63 = vshrl.u32 %v494_v54, 7 }
 0x118   : > { %v508_v55 = vsub.s32 3, %v3428_v63 }
 0x11c   : > { %2222 = vmatmul.mubr.bf16.gmra.mrb[20].mxu0 %v3238_v15  ;;  %2368 = vmatmul.mubr.bf16.gmra.mrb[20].mxu1 %v3238_v15  ;;  %v496_v15 = vsub.s32 0, %v3428_v63 }
 0x11d   : > { %2231 = vmatprep.mubr.bf16.mxu0 %v3247_v25  ;;  %2377 = vmatprep.mubr.bf16.mxu1 %v3247_v25  ;;  %v3434_v25 = vld [vmem:[%s182_s9] sm:$0xff] }
 0x11e   : > { %v3450_v21 = vrot.slane %v3434_v25, %v508_v55 }
 0x124   : > { %2232 = vmatmul.mubr.bf16.gmra.mrb[24].mxu0 %v3266_v42  ;;  %2378 = vmatmul.mubr.bf16.gmra.mrb[24].mxu1 %v3266_v42  ;;  %v504_v42 = vsub.s32 2, %v3428_v63 }
 0x125   : > { %2241 = vmatprep.mubr.bf16.mxu0 %v3275_v51  ;;  %2387 = vmatprep.mubr.bf16.mxu1 %v3275_v51  ;;  %v500_v51 = vsub.s32 1, %v3428_v63 }
 0x126   : > { %v3444_v56 = vrot.slane %v3434_v25, %v504_v42 }
 0x127   : > { %v3447_v57 = vrot.slane %v3434_v25, %v500_v51 }
 0x12c   : > { %2242 = vmatmul.mubr.bf16.gmra.mrb[28].mxu0 %v3293_v4  ;;  %2388 = vmatmul.mubr.bf16.gmra.mrb[28].mxu1 %v3293_v4  ;;  %v3441_v4 = vrot.slane %v3434_v25, %v496_v15 }
 0x167   : > { %v1921_v58 = vpop.f32.mrb[0].mxu0  ;;  %v2067_v60 = vpop.f32.mrb[0].mxu1 }
 0x168   : > { %v2799_v59 = vadd.f32 %v1921_v58, %v3441_v4  ;;  %v1923_v61 = vpop.f32.mrb[1].mxu0  ;;  %v2815_v0 = vadd.f32 %v2067_v60, %v3444_v56  ;;  %v2069_v3 = vpop.f32.mrb[1].mxu1 }
 0x169   : > { %v2800_v1 = vadd.f32 %v1923_v61, %v3447_v57  ;;  %v1925_v16 = vpop.f32.mrb[2].mxu0  ;;  %v2816_v31 = vadd.f32 %v2069_v3, %v3450_v21  ;;  %v2071_v6 = vpop.f32.mrb[2].mxu1  ;;  %v512_v3 = vsub.s32 4, %v3428_v63 }
 0x16a   : > { %2398 = vst [vmem:[%s3455_s15] sm:$0xff] %v2799_v59  ;;  %v2801_v5 = vadd.f32 %v1925_v16, %v3441_v4  ;;  %v1927_v8 = vpop.f32.mrb[3].mxu0  ;;  %2400 = vst [vmem:[%s3455_s15 + $0x10] sm:$0xff] %v2815_v0  ;;  %v2817_v9 = vadd.f32 %v2071_v6, %v3444_v56  ;;  %v2073_v11 = vpop.f32.mrb[3].mxu1  ;;  %v516_v16 = vsub.s32 5, %v3428_v63 }
 0x16b   : > { %2399 = vst [vmem:[%s3455_s15 + $0x8] sm:$0xff] %v2800_v1  ;;  %v2802_v10 = vadd.f32 %v1927_v8, %v3447_v57  ;;  %2401 = vst [vmem:[%s3455_s15 + $0x18] sm:$0xff] %v2816_v31  ;;  %v2818_v12 = vadd.f32 %v2073_v11, %v3450_v21  ;;  %v524_v31 = vsub.s32 7, %v3428_v63 }
 0x16c   : > { %2406 = vst [vmem:[%s3455_s15 + $0x40] sm:$0xff] %v2801_v5  ;;  %2408 = vst [vmem:[%s3455_s15 + $0x50] sm:$0xff] %v2817_v9 }
 0x16d   : > { %2407 = vst [vmem:[%s3455_s15 + $0x48] sm:$0xff] %v2802_v10  ;;  %2409 = vst [vmem:[%s3455_s15 + $0x58] sm:$0xff] %v2818_v12  ;;  %v3535_v5 = vrot.slane %v3434_v25, %v524_v31 }
 0x16f   : > { %v1931_v26 = vpop.f32.mrb[4].mxu0  ;;  %v2077_v14 = vpop.f32.mrb[4].mxu1 }
 0x170   : > { %v2803_v13 = vadd.f32 %v1931_v26, %v3441_v4  ;;  %v1933_v17 = vpop.f32.mrb[5].mxu0  ;;  %v2819_v18 = vadd.f32 %v2077_v14, %v3444_v56  ;;  %v2079_v20 = vpop.f32.mrb[5].mxu1 }
 0x171   : > { %v2804_v19 = vadd.f32 %v1933_v17, %v3447_v57  ;;  %v1935_v22 = vpop.f32.mrb[6].mxu0  ;;  %v2820_v40 = vadd.f32 %v2079_v20, %v3450_v21  ;;  %v2081_v24 = vpop.f32.mrb[6].mxu1 }
 0x172   : > { %2414 = vst [vmem:[%s3455_s15 + $0x80] sm:$0xff] %v2803_v13  ;;  %v2805_v23 = vadd.f32 %v1935_v22, %v3441_v4  ;;  %v1937_v27 = vpop.f32.mrb[7].mxu0  ;;  %2416 = vst [vmem:[%s3455_s15 + $0x90] sm:$0xff] %v2819_v18  ;;  %v2821_v28 = vadd.f32 %v2081_v24, %v3444_v56  ;;  %v2083_v30 = vpop.f32.mrb[7].mxu1 }
 0x173   : > { %2415 = vst [vmem:[%s3455_s15 + $0x88] sm:$0xff] %v2804_v19  ;;  %v2806_v29 = vadd.f32 %v1937_v27, %v3447_v57  ;;  %2417 = vst [vmem:[%s3455_s15 + $0x98] sm:$0xff] %v2820_v40  ;;  %v2822_v32 = vadd.f32 %v2083_v30, %v3450_v21 }
 0x174   : > { %2422 = vst [vmem:[%s3455_s15 + $0xc0] sm:$0xff] %v2805_v23  ;;  %2424 = vst [vmem:[%s3455_s15 + $0xd0] sm:$0xff] %v2821_v28 }
 0x175   : > { %2423 = vst [vmem:[%s3455_s15 + $0xc8] sm:$0xff] %v2806_v29  ;;  %2425 = vst [vmem:[%s3455_s15 + $0xd8] sm:$0xff] %v2822_v32 }
 0x177   : > { %v1941_v48 = vpop.f32.mrb[8].mxu0  ;;  %v2087_v34 = vpop.f32.mrb[8].mxu1 }
 0x178   : > { %v2807_v33 = vadd.f32 %v1941_v48, %v3441_v4  ;;  %v1943_v35 = vpop.f32.mrb[9].mxu0  ;;  %v2823_v36 = vadd.f32 %v2087_v34, %v3444_v56  ;;  %v2089_v38 = vpop.f32.mrb[9].mxu1 }
 0x179   : > { %v2808_v37 = vadd.f32 %v1943_v35, %v3447_v57  ;;  %v1945_v2 = vpop.f32.mrb[10].mxu0  ;;  %v2824_v62 = vadd.f32 %v2089_v38, %v3450_v21  ;;  %v2091_v41 = vpop.f32.mrb[10].mxu1 }
 0x17a   : > { %2430 = vst [vmem:[%s3455_s15 + $0x100] sm:$0xff] %v2807_v33  ;;  %v2809_v39 = vadd.f32 %v1945_v2, %v3441_v4  ;;  %v1947_v43 = vpop.f32.mrb[11].mxu0  ;;  %2432 = vst [vmem:[%s3455_s15 + $0x110] sm:$0xff] %v2823_v36  ;;  %v2825_v44 = vadd.f32 %v2091_v41, %v3444_v56  ;;  %v2093_v46 = vpop.f32.mrb[11].mxu1 }
 0x17b   : > { %2431 = vst [vmem:[%s3455_s15 + $0x108] sm:$0xff] %v2808_v37  ;;  %v2810_v45 = vadd.f32 %v1947_v43, %v3447_v57  ;;  %2433 = vst [vmem:[%s3455_s15 + $0x118] sm:$0xff] %v2824_v62  ;;  %v2826_v47 = vadd.f32 %v2093_v46, %v3450_v21 }
 0x17c   : > { %2438 = vst [vmem:[%s3455_s15 + $0x140] sm:$0xff] %v2809_v39  ;;  %2440 = vst [vmem:[%s3455_s15 + $0x150] sm:$0xff] %v2825_v44 }
 0x17d   : > { %2439 = vst [vmem:[%s3455_s15 + $0x148] sm:$0xff] %v2810_v45  ;;  %2441 = vst [vmem:[%s3455_s15 + $0x158] sm:$0xff] %v2826_v47 }
 0x17f   : > { %v1951_v7 = vpop.f32.mrb[12].mxu0  ;;  %v2097_v50 = vpop.f32.mrb[12].mxu1 }
 0x180   : > { %v2811_v49 = vadd.f32 %v1951_v7, %v3441_v4  ;;  %v1953_v52 = vpop.f32.mrb[13].mxu0  ;;  %v2827_v53 = vadd.f32 %v2097_v50, %v3444_v56  ;;  %v2099_v15 = vpop.f32.mrb[13].mxu1 }
 0x181   : > { %v2812_v54 = vadd.f32 %v1953_v52, %v3447_v57  ;;  %v1955_v42 = vpop.f32.mrb[14].mxu0  ;;  %v2828_v51 = vadd.f32 %v2099_v15, %v3450_v21  ;;  %v2101_v58 = vpop.f32.mrb[14].mxu1 }
 0x182   : > { %2446 = vst [vmem:[%s3455_s15 + $0x180] sm:$0xff] %v2811_v49  ;;  %v2813_v55 = vadd.f32 %v1955_v42, %v3441_v4  ;;  %v1957_v59 = vpop.f32.mrb[15].mxu0  ;;  %2448 = vst [vmem:[%s3455_s15 + $0x190] sm:$0xff] %v2827_v53  ;;  %v2829_v60 = vadd.f32 %v2101_v58, %v3444_v56  ;;  %v2103_v0 = vpop.f32.mrb[15].mxu1  ;;  %v520_v4 = vsub.s32 6, %v3428_v63  ;;  %v3526_v56 = vrot.slane %v3434_v25, %v512_v3 }
 0x183   : > { %2447 = vst [vmem:[%s3455_s15 + $0x188] sm:$0xff] %v2812_v54  ;;  %v2814_v61 = vadd.f32 %v1957_v59, %v3447_v57  ;;  %2449 = vst [vmem:[%s3455_s15 + $0x198] sm:$0xff] %v2828_v51  ;;  %v2830_v1 = vadd.f32 %v2103_v0, %v3450_v21  ;;  %v3532_v21 = vrot.slane %v3434_v25, %v516_v16 }
 0x184   : > { %2454 = vst [vmem:[%s3455_s15 + $0x1c0] sm:$0xff] %v2813_v55  ;;  %2456 = vst [vmem:[%s3455_s15 + $0x1d0] sm:$0xff] %v2829_v60  ;;  %v3529_v57 = vrot.slane %v3434_v25, %v520_v4 }
 0x185   : > { %2455 = vst [vmem:[%s3455_s15 + $0x1c8] sm:$0xff] %v2814_v61  ;;  %2457 = vst [vmem:[%s3455_s15 + $0x1d8] sm:$0xff] %v2830_v1 }
 0x1e7   : > { %v2213_v6 = vpop.f32.mrb[16].mxu0  ;;  %v2359_v9 = vpop.f32.mrb[16].mxu1 }
 0x1e8   : > { %v2831_v8 = vadd.f32 %v2213_v6, %v3526_v56  ;;  %v2215_v63 = vpop.f32.mrb[17].mxu0  ;;  %v2847_v10 = vadd.f32 %v2359_v9, %v3529_v57  ;;  %v2361_v12 = vpop.f32.mrb[17].mxu1 }
 0x1e9   : > { %v2832_v11 = vadd.f32 %v2215_v63, %v3532_v21  ;;  %v2217_v26 = vpop.f32.mrb[18].mxu0  ;;  %v2848_v25 = vadd.f32 %v2361_v12, %v3535_v5  ;;  %v2363_v14 = vpop.f32.mrb[18].mxu1 }
 0x1ea   : > { %2402 = vst [vmem:[%s3455_s15 + $0x20] sm:$0xff] %v2831_v8  ;;  %v2833_v13 = vadd.f32 %v2217_v26, %v3526_v56  ;;  %v2219_v17 = vpop.f32.mrb[19].mxu0  ;;  %2404 = vst [vmem:[%s3455_s15 + $0x30] sm:$0xff] %v2847_v10  ;;  %v2849_v18 = vadd.f32 %v2363_v14, %v3529_v57  ;;  %v2365_v20 = vpop.f32.mrb[19].mxu1 }
 0x1eb   : > { %2403 = vst [vmem:[%s3455_s15 + $0x28] sm:$0xff] %v2832_v11  ;;  %v2834_v19 = vadd.f32 %v2219_v17, %v3532_v21  ;;  %2405 = vst [vmem:[%s3455_s15 + $0x38] sm:$0xff] %v2848_v25  ;;  %v2850_v22 = vadd.f32 %v2365_v20, %v3535_v5 }
 0x1ec   : > { %2410 = vst [vmem:[%s3455_s15 + $0x60] sm:$0xff] %v2833_v13  ;;  %2412 = vst [vmem:[%s3455_s15 + $0x70] sm:$0xff] %v2849_v18 }
 0x1ed   : > { %2411 = vst [vmem:[%s3455_s15 + $0x68] sm:$0xff] %v2834_v19  ;;  %2413 = vst [vmem:[%s3455_s15 + $0x78] sm:$0xff] %v2850_v22 }
 0x1ef   : > { %v2223_v40 = vpop.f32.mrb[20].mxu0  ;;  %v2369_v24 = vpop.f32.mrb[20].mxu1 }
 0x1f0   : > { %v2835_v23 = vadd.f32 %v2223_v40, %v3526_v56  ;;  %v2225_v27 = vpop.f32.mrb[21].mxu0  ;;  %v2851_v28 = vadd.f32 %v2369_v24, %v3529_v57  ;;  %v2371_v30 = vpop.f32.mrb[21].mxu1 }
 0x1f1   : > { %v2836_v29 = vadd.f32 %v2225_v27, %v3532_v21  ;;  %v2227_v32 = vpop.f32.mrb[22].mxu0  ;;  %v2852_v48 = vadd.f32 %v2371_v30, %v3535_v5  ;;  %v2373_v34 = vpop.f32.mrb[22].mxu1 }
 0x1f2   : > { %2418 = vst [vmem:[%s3455_s15 + $0xa0] sm:$0xff] %v2835_v23  ;;  %v2837_v33 = vadd.f32 %v2227_v32, %v3526_v56  ;;  %v2229_v35 = vpop.f32.mrb[23].mxu0  ;;  %2420 = vst [vmem:[%s3455_s15 + $0xb0] sm:$0xff] %v2851_v28  ;;  %v2853_v36 = vadd.f32 %v2373_v34, %v3529_v57  ;;  %v2375_v38 = vpop.f32.mrb[23].mxu1 }
 0x1f3   : > { %2419 = vst [vmem:[%s3455_s15 + $0xa8] sm:$0xff] %v2836_v29  ;;  %v2838_v37 = vadd.f32 %v2229_v35, %v3532_v21  ;;  %2421 = vst [vmem:[%s3455_s15 + $0xb8] sm:$0xff] %v2852_v48  ;;  %v2854_v2 = vadd.f32 %v2375_v38, %v3535_v5 }
 0x1f4   : > { %2426 = vst [vmem:[%s3455_s15 + $0xe0] sm:$0xff] %v2837_v33  ;;  %2428 = vst [vmem:[%s3455_s15 + $0xf0] sm:$0xff] %v2853_v36 }
 0x1f5   : > { %2427 = vst [vmem:[%s3455_s15 + $0xe8] sm:$0xff] %v2838_v37  ;;  %2429 = vst [vmem:[%s3455_s15 + $0xf8] sm:$0xff] %v2854_v2 }
 0x1f7   : > { %v2233_v62 = vpop.f32.mrb[24].mxu0  ;;  %v2379_v41 = vpop.f32.mrb[24].mxu1 }
 0x1f8   : > { %v2839_v39 = vadd.f32 %v2233_v62, %v3526_v56  ;;  %v2235_v43 = vpop.f32.mrb[25].mxu0  ;;  %v2855_v44 = vadd.f32 %v2379_v41, %v3529_v57  ;;  %v2381_v46 = vpop.f32.mrb[25].mxu1 }
 0x1f9   : > { %v2840_v45 = vadd.f32 %v2235_v43, %v3532_v21  ;;  %v2237_v47 = vpop.f32.mrb[26].mxu0  ;;  %v2856_v7 = vadd.f32 %v2381_v46, %v3535_v5  ;;  %v2383_v50 = vpop.f32.mrb[26].mxu1 }
 0x1fa   : > { %2434 = vst [vmem:[%s3455_s15 + $0x120] sm:$0xff] %v2839_v39  ;;  %v2841_v49 = vadd.f32 %v2237_v47, %v3526_v56  ;;  %v2239_v52 = vpop.f32.mrb[27].mxu0  ;;  %2436 = vst [vmem:[%s3455_s15 + $0x130] sm:$0xff] %v2855_v44  ;;  %v2857_v53 = vadd.f32 %v2383_v50, %v3529_v57  ;;  %v2385_v15 = vpop.f32.mrb[27].mxu1 }
 0x1fb   : > { %2435 = vst [vmem:[%s3455_s15 + $0x128] sm:$0xff] %v2840_v45  ;;  %v2842_v54 = vadd.f32 %v2239_v52, %v3532_v21  ;;  %2437 = vst [vmem:[%s3455_s15 + $0x138] sm:$0xff] %v2856_v7  ;;  %v2858_v42 = vadd.f32 %v2385_v15, %v3535_v5 }
 0x1fc   : > { %2442 = vst [vmem:[%s3455_s15 + $0x160] sm:$0xff] %v2841_v49  ;;  %2444 = vst [vmem:[%s3455_s15 + $0x170] sm:$0xff] %v2857_v53 }
 0x1fd   : > { %2443 = vst [vmem:[%s3455_s15 + $0x168] sm:$0xff] %v2842_v54  ;;  %2445 = vst [vmem:[%s3455_s15 + $0x178] sm:$0xff] %v2858_v42 }
 0x1ff   : > { %v2243_v51 = vpop.f32.mrb[28].mxu0  ;;  %v2389_v58 = vpop.f32.mrb[28].mxu1 }
 0x200   : > { %v2843_v55 = vadd.f32 %v2243_v51, %v3526_v56  ;;  %v2245_v59 = vpop.f32.mrb[29].mxu0  ;;  %v2859_v60 = vadd.f32 %v2389_v58, %v3529_v57  ;;  %v2391_v0 = vpop.f32.mrb[29].mxu1 }
 0x201   : > { %v2844_v61 = vadd.f32 %v2245_v59, %v3532_v21  ;;  %v2247_v1 = vpop.f32.mrb[30].mxu0  ;;  %v2860_v3 = vadd.f32 %v2391_v0, %v3535_v5  ;;  %v2393_v16 = vpop.f32.mrb[30].mxu1 }
 0x202   : > { %2450 = vst [vmem:[%s3455_s15 + $0x1a0] sm:$0xff] %v2843_v55  ;;  %v2845_v4 = vadd.f32 %v2247_v1, %v3526_v56  ;;  %v2249_v31 = vpop.f32.mrb[31].mxu0  ;;  %2452 = vst [vmem:[%s3455_s15 + $0x1b0] sm:$0xff] %v2859_v60  ;;  %v2861_v6 = vadd.f32 %v2393_v16, %v3529_v57  ;;  %v2395_v9 = vpop.f32.mrb[31].mxu1 }
 0x203   : > { %2451 = vst [vmem:[%s3455_s15 + $0x1a8] sm:$0xff] %v2844_v61  ;;  %v2846_v8 = vadd.f32 %v2249_v31, %v3532_v21  ;;  %2453 = vst [vmem:[%s3455_s15 + $0x1b8] sm:$0xff] %v2860_v3  ;;  %v2862_v63 = vadd.f32 %v2395_v9, %v3535_v5 }
 0x204   : > { %2458 = vst [vmem:[%s3455_s15 + $0x1e0] sm:$0xff] %v2845_v4  ;;  %2460 = vst [vmem:[%s3455_s15 + $0x1f0] sm:$0xff] %v2861_v6 }
 0x205   : > { %2459 = vst [vmem:[%s3455_s15 + $0x1e8] sm:$0xff] %v2846_v8  ;;  %2461 = vst [vmem:[%s3455_s15 + $0x1f8] sm:$0xff] %v2862_v63 }
 0x206 PF: > { %s13_s12 = sadd.s32 1, %s2941_s12  }
 0x207   : > { %p10_p4 = scmp.ge.s32.totalorder %s13_s12, 4  }
 0x209   :  { %12 = sbr.rel (!%p10_p4) target bundleno = 1 (0x1), region = 65 }

</bundles_post_ra>
